<compile_context>
chip_gen: v5e
topology: v5e:2x2
jax: 0.10.0
libtpu: 0.0.40
codegen_flags: <defaults>
</compile_context>

<pallas_src>
import math
import functools

import numpy as np
import jax
import jax.numpy as jnp
from jax.experimental import pallas as pl
from jax.experimental.pallas import tpu as pltpu

# ----------------------------- model config -----------------------------------
CONTEXT_LENGTH = 16
PREDICTION_LENGTH = 8
LAGS_SEQ = [1, 2, 3]
TIME_DIM = 2
TARGET_DIM = 1
D_MODEL = 32
NHEAD = 8
NUM_LAYERS = 2
DIM_FF = 64
# decoder_dim = target_dim*(len(lags)+1) + time_dim + static + dynamic + embeds + target_dim
DECODER_DIM = TARGET_DIM * (len(LAGS_SEQ) + 1) + TIME_DIM + TARGET_DIM     # = 7
FEAT_AUG = 16                      # 7 feats | decoder-indicator | ones | zero pad (contract dim)
COL_DEC = DECODER_DIM              # indicator column -> mask_token row of augmented in-proj
COL_ONE = DECODER_DIM + 1          # ones column      -> in_b row of augmented in-proj
NUM_DISTR_PARAMS = 3               # StudentT: (df, loc, scale)
OUT_PAD = 128                      # lane-dense padded output width (wrapper slices :3)
SEQ_LEN = CONTEXT_LENGTH + PREDICTION_LENGTH     # 24
HEAD_SEQ = NHEAD * SEQ_LEN                       # 192

# misc (f32) constant-slab layout: augmented in-proj + out-proj + head mask
IN_W_ROW0 = 0                                    # rows 0:16   lanes 0:32   augmented in-proj
OUT_W_ROW0 = FEAT_AUG                            # rows 16:48  lanes 0:128  out-proj weight
OUT_B_ROW = OUT_W_ROW0 + D_MODEL                 # row 48                   out-proj bias
HM_ROW0 = 56                                     # rows 56:248 lanes 0:32   head mask
MISC_ROWS = HM_ROW0 + HEAD_SEQ                   # 248

# per-layer matmul-weight (bf16) slab layout
LW_ROWS = 3 * D_MODEL + DIM_FF                   # 160: wqkv(32) | wo(32) | w1(32) | w2(64)


# ----------------------------- fused Pallas kernel ------------------------------
def _fused_forward_kernel(feat_ref, bias_ref, misc_ref, lw_ref, lv_ref, o_ref, *,
                          num_layers, bt, seq_len, pred_len, d_model, nhead, dim_ff):
    """Whole forward hot path for a tile of `bt` batch elements.

    feat:  (bt*S, FEAT_AUG) f32  features + indicator cols (bias/mask-token fold)
    bias:  (bt, 1, S)       f32  additive key-padding attention bias (0 / -1e9)
    misc:  (MISC_ROWS, 128) f32  augmented in-proj, out-proj, constant head mask
    lw:    (L, 160, 128)    bf16 per-layer matmul weights (LN affine & q-scale folded)
    lv:    (L, 8, 128)      f32  per-layer bias rows (bqkv | bo | b1 | b2)
    """
    S, D, F = seq_len, d_model, dim_ff
    HS = nhead * S

    feat = feat_ref[...]                                        # (bt*S, FEAT_AUG)
    bias_all = bias_ref[...]                                    # (bt, 1, S)
    in_w = misc_ref[IN_W_ROW0:IN_W_ROW0 + FEAT_AUG, 0:D]        # (16, D)
    out_w = misc_ref[OUT_W_ROW0:OUT_W_ROW0 + D, :]              # (D, 128)
    out_b = misc_ref[OUT_B_ROW:OUT_B_ROW + 1, :]                # (1, 128)
    head_mask = misc_ref[HM_ROW0:HM_ROW0 + HS, 0:D]             # (HS, D)

    # ---- fused input projection; in_b and mask-token come from the indicator columns ----
    x = jnp.dot(feat, in_w, preferred_element_type=jnp.float32)     # (bt*S, D) f32

    def ln(h):  # gamma/beta folded into the following matmuls at pack time
        mu = jnp.mean(h, axis=-1, keepdims=True)
        var = jnp.mean((h - mu) ** 2, axis=-1, keepdims=True)
        return (h - mu) * jax.lax.rsqrt(var + 1e-5)

    for l in range(num_layers):
        lw = lw_ref[l]                                          # (160, 128) bf16
        lv = lv_ref[l]                                          # (8, 128)   f32
        wqkv = lw[0:D, 0:3 * D]
        wo = lw[D:2 * D, 0:D]
        w1 = lw[2 * D:3 * D, 0:F]
        w2 = lw[3 * D:3 * D + F, 0:D]
        bqkv = lv[0:1, 0:3 * D]
        bo = lv[1:2, 0:D]
        b1 = lv[2:3, 0:F]
        b2 = lv[3:4, 0:D]

        # --- self-attention block (pre-LN); LN1 affine & 1/sqrt(dh) pre-folded ---
        h = ln(x)
        qkv = jnp.dot(h.astype(jnp.bfloat16), wqkv,
                      preferred_element_type=jnp.float32) + bqkv      # (bt*S, 3D) f32

        attn_rows = []
        for b in range(bt):
            r0 = b * S
            q = qkv[r0:r0 + S, 0:D]
            k = qkv[r0:r0 + S, D:2 * D]
            v = qkv[r0:r0 + S, 2 * D:3 * D]
            # head-major score slab: replicate q per head, keep only head-h columns
            q_hm = jnp.concatenate([q] * nhead, axis=0) * head_mask   # (HS, D) f32
            s = jax.lax.dot_general(q_hm.astype(jnp.bfloat16), k.astype(jnp.bfloat16),
                                    (((1,), (1,)), ((), ())),
                                    preferred_element_type=jnp.float32)   # (HS, S)
            s = s + bias_all[b]                                        # key-padding bias
            s = s - jnp.max(s, axis=-1, keepdims=True)
            p = jnp.exp(s)
            p = p * pl.reciprocal(jnp.sum(p, axis=-1, keepdims=True), approx=True)
            attn_hm = jnp.dot(p.astype(jnp.bfloat16), v.astype(jnp.bfloat16),
                              preferred_element_type=jnp.float32) * head_mask  # (HS, D)
            # head combine: per-head outputs occupy disjoint columns -> sum row blocks
            acc = attn_hm[0:S, :]
            for hh in range(1, nhead):
                acc = acc + attn_hm[hh * S:(hh + 1) * S, :]
            attn_rows.append(acc)                                      # (S, D)

        attn = attn_rows[0] if bt == 1 else jnp.concatenate(attn_rows, axis=0)  # (bt*S, D)
        attn = jnp.dot(attn.astype(jnp.bfloat16), wo,
                       preferred_element_type=jnp.float32) + bo
        x = x + attn

        # --- feed-forward block (pre-LN); LN2 affine folded into w1/b1 ---
        h2 = ln(x)
        ff = jnp.dot(h2.astype(jnp.bfloat16), w1, preferred_element_type=jnp.float32) + b1
        # TODO(synk): PyTorch F.gelu default is exact erf; tanh approximation used here.
        ff = jax.nn.gelu(ff, approximate=True)
        ff = jnp.dot(ff.astype(jnp.bfloat16), w2, preferred_element_type=jnp.float32) + b2
        x = x + ff

    # ---- StudentT args projection on decoder rows (lane-dense padded output) ----
    reps = [x[b * S + S - pred_len:(b + 1) * S, :] for b in range(bt)]
    rep = reps[0] if bt == 1 else jnp.concatenate(reps, axis=0)        # (bt*pred, D)
    out = jnp.dot(rep, out_w, preferred_element_type=jnp.float32) + out_b
    o_ref[...] = out.astype(o_ref.dtype)


def _choose_bt(batch, max_bt=4):
    """Batch-tile size: amortize per-step overhead but keep grid >= 2 (v7x megacore)."""
    if batch <= 1:
        return 1
    return min(max_bt, (batch + 1) // 2)


def fused_forward(feat_flat, bias, packed, *, bt, pred_len=PREDICTION_LENGTH,
                  seq_len=SEQ_LEN, num_layers=NUM_LAYERS):
    """feat_flat: (B_pad*S, FEAT_AUG), bias: (B_pad, 1, S) -> (B_pad*pred, OUT_PAD)."""
    _, fa = feat_flat.shape
    b_pad = bias.shape[0]
    n_steps = b_pad // bt
    L, D, F = num_layers, D_MODEL, DIM_FF

    kern = functools.partial(_fused_forward_kernel, num_layers=num_layers, bt=bt,
                             seq_len=seq_len, pred_len=pred_len, d_model=D,
                             nhead=NHEAD, dim_ff=F)

    flops = 2 * b_pad * (
        seq_len * fa * D
        + num_layers * (seq_len * D * 3 * D + HEAD_SEQ * D * seq_len
                        + HEAD_SEQ * seq_len * D + seq_len * D * D
                        + seq_len * D * F + seq_len * F * D)
        + pred_len * D * OUT_PAD)
    transcendentals = b_pad * num_layers * (HEAD_SEQ * seq_len + seq_len * F)
    bytes_accessed = (packed["lw"].size * 2 + packed["lv"].size * 4 + packed["misc"].size * 4
                      + feat_flat.size * 4 + bias.size * 4 + b_pad * pred_len * OUT_PAD * 4)

    return pl.pallas_call(
        kern,
        out_shape=jax.ShapeDtypeStruct((b_pad * pred_len, OUT_PAD), jnp.float32),
        grid=(n_steps,),
        in_specs=[
            pl.BlockSpec((bt * seq_len, fa), lambda i: (i, 0)),        # flattened features
            pl.BlockSpec((bt, 1, seq_len), lambda i: (i, 0, 0)),       # key-padding bias
            pl.BlockSpec((MISC_ROWS, OUT_PAD), lambda i: (0, 0)),      # misc const slab (f32)
            pl.BlockSpec((L, LW_ROWS, OUT_PAD), lambda i: (0, 0, 0)),  # layer weights (bf16)
            pl.BlockSpec((L, 8, OUT_PAD), lambda i: (0, 0, 0)),        # layer bias rows (f32)
        ],
        out_specs=pl.BlockSpec((bt * pred_len, OUT_PAD), lambda i: (i, 0)),
        compiler_params=pltpu.CompilerParams(dimension_semantics=("parallel",)),
        cost_estimate=pl.CostEstimate(flops=flops, transcendentals=transcendentals,
                                      bytes_accessed=bytes_accessed),
    )(feat_flat, bias, packed["misc"], packed["lw"], packed["lv"])


# ----------------------------- JAX glue (feature prep) --------------------------
def std_scaler(data, weights, minimum_scale=1e-5):
    """StdScaler(dim=1, keepdim=True) semantics."""
    denom = jnp.maximum(jnp.sum(weights, axis=1, keepdims=True), 1.0)
    loc = jnp.sum(data * weights, axis=1, keepdims=True) / denom
    var = jnp.sum(((data - loc) * weights) ** 2, axis=1, keepdims=True) / denom
    scale = jnp.sqrt(var + minimum_scale)
    return (data - loc) / scale, loc, scale


def lagged_sequence_values(indices, prior_sequence, sequence):
    """gluonts lagged_sequence_values along dim=1, stacked on the last dim."""
    full = jnp.concatenate([prior_sequence, sequence], axis=1)
    L = sequence.shape[1]
    T = full.shape[1]
    lags = [full[:, T - lag - L: T - lag] for lag in indices]
    return jnp.stack(lags, axis=-1)


def forward(packed, past_target, past_observed_values, past_time_feat,
            future_time_feat, sample_key, num_parallel_samples=4):
    B = past_target.shape[0]
    ctx, pred = CONTEXT_LENGTH, PREDICTION_LENGTH
    S = ctx + pred

    # ---- create_encoder_inputs (cheap, data-dependent feature prep stays in XLA) ----
    context = past_target[:, -ctx:]
    observed_context = past_observed_values[:, -ctx:]
    scaled_context, loc, scale = std_scaler(context, observed_context)
    scaled_pre_context = (past_target[:, :-ctx] - loc) / scale
    encoder_targets = lagged_sequence_values([0] + LAGS_SEQ, scaled_pre_context,
                                             scaled_context)                    # (B, ctx, 4)
    log_scale = jnp.log(scale)                                                  # (B, 1)
    enc_static = jnp.broadcast_to(log_scale[:, None, :], (B, ctx, TARGET_DIM))
    enc_dynamic = past_time_feat[:, -ctx:]
    encoder_cat = jnp.concatenate([encoder_targets, enc_static, enc_dynamic], axis=-1)  # (B,ctx,7)

    # ---- create_decoder_inputs ----
    dec_static = jnp.broadcast_to(log_scale[:, None, :], (B, pred, TARGET_DIM))
    decoder_feats = jnp.concatenate([dec_static, future_time_feat], axis=-1)            # (B,pred,3)
    decoder_targets = jnp.zeros((B, pred, DECODER_DIM - decoder_feats.shape[-1]), jnp.float32)
    decoder_cat = jnp.concatenate([decoder_targets, decoder_feats], axis=-1)            # (B,pred,7)

    # ---- augmented feature slab: [7 feats | decoder-indicator | ones | zero pad] ----
    # indicator column picks up the mask token, ones column picks up the in-proj bias.
    feat7 = jnp.concatenate([encoder_cat, decoder_cat], axis=1)                         # (B, S, 7)
    is_dec = jnp.concatenate([jnp.zeros((B, ctx, 1), jnp.float32),
                              jnp.ones((B, pred, 1), jnp.float32)], axis=1)
    ones_col = jnp.ones((B, S, 1), jnp.float32)
    feat = jnp.concatenate(
        [feat7, is_dec, ones_col,
         jnp.zeros((B, S, FEAT_AUG - DECODER_DIM - 2), jnp.float32)], axis=-1)          # (B, S, 16)

    # ---- key-padding additive bias row (attn_mask_type=None); broadcast inside kernel ----
    future_observed = jnp.ones((B, pred), jnp.float32)
    observed = jnp.concatenate([past_observed_values[:, -ctx:], future_observed], axis=1)
    bias = jnp.where(observed > 0, 0.0, -1e9).astype(jnp.float32)[:, None, :]           # (B, 1, S)

    # ---- batch-tile, pad, flatten, then a single fused pallas_call ----
    bt = _choose_bt(B)
    b_pad = ((B + bt - 1) // bt) * bt
    if b_pad != B:
        feat = jnp.concatenate([feat, jnp.zeros((b_pad - B, S, FEAT_AUG), jnp.float32)], axis=0)
        bias = jnp.concatenate([bias, jnp.zeros((b_pad - B, 1, S), jnp.float32)], axis=0)
    feat_flat = feat.reshape(b_pad * S, FEAT_AUG)

    # ---- fused kernel: in-proj + mask token + encoder stack + distr-args proj ----
    # TODO(synk): matching nn.TransformerEncoder(norm=None): no final LayerNorm; dropout off (eval).
    out_padded = fused_forward(feat_flat, bias, packed, bt=bt)                          # (b_pad*pred,128)
    out_padded = out_padded.reshape(b_pad, pred, OUT_PAD)
    distr_params = out_padded[:B, :, :NUM_DISTR_PARAMS]

    # ---- StudentTOutput domain map ----
    df = 2.0 + jax.nn.softplus(distr_params[..., 0])      # (B, pred)
    loc_p = distr_params[..., 1]                          # (B, pred)
    scale_p = jax.nn.softplus(distr_params[..., 2])       # (B, pred)

    # ---- sampling from AffineTransformed(StudentT) ----
    # TODO(synk): StudentT sampling has no Pallas equivalent; done with jax.random in XLA.
    t = jax.random.t(sample_key, df, shape=(num_parallel_samples, B, pred))
    preds = loc + scale * (loc_p + scale_p * t)            # (n, B, pred)
    return jnp.transpose(preds, (1, 0, 2))                 # rearrange 'n b ... -> b n ...'


# ----------------------------- parameter init & packing -------------------------
def init_params(key):
    keys = iter(jax.random.split(key, 8 + 8 * NUM_LAYERS))

    def w(shape, s=0.05):
        return jax.random.normal(next(keys), shape, jnp.float32) * s

    params = {
        "in_w": w((DECODER_DIM, D_MODEL)),
        "in_b": w((1, D_MODEL)),
        "mask_token": w((1, D_MODEL)),      # nn.Embedding(1, d_model).weight
        "out_w": w((D_MODEL, NUM_DISTR_PARAMS)),
        "out_b": w((1, NUM_DISTR_PARAMS)),
        "layers": [],
    }
    for _ in range(NUM_LAYERS):
        params["layers"].append({
            "ln1_g": jnp.ones((1, D_MODEL), jnp.float32),
            "ln1_b": jnp.zeros((1, D_MODEL), jnp.float32),
            "wq": w((D_MODEL, D_MODEL)), "bq": jnp.zeros((1, D_MODEL), jnp.float32),
            "wk": w((D_MODEL, D_MODEL)), "bk": jnp.zeros((1, D_MODEL), jnp.float32),
            "wv": w((D_MODEL, D_MODEL)), "bv": jnp.zeros((1, D_MODEL), jnp.float32),
            "wo": w((D_MODEL, D_MODEL)), "bo": jnp.zeros((1, D_MODEL), jnp.float32),
            "ln2_g": jnp.ones((1, D_MODEL), jnp.float32),
            "ln2_b": jnp.zeros((1, D_MODEL), jnp.float32),
            "w1": w((D_MODEL, DIM_FF)), "b1": jnp.zeros((1, DIM_FF), jnp.float32),
            "w2": w((DIM_FF, D_MODEL)), "b2": jnp.zeros((1, D_MODEL), jnp.float32),
        })
    return params


def pack_params(params):
    """One-time weight transform for the fused kernel:
       - augment in-proj: indicator columns fold in_b and mask_token into the weight
       - fuse Wq/Wk/Wv (+biases) into one (D, 3D) matmul; fold 1/sqrt(dh) into the Q third
       - fold LayerNorm gamma/beta into the following projections (ln1 -> qkv, ln2 -> ff1)
       - cast matmul weights to bf16; keep biases f32
       - pack everything into 3 slabs: misc(f32), lw(bf16, per layer), lv(f32, per layer)."""
    dh = D_MODEL // NHEAD
    qscale = 1.0 / math.sqrt(dh)

    # ---- misc slab: augmented in-proj + out-proj + constant head mask ----
    in_w_aug = jnp.zeros((FEAT_AUG, D_MODEL), jnp.float32)
    in_w_aug = in_w_aug.at[:DECODER_DIM].set(params["in_w"])
    in_w_aug = in_w_aug.at[COL_DEC].set(params["mask_token"][0])
    in_w_aug = in_w_aug.at[COL_ONE].set(params["in_b"][0])

    r = np.arange(HEAD_SEQ)
    c = np.arange(D_MODEL)
    head_mask = ((r[:, None] // SEQ_LEN) == (c[None, :] // dh)).astype(np.float32)   # (HS, D)

    misc = jnp.zeros((MISC_ROWS, OUT_PAD), jnp.float32)
    misc = misc.at[IN_W_ROW0:IN_W_ROW0 + FEAT_AUG, 0:D_MODEL].set(in_w_aug)
    misc = misc.at[OUT_W_ROW0:OUT_W_ROW0 + D_MODEL, 0:NUM_DISTR_PARAMS].set(params["out_w"])
    misc = misc.at[OUT_B_ROW, 0:NUM_DISTR_PARAMS].set(params["out_b"][0])
    misc = misc.at[HM_ROW0:HM_ROW0 + HEAD_SEQ, 0:D_MODEL].set(jnp.asarray(head_mask))

    # ---- per-layer slabs ----
    scale_vec = jnp.concatenate([jnp.full((1, D_MODEL), qscale, jnp.float32),
                                 jnp.ones((1, 2 * D_MODEL), jnp.float32)], axis=1)   # (1, 3D)
    lw_list, lv_list = [], []
    for lp in params["layers"]:
        g1, be1 = lp["ln1_g"], lp["ln1_b"]                                   # (1, D)
        g2, be2 = lp["ln2_g"], lp["ln2_b"]

        wqkv = jnp.concatenate([lp["wq"], lp["wk"], lp["wv"]], axis=1)       # (D, 3D)
        bqkv = jnp.concatenate([lp["bq"], lp["bk"], lp["bv"]], axis=1)       # (1, 3D)
        bqkv = be1 @ wqkv + bqkv                     # fold LN1 beta into the bias
        wqkv = g1.T * wqkv                           # fold LN1 gamma into the weight
        wqkv = wqkv * scale_vec                      # fold 1/sqrt(dh) into the Q third
        bqkv = bqkv * scale_vec

        w1 = g2.T * lp["w1"]                         # fold LN2 gamma
        b1 = be2 @ lp["w1"] + lp["b1"]               # fold LN2 beta

        lw = jnp.zeros((LW_ROWS, OUT_PAD), jnp.float32)
        lw = lw.at[0:D_MODEL, 0:3 * D_MODEL].set(wqkv)
        lw = lw.at[D_MODEL:2 * D_MODEL, 0:D_MODEL].set(lp["wo"])
        lw = lw.at[2 * D_MODEL:3 * D_MODEL, 0:DIM_FF].set(w1)
        lw = lw.at[3 * D_MODEL:3 * D_MODEL + DIM_FF, 0:D_MODEL].set(lp["w2"])
        lw_list.append(lw.astype(jnp.bfloat16))

        lv = jnp.zeros((8, OUT_PAD), jnp.float32)
        lv = lv.at[0, 0:3 * D_MODEL].set(bqkv[0])
        lv = lv.at[1, 0:D_MODEL].set(lp["bo"][0])
        lv = lv.at[2, 0:DIM_FF].set(b1[0])
        lv = lv.at[3, 0:D_MODEL].set(lp["b2"][0])
        lv_list.append(lv)

    return {"misc": misc, "lw": jnp.stack(lw_list), "lv": jnp.stack(lv_list)}


# ----------------------------- main ---------------------------------------------
if __name__ == "__main__":
    key = jax.random.PRNGKey(0)
    pkey, dkey, skey = jax.random.split(key, 3)
    params = init_params(pkey)
    packed = pack_params(params)

    B = 2
    past_length = CONTEXT_LENGTH + max(LAGS_SEQ)   # 19
    dk = jax.random.split(dkey, 3)
    past_target = jax.random.normal(dk[0], (B, past_length), jnp.float32)
    past_observed_values = jnp.ones((B, past_length), jnp.float32)
    past_time_feat = jax.random.normal(dk[1], (B, past_length, TIME_DIM), jnp.float32)
    future_time_feat = jax.random.normal(dk[2], (B, PREDICTION_LENGTH, TIME_DIM), jnp.float32)

    preds = forward(packed, past_target, past_observed_values, past_time_feat,
                    future_time_feat, skey, num_parallel_samples=4)
    preds = jax.block_until_ready(preds)

    assert preds.shape == (B, 4, PREDICTION_LENGTH), preds.shape
    assert bool(jnp.all(jnp.isfinite(preds)))
    print("KERNEL_OK")
</pallas_src>

<mosaic_0001>
module attributes {stable_mosaic.version = 11 : i64} {
  func.func @_fused_forward_kernel(%arg0: i32, %arg1: memref<24x16xf32, #tpu.memory_space<vmem>>, %arg2: memref<1x1x24xf32, #tpu.memory_space<vmem>>, %arg3: memref<248x128xf32, #tpu.memory_space<vmem>>, %arg4: memref<2x160x128xbf16, #tpu.memory_space<vmem>>, %arg5: memref<2x8x128xf32, #tpu.memory_space<vmem>>, %arg6: memref<8x128xf32, #tpu.memory_space<vmem>>) attributes {dimension_semantics = [#tpu.dimension_semantics<parallel>], iteration_bounds = array<i64: 2>, scalar_prefetch = 0 : i64, scratch_operands = 0 : i64, tpu.core_type = #tpu.core_type<tc>, window_params = [{transform_indices = @transform_0, window_bounds = array<i64: 24, 16>}, {transform_indices = @transform_1, window_bounds = array<i64: 1, 1, 24>}, {pipeline_mode = #tpu.pipeline_mode<synchronous>, transform_indices = @transform_2, window_bounds = array<i64: 248, 128>}, {pipeline_mode = #tpu.pipeline_mode<synchronous>, transform_indices = @transform_3, window_bounds = array<i64: 2, 160, 128>}, {pipeline_mode = #tpu.pipeline_mode<synchronous>, transform_indices = @transform_4, window_bounds = array<i64: 2, 8, 128>}, {transform_indices = @transform_5, window_bounds = array<i64: 8, 128>}]} {
    %c0 = arith.constant 0 : index
    %c0_0 = arith.constant 0 : index
    %0 = vector.load %arg1[%c0, %c0_0] : memref<24x16xf32, #tpu.memory_space<vmem>>, vector<24x16xf32>
    %c0_1 = arith.constant 0 : index
    %c0_2 = arith.constant 0 : index
    %c0_3 = arith.constant 0 : index
    %1 = vector.load %arg2[%c0_1, %c0_2, %c0_3] : memref<1x1x24xf32, #tpu.memory_space<vmem>>, vector<1x1x24xf32>
    %c0_4 = arith.constant 0 : index
    %c0_5 = arith.constant 0 : index
    %2 = vector.load %arg3[%c0_4, %c0_5] : memref<248x128xf32, #tpu.memory_space<vmem>>, vector<16x32xf32>
    %c16 = arith.constant 16 : index
    %c0_6 = arith.constant 0 : index
    %3 = vector.load %arg3[%c16, %c0_6] : memref<248x128xf32, #tpu.memory_space<vmem>>, vector<32x128xf32>
    %c48 = arith.constant 48 : index
    %c0_7 = arith.constant 0 : index
    %4 = vector.load %arg3[%c48, %c0_7] : memref<248x128xf32, #tpu.memory_space<vmem>>, vector<1x128xf32>
    %c56 = arith.constant 56 : index
    %c0_8 = arith.constant 0 : index
    %5 = vector.load %arg3[%c56, %c0_8] : memref<248x128xf32, #tpu.memory_space<vmem>>, vector<192x32xf32>
    %cst = arith.constant dense<0.000000e+00> : vector<24x32xf32>
    %6 = tpu.matmul %0, %2, %cst {dimension_numbers = #tpu.dot_dimension_numbers<[1], [0], [0], [1], [0, 0, 1, 1], [], []>} : vector<24x16xf32>, vector<16x32xf32>, vector<24x32xf32> -> vector<24x32xf32>
    %c0_9 = arith.constant 0 : index
    %c0_10 = arith.constant 0 : index
    %c0_11 = arith.constant 0 : index
    %7 = vector.load %arg4[%c0_9, %c0_10, %c0_11] : memref<2x160x128xbf16, #tpu.memory_space<vmem>>, vector<1x160x128xbf16>
    %8 = vector.shape_cast %7 : vector<1x160x128xbf16> to vector<160x128xbf16>
    %c0_12 = arith.constant 0 : index
    %c0_13 = arith.constant 0 : index
    %c0_14 = arith.constant 0 : index
    %9 = vector.load %arg5[%c0_12, %c0_13, %c0_14] : memref<2x8x128xf32, #tpu.memory_space<vmem>>, vector<1x8x128xf32>
    %10 = vector.shape_cast %9 : vector<1x8x128xf32> to vector<8x128xf32>
    %11 = vector.extract_strided_slice %8 {offsets = [0, 0], sizes = [32, 96], strides = [1, 1]} : vector<160x128xbf16> to vector<32x96xbf16>
    %12 = vector.extract_strided_slice %8 {offsets = [32, 0], sizes = [32, 32], strides = [1, 1]} : vector<160x128xbf16> to vector<32x32xbf16>
    %13 = vector.extract_strided_slice %8 {offsets = [64, 0], sizes = [32, 64], strides = [1, 1]} : vector<160x128xbf16> to vector<32x64xbf16>
    %14 = vector.extract_strided_slice %8 {offsets = [96, 0], sizes = [64, 32], strides = [1, 1]} : vector<160x128xbf16> to vector<64x32xbf16>
    %15 = vector.extract_strided_slice %10 {offsets = [0, 0], sizes = [1, 96], strides = [1, 1]} : vector<8x128xf32> to vector<1x96xf32>
    %16 = vector.extract_strided_slice %10 {offsets = [1, 0], sizes = [1, 32], strides = [1, 1]} : vector<8x128xf32> to vector<1x32xf32>
    %17 = vector.extract_strided_slice %10 {offsets = [2, 0], sizes = [1, 64], strides = [1, 1]} : vector<8x128xf32> to vector<1x64xf32>
    %18 = vector.extract_strided_slice %10 {offsets = [3, 0], sizes = [1, 32], strides = [1, 1]} : vector<8x128xf32> to vector<1x32xf32>
    %cst_15 = arith.constant dense<0.000000e+00> : vector<24xf32>
    %19 = vector.multi_reduction <add>, %6, %cst_15 [1] : vector<24x32xf32> to vector<24xf32>
    %20 = vector.shape_cast %19 : vector<24xf32> to vector<24x1xf32>
    %cst_16 = arith.constant 3.200000e+01 : f32
    %21 = vector.broadcast %cst_16 : f32 to vector<24x1xf32>
    %22 = arith.divf %20, %21 : vector<24x1xf32>
    %23 = vector.broadcast %22 : vector<24x1xf32> to vector<24x32xf32>
    %24 = arith.subf %6, %23 : vector<24x32xf32>
    %25 = arith.mulf %24, %24 : vector<24x32xf32>
    %cst_17 = arith.constant dense<0.000000e+00> : vector<24xf32>
    %26 = vector.multi_reduction <add>, %25, %cst_17 [1] : vector<24x32xf32> to vector<24xf32>
    %27 = vector.shape_cast %26 : vector<24xf32> to vector<24x1xf32>
    %cst_18 = arith.constant 3.200000e+01 : f32
    %28 = vector.broadcast %cst_18 : f32 to vector<24x1xf32>
    %29 = arith.divf %27, %28 : vector<24x1xf32>
    %30 = vector.broadcast %22 : vector<24x1xf32> to vector<24x32xf32>
    %31 = arith.subf %6, %30 : vector<24x32xf32>
    %cst_19 = arith.constant 9.99999974E-6 : f32
    %32 = vector.broadcast %cst_19 : f32 to vector<24x1xf32>
    %33 = arith.addf %29, %32 : vector<24x1xf32>
    %34 = math.rsqrt %33 : vector<24x1xf32>
    %35 = vector.broadcast %34 : vector<24x1xf32> to vector<24x32xf32>
    %36 = arith.mulf %31, %35 : vector<24x32xf32>
    %37 = arith.truncf %36 : vector<24x32xf32> to vector<24x32xbf16>
    %cst_20 = arith.constant dense<0.000000e+00> : vector<24x96xf32>
    %38 = tpu.matmul %37, %11, %cst_20 {dimension_numbers = #tpu.dot_dimension_numbers<[1], [0], [0], [1], [0, 0, 1, 1], [], []>} : vector<24x32xbf16>, vector<32x96xbf16>, vector<24x96xf32> -> vector<24x96xf32>
    %39 = vector.broadcast %15 : vector<1x96xf32> to vector<24x96xf32>
    %40 = arith.addf %38, %39 : vector<24x96xf32>
    %41 = vector.extract_strided_slice %40 {offsets = [0, 0], sizes = [24, 32], strides = [1, 1]} : vector<24x96xf32> to vector<24x32xf32>
    %42 = vector.extract_strided_slice %40 {offsets = [0, 32], sizes = [24, 32], strides = [1, 1]} : vector<24x96xf32> to vector<24x32xf32>
    %43 = vector.extract_strided_slice %40 {offsets = [0, 64], sizes = [24, 32], strides = [1, 1]} : vector<24x96xf32> to vector<24x32xf32>
    %44 = tpu.concatenate %41, %41, %41, %41, %41, %41, %41, %41 in 0 : vector<24x32xf32>, vector<24x32xf32>, vector<24x32xf32>, vector<24x32xf32>, vector<24x32xf32>, vector<24x32xf32>, vector<24x32xf32>, vector<24x32xf32> -> vector<192x32xf32>
    %45 = arith.mulf %44, %5 : vector<192x32xf32>
    %46 = arith.truncf %45 : vector<192x32xf32> to vector<192x32xbf16>
    %47 = arith.truncf %42 : vector<24x32xf32> to vector<24x32xbf16>
    %cst_21 = arith.constant dense<0.000000e+00> : vector<192x24xf32>
    %48 = tpu.matmul %46, %47, %cst_21 {dimension_numbers = #tpu.dot_dimension_numbers<[1], [1], [0], [0], [0, 0, 1, 0], [], []>} : vector<192x32xbf16>, vector<24x32xbf16>, vector<192x24xf32> -> vector<192x24xf32>
    %49 = vector.shape_cast %1 : vector<1x1x24xf32> to vector<1x24xf32>
    %50 = vector.broadcast %49 : vector<1x24xf32> to vector<192x24xf32>
    %51 = arith.addf %48, %50 : vector<192x24xf32>
    %cst_22 = arith.constant dense<0xFF800000> : vector<192xf32>
    %52 = vector.multi_reduction <maximumf>, %51, %cst_22 [1] : vector<192x24xf32> to vector<192xf32>
    %53 = vector.shape_cast %52 : vector<192xf32> to vector<192x1xf32>
    %54 = vector.broadcast %53 : vector<192x1xf32> to vector<192x24xf32>
    %55 = arith.subf %51, %54 : vector<192x24xf32>
    %56 = math.exp %55 : vector<192x24xf32>
    %cst_23 = arith.constant dense<0.000000e+00> : vector<192xf32>
    %57 = vector.multi_reduction <add>, %56, %cst_23 [1] : vector<192x24xf32> to vector<192xf32>
    %58 = vector.shape_cast %57 : vector<192xf32> to vector<192x1xf32>
    %59 = tpu.reciprocal %58 {approx = true} : vector<192x1xf32> -> vector<192x1xf32>
    %60 = vector.broadcast %59 : vector<192x1xf32> to vector<192x24xf32>
    %61 = arith.mulf %56, %60 : vector<192x24xf32>
    %62 = arith.truncf %61 : vector<192x24xf32> to vector<192x24xbf16>
    %63 = arith.truncf %43 : vector<24x32xf32> to vector<24x32xbf16>
    %cst_24 = arith.constant dense<0.000000e+00> : vector<192x32xf32>
    %64 = tpu.matmul %62, %63, %cst_24 {dimension_numbers = #tpu.dot_dimension_numbers<[1], [0], [0], [1], [0, 0, 1, 1], [], []>} : vector<192x24xbf16>, vector<24x32xbf16>, vector<192x32xf32> -> vector<192x32xf32>
    %65 = arith.mulf %64, %5 : vector<192x32xf32>
    %66 = vector.extract_strided_slice %65 {offsets = [0, 0], sizes = [24, 32], strides = [1, 1]} : vector<192x32xf32> to vector<24x32xf32>
    %67 = vector.extract_strided_slice %65 {offsets = [24, 0], sizes = [24, 32], strides = [1, 1]} : vector<192x32xf32> to vector<24x32xf32>
    %68 = arith.addf %66, %67 : vector<24x32xf32>
    %69 = vector.extract_strided_slice %65 {offsets = [48, 0], sizes = [24, 32], strides = [1, 1]} : vector<192x32xf32> to vector<24x32xf32>
    %70 = arith.addf %68, %69 : vector<24x32xf32>
    %71 = vector.extract_strided_slice %65 {offsets = [72, 0], sizes = [24, 32], strides = [1, 1]} : vector<192x32xf32> to vector<24x32xf32>
    %72 = arith.addf %70, %71 : vector<24x32xf32>
    %73 = vector.extract_strided_slice %65 {offsets = [96, 0], sizes = [24, 32], strides = [1, 1]} : vector<192x32xf32> to vector<24x32xf32>
    %74 = arith.addf %72, %73 : vector<24x32xf32>
    %75 = vector.extract_strided_slice %65 {offsets = [120, 0], sizes = [24, 32], strides = [1, 1]} : vector<192x32xf32> to vector<24x32xf32>
    %76 = arith.addf %74, %75 : vector<24x32xf32>
    %77 = vector.extract_strided_slice %65 {offsets = [144, 0], sizes = [24, 32], strides = [1, 1]} : vector<192x32xf32> to vector<24x32xf32>
    %78 = arith.addf %76, %77 : vector<24x32xf32>
    %79 = vector.extract_strided_slice %65 {offsets = [168, 0], sizes = [24, 32], strides = [1, 1]} : vector<192x32xf32> to vector<24x32xf32>
    %80 = arith.addf %78, %79 : vector<24x32xf32>
    %81 = arith.truncf %80 : vector<24x32xf32> to vector<24x32xbf16>
    %cst_25 = arith.constant dense<0.000000e+00> : vector<24x32xf32>
    %82 = tpu.matmul %81, %12, %cst_25 {dimension_numbers = #tpu.dot_dimension_numbers<[1], [0], [0], [1], [0, 0, 1, 1], [], []>} : vector<24x32xbf16>, vector<32x32xbf16>, vector<24x32xf32> -> vector<24x32xf32>
    %83 = vector.broadcast %16 : vector<1x32xf32> to vector<24x32xf32>
    %84 = arith.addf %82, %83 : vector<24x32xf32>
    %85 = arith.addf %6, %84 : vector<24x32xf32>
    %cst_26 = arith.constant dense<0.000000e+00> : vector<24xf32>
    %86 = vector.multi_reduction <add>, %85, %cst_26 [1] : vector<24x32xf32> to vector<24xf32>
    %87 = vector.shape_cast %86 : vector<24xf32> to vector<24x1xf32>
    %cst_27 = arith.constant 3.200000e+01 : f32
    %88 = vector.broadcast %cst_27 : f32 to vector<24x1xf32>
    %89 = arith.divf %87, %88 : vector<24x1xf32>
    %90 = vector.broadcast %89 : vector<24x1xf32> to vector<24x32xf32>
    %91 = arith.subf %85, %90 : vector<24x32xf32>
    %92 = arith.mulf %91, %91 : vector<24x32xf32>
    %cst_28 = arith.constant dense<0.000000e+00> : vector<24xf32>
    %93 = vector.multi_reduction <add>, %92, %cst_28 [1] : vector<24x32xf32> to vector<24xf32>
    %94 = vector.shape_cast %93 : vector<24xf32> to vector<24x1xf32>
    %cst_29 = arith.constant 3.200000e+01 : f32
    %95 = vector.broadcast %cst_29 : f32 to vector<24x1xf32>
    %96 = arith.divf %94, %95 : vector<24x1xf32>
    %97 = vector.broadcast %89 : vector<24x1xf32> to vector<24x32xf32>
    %98 = arith.subf %85, %97 : vector<24x32xf32>
    %cst_30 = arith.constant 9.99999974E-6 : f32
    %99 = vector.broadcast %cst_30 : f32 to vector<24x1xf32>
    %100 = arith.addf %96, %99 : vector<24x1xf32>
    %101 = math.rsqrt %100 : vector<24x1xf32>
    %102 = vector.broadcast %101 : vector<24x1xf32> to vector<24x32xf32>
    %103 = arith.mulf %98, %102 : vector<24x32xf32>
    %104 = arith.truncf %103 : vector<24x32xf32> to vector<24x32xbf16>
    %cst_31 = arith.constant dense<0.000000e+00> : vector<24x64xf32>
    %105 = tpu.matmul %104, %13, %cst_31 {dimension_numbers = #tpu.dot_dimension_numbers<[1], [0], [0], [1], [0, 0, 1, 1], [], []>} : vector<24x32xbf16>, vector<32x64xbf16>, vector<24x64xf32> -> vector<24x64xf32>
    %106 = vector.broadcast %17 : vector<1x64xf32> to vector<24x64xf32>
    %107 = arith.addf %105, %106 : vector<24x64xf32>
    %108 = arith.mulf %107, %107 : vector<24x64xf32>
    %109 = arith.mulf %107, %108 : vector<24x64xf32>
    %cst_32 = arith.constant 4.471500e-02 : f32
    %110 = vector.broadcast %cst_32 : f32 to vector<24x64xf32>
    %111 = arith.mulf %110, %109 : vector<24x64xf32>
    %112 = arith.addf %107, %111 : vector<24x64xf32>
    %cst_33 = arith.constant 0.797884583 : f32
    %113 = vector.broadcast %cst_33 : f32 to vector<24x64xf32>
    %114 = arith.mulf %113, %112 : vector<24x64xf32>
    %115 = math.tanh %114 : vector<24x64xf32>
    %cst_34 = arith.constant 1.000000e+00 : f32
    %116 = vector.broadcast %cst_34 : f32 to vector<24x64xf32>
    %117 = arith.addf %116, %115 : vector<24x64xf32>
    %cst_35 = arith.constant 5.000000e-01 : f32
    %118 = vector.broadcast %cst_35 : f32 to vector<24x64xf32>
    %119 = arith.mulf %118, %117 : vector<24x64xf32>
    %120 = arith.mulf %107, %119 : vector<24x64xf32>
    %121 = arith.truncf %120 : vector<24x64xf32> to vector<24x64xbf16>
    %cst_36 = arith.constant dense<0.000000e+00> : vector<24x32xf32>
    %122 = tpu.matmul %121, %14, %cst_36 {dimension_numbers = #tpu.dot_dimension_numbers<[1], [0], [0], [1], [0, 0, 1, 1], [], []>} : vector<24x64xbf16>, vector<64x32xbf16>, vector<24x32xf32> -> vector<24x32xf32>
    %123 = vector.broadcast %18 : vector<1x32xf32> to vector<24x32xf32>
    %124 = arith.addf %122, %123 : vector<24x32xf32>
    %125 = arith.addf %85, %124 : vector<24x32xf32>
    %c1 = arith.constant 1 : index
    %c0_37 = arith.constant 0 : index
    %c0_38 = arith.constant 0 : index
    %126 = vector.load %arg4[%c1, %c0_37, %c0_38] : memref<2x160x128xbf16, #tpu.memory_space<vmem>>, vector<1x160x128xbf16>
    %127 = vector.shape_cast %126 : vector<1x160x128xbf16> to vector<160x128xbf16>
    %c1_39 = arith.constant 1 : index
    %c0_40 = arith.constant 0 : index
    %c0_41 = arith.constant 0 : index
    %128 = vector.load %arg5[%c1_39, %c0_40, %c0_41] : memref<2x8x128xf32, #tpu.memory_space<vmem>>, vector<1x8x128xf32>
    %129 = vector.shape_cast %128 : vector<1x8x128xf32> to vector<8x128xf32>
    %130 = vector.extract_strided_slice %127 {offsets = [0, 0], sizes = [32, 96], strides = [1, 1]} : vector<160x128xbf16> to vector<32x96xbf16>
    %131 = vector.extract_strided_slice %127 {offsets = [32, 0], sizes = [32, 32], strides = [1, 1]} : vector<160x128xbf16> to vector<32x32xbf16>
    %132 = vector.extract_strided_slice %127 {offsets = [64, 0], sizes = [32, 64], strides = [1, 1]} : vector<160x128xbf16> to vector<32x64xbf16>
    %133 = vector.extract_strided_slice %127 {offsets = [96, 0], sizes = [64, 32], strides = [1, 1]} : vector<160x128xbf16> to vector<64x32xbf16>
    %134 = vector.extract_strided_slice %129 {offsets = [0, 0], sizes = [1, 96], strides = [1, 1]} : vector<8x128xf32> to vector<1x96xf32>
    %135 = vector.extract_strided_slice %129 {offsets = [1, 0], sizes = [1, 32], strides = [1, 1]} : vector<8x128xf32> to vector<1x32xf32>
    %136 = vector.extract_strided_slice %129 {offsets = [2, 0], sizes = [1, 64], strides = [1, 1]} : vector<8x128xf32> to vector<1x64xf32>
    %137 = vector.extract_strided_slice %129 {offsets = [3, 0], sizes = [1, 32], strides = [1, 1]} : vector<8x128xf32> to vector<1x32xf32>
    %cst_42 = arith.constant dense<0.000000e+00> : vector<24xf32>
    %138 = vector.multi_reduction <add>, %125, %cst_42 [1] : vector<24x32xf32> to vector<24xf32>
    %139 = vector.shape_cast %138 : vector<24xf32> to vector<24x1xf32>
    %cst_43 = arith.constant 3.200000e+01 : f32
    %140 = vector.broadcast %cst_43 : f32 to vector<24x1xf32>
    %141 = arith.divf %139, %140 : vector<24x1xf32>
    %142 = vector.broadcast %141 : vector<24x1xf32> to vector<24x32xf32>
    %143 = arith.subf %125, %142 : vector<24x32xf32>
    %144 = arith.mulf %143, %143 : vector<24x32xf32>
    %cst_44 = arith.constant dense<0.000000e+00> : vector<24xf32>
    %145 = vector.multi_reduction <add>, %144, %cst_44 [1] : vector<24x32xf32> to vector<24xf32>
    %146 = vector.shape_cast %145 : vector<24xf32> to vector<24x1xf32>
    %cst_45 = arith.constant 3.200000e+01 : f32
    %147 = vector.broadcast %cst_45 : f32 to vector<24x1xf32>
    %148 = arith.divf %146, %147 : vector<24x1xf32>
    %149 = vector.broadcast %141 : vector<24x1xf32> to vector<24x32xf32>
    %150 = arith.subf %125, %149 : vector<24x32xf32>
    %cst_46 = arith.constant 9.99999974E-6 : f32
    %151 = vector.broadcast %cst_46 : f32 to vector<24x1xf32>
    %152 = arith.addf %148, %151 : vector<24x1xf32>
    %153 = math.rsqrt %152 : vector<24x1xf32>
    %154 = vector.broadcast %153 : vector<24x1xf32> to vector<24x32xf32>
    %155 = arith.mulf %150, %154 : vector<24x32xf32>
    %156 = arith.truncf %155 : vector<24x32xf32> to vector<24x32xbf16>
    %cst_47 = arith.constant dense<0.000000e+00> : vector<24x96xf32>
    %157 = tpu.matmul %156, %130, %cst_47 {dimension_numbers = #tpu.dot_dimension_numbers<[1], [0], [0], [1], [0, 0, 1, 1], [], []>} : vector<24x32xbf16>, vector<32x96xbf16>, vector<24x96xf32> -> vector<24x96xf32>
    %158 = vector.broadcast %134 : vector<1x96xf32> to vector<24x96xf32>
    %159 = arith.addf %157, %158 : vector<24x96xf32>
    %160 = vector.extract_strided_slice %159 {offsets = [0, 0], sizes = [24, 32], strides = [1, 1]} : vector<24x96xf32> to vector<24x32xf32>
    %161 = vector.extract_strided_slice %159 {offsets = [0, 32], sizes = [24, 32], strides = [1, 1]} : vector<24x96xf32> to vector<24x32xf32>
    %162 = vector.extract_strided_slice %159 {offsets = [0, 64], sizes = [24, 32], strides = [1, 1]} : vector<24x96xf32> to vector<24x32xf32>
    %163 = tpu.concatenate %160, %160, %160, %160, %160, %160, %160, %160 in 0 : vector<24x32xf32>, vector<24x32xf32>, vector<24x32xf32>, vector<24x32xf32>, vector<24x32xf32>, vector<24x32xf32>, vector<24x32xf32>, vector<24x32xf32> -> vector<192x32xf32>
    %164 = arith.mulf %163, %5 : vector<192x32xf32>
    %165 = arith.truncf %164 : vector<192x32xf32> to vector<192x32xbf16>
    %166 = arith.truncf %161 : vector<24x32xf32> to vector<24x32xbf16>
    %cst_48 = arith.constant dense<0.000000e+00> : vector<192x24xf32>
    %167 = tpu.matmul %165, %166, %cst_48 {dimension_numbers = #tpu.dot_dimension_numbers<[1], [1], [0], [0], [0, 0, 1, 0], [], []>} : vector<192x32xbf16>, vector<24x32xbf16>, vector<192x24xf32> -> vector<192x24xf32>
    %168 = vector.shape_cast %1 : vector<1x1x24xf32> to vector<1x24xf32>
    %169 = vector.broadcast %168 : vector<1x24xf32> to vector<192x24xf32>
    %170 = arith.addf %167, %169 : vector<192x24xf32>
    %cst_49 = arith.constant dense<0xFF800000> : vector<192xf32>
    %171 = vector.multi_reduction <maximumf>, %170, %cst_49 [1] : vector<192x24xf32> to vector<192xf32>
    %172 = vector.shape_cast %171 : vector<192xf32> to vector<192x1xf32>
    %173 = vector.broadcast %172 : vector<192x1xf32> to vector<192x24xf32>
    %174 = arith.subf %170, %173 : vector<192x24xf32>
    %175 = math.exp %174 : vector<192x24xf32>
    %cst_50 = arith.constant dense<0.000000e+00> : vector<192xf32>
    %176 = vector.multi_reduction <add>, %175, %cst_50 [1] : vector<192x24xf32> to vector<192xf32>
    %177 = vector.shape_cast %176 : vector<192xf32> to vector<192x1xf32>
    %178 = tpu.reciprocal %177 {approx = true} : vector<192x1xf32> -> vector<192x1xf32>
    %179 = vector.broadcast %178 : vector<192x1xf32> to vector<192x24xf32>
    %180 = arith.mulf %175, %179 : vector<192x24xf32>
    %181 = arith.truncf %180 : vector<192x24xf32> to vector<192x24xbf16>
    %182 = arith.truncf %162 : vector<24x32xf32> to vector<24x32xbf16>
    %cst_51 = arith.constant dense<0.000000e+00> : vector<192x32xf32>
    %183 = tpu.matmul %181, %182, %cst_51 {dimension_numbers = #tpu.dot_dimension_numbers<[1], [0], [0], [1], [0, 0, 1, 1], [], []>} : vector<192x24xbf16>, vector<24x32xbf16>, vector<192x32xf32> -> vector<192x32xf32>
    %184 = arith.mulf %183, %5 : vector<192x32xf32>
    %185 = vector.extract_strided_slice %184 {offsets = [0, 0], sizes = [24, 32], strides = [1, 1]} : vector<192x32xf32> to vector<24x32xf32>
    %186 = vector.extract_strided_slice %184 {offsets = [24, 0], sizes = [24, 32], strides = [1, 1]} : vector<192x32xf32> to vector<24x32xf32>
    %187 = arith.addf %185, %186 : vector<24x32xf32>
    %188 = vector.extract_strided_slice %184 {offsets = [48, 0], sizes = [24, 32], strides = [1, 1]} : vector<192x32xf32> to vector<24x32xf32>
    %189 = arith.addf %187, %188 : vector<24x32xf32>
    %190 = vector.extract_strided_slice %184 {offsets = [72, 0], sizes = [24, 32], strides = [1, 1]} : vector<192x32xf32> to vector<24x32xf32>
    %191 = arith.addf %189, %190 : vector<24x32xf32>
    %192 = vector.extract_strided_slice %184 {offsets = [96, 0], sizes = [24, 32], strides = [1, 1]} : vector<192x32xf32> to vector<24x32xf32>
    %193 = arith.addf %191, %192 : vector<24x32xf32>
    %194 = vector.extract_strided_slice %184 {offsets = [120, 0], sizes = [24, 32], strides = [1, 1]} : vector<192x32xf32> to vector<24x32xf32>
    %195 = arith.addf %193, %194 : vector<24x32xf32>
    %196 = vector.extract_strided_slice %184 {offsets = [144, 0], sizes = [24, 32], strides = [1, 1]} : vector<192x32xf32> to vector<24x32xf32>
    %197 = arith.addf %195, %196 : vector<24x32xf32>
    %198 = vector.extract_strided_slice %184 {offsets = [168, 0], sizes = [24, 32], strides = [1, 1]} : vector<192x32xf32> to vector<24x32xf32>
    %199 = arith.addf %197, %198 : vector<24x32xf32>
    %200 = arith.truncf %199 : vector<24x32xf32> to vector<24x32xbf16>
    %cst_52 = arith.constant dense<0.000000e+00> : vector<24x32xf32>
    %201 = tpu.matmul %200, %131, %cst_52 {dimension_numbers = #tpu.dot_dimension_numbers<[1], [0], [0], [1], [0, 0, 1, 1], [], []>} : vector<24x32xbf16>, vector<32x32xbf16>, vector<24x32xf32> -> vector<24x32xf32>
    %202 = vector.broadcast %135 : vector<1x32xf32> to vector<24x32xf32>
    %203 = arith.addf %201, %202 : vector<24x32xf32>
    %204 = arith.addf %125, %203 : vector<24x32xf32>
    %cst_53 = arith.constant dense<0.000000e+00> : vector<24xf32>
    %205 = vector.multi_reduction <add>, %204, %cst_53 [1] : vector<24x32xf32> to vector<24xf32>
    %206 = vector.shape_cast %205 : vector<24xf32> to vector<24x1xf32>
    %cst_54 = arith.constant 3.200000e+01 : f32
    %207 = vector.broadcast %cst_54 : f32 to vector<24x1xf32>
    %208 = arith.divf %206, %207 : vector<24x1xf32>
    %209 = vector.broadcast %208 : vector<24x1xf32> to vector<24x32xf32>
    %210 = arith.subf %204, %209 : vector<24x32xf32>
    %211 = arith.mulf %210, %210 : vector<24x32xf32>
    %cst_55 = arith.constant dense<0.000000e+00> : vector<24xf32>
    %212 = vector.multi_reduction <add>, %211, %cst_55 [1] : vector<24x32xf32> to vector<24xf32>
    %213 = vector.shape_cast %212 : vector<24xf32> to vector<24x1xf32>
    %cst_56 = arith.constant 3.200000e+01 : f32
    %214 = vector.broadcast %cst_56 : f32 to vector<24x1xf32>
    %215 = arith.divf %213, %214 : vector<24x1xf32>
    %216 = vector.broadcast %208 : vector<24x1xf32> to vector<24x32xf32>
    %217 = arith.subf %204, %216 : vector<24x32xf32>
    %cst_57 = arith.constant 9.99999974E-6 : f32
    %218 = vector.broadcast %cst_57 : f32 to vector<24x1xf32>
    %219 = arith.addf %215, %218 : vector<24x1xf32>
    %220 = math.rsqrt %219 : vector<24x1xf32>
    %221 = vector.broadcast %220 : vector<24x1xf32> to vector<24x32xf32>
    %222 = arith.mulf %217, %221 : vector<24x32xf32>
    %223 = arith.truncf %222 : vector<24x32xf32> to vector<24x32xbf16>
    %cst_58 = arith.constant dense<0.000000e+00> : vector<24x64xf32>
    %224 = tpu.matmul %223, %132, %cst_58 {dimension_numbers = #tpu.dot_dimension_numbers<[1], [0], [0], [1], [0, 0, 1, 1], [], []>} : vector<24x32xbf16>, vector<32x64xbf16>, vector<24x64xf32> -> vector<24x64xf32>
    %225 = vector.broadcast %136 : vector<1x64xf32> to vector<24x64xf32>
    %226 = arith.addf %224, %225 : vector<24x64xf32>
    %227 = arith.mulf %226, %226 : vector<24x64xf32>
    %228 = arith.mulf %226, %227 : vector<24x64xf32>
    %cst_59 = arith.constant 4.471500e-02 : f32
    %229 = vector.broadcast %cst_59 : f32 to vector<24x64xf32>
    %230 = arith.mulf %229, %228 : vector<24x64xf32>
    %231 = arith.addf %226, %230 : vector<24x64xf32>
    %cst_60 = arith.constant 0.797884583 : f32
    %232 = vector.broadcast %cst_60 : f32 to vector<24x64xf32>
    %233 = arith.mulf %232, %231 : vector<24x64xf32>
    %234 = math.tanh %233 : vector<24x64xf32>
    %cst_61 = arith.constant 1.000000e+00 : f32
    %235 = vector.broadcast %cst_61 : f32 to vector<24x64xf32>
    %236 = arith.addf %235, %234 : vector<24x64xf32>
    %cst_62 = arith.constant 5.000000e-01 : f32
    %237 = vector.broadcast %cst_62 : f32 to vector<24x64xf32>
    %238 = arith.mulf %237, %236 : vector<24x64xf32>
    %239 = arith.mulf %226, %238 : vector<24x64xf32>
    %240 = arith.truncf %239 : vector<24x64xf32> to vector<24x64xbf16>
    %cst_63 = arith.constant dense<0.000000e+00> : vector<24x32xf32>
    %241 = tpu.matmul %240, %133, %cst_63 {dimension_numbers = #tpu.dot_dimension_numbers<[1], [0], [0], [1], [0, 0, 1, 1], [], []>} : vector<24x64xbf16>, vector<64x32xbf16>, vector<24x32xf32> -> vector<24x32xf32>
    %242 = vector.broadcast %137 : vector<1x32xf32> to vector<24x32xf32>
    %243 = arith.addf %241, %242 : vector<24x32xf32>
    %244 = arith.addf %204, %243 : vector<24x32xf32>
    %245 = vector.extract_strided_slice %244 {offsets = [16, 0], sizes = [8, 32], strides = [1, 1]} : vector<24x32xf32> to vector<8x32xf32>
    %cst_64 = arith.constant dense<0.000000e+00> : vector<8x128xf32>
    %246 = tpu.matmul %245, %3, %cst_64 {dimension_numbers = #tpu.dot_dimension_numbers<[1], [0], [0], [1], [0, 0, 1, 1], [], []>} : vector<8x32xf32>, vector<32x128xf32>, vector<8x128xf32> -> vector<8x128xf32>
    %247 = vector.broadcast %4 : vector<1x128xf32> to vector<8x128xf32>
    %248 = arith.addf %246, %247 : vector<8x128xf32>
    %c0_65 = arith.constant 0 : index
    %c0_66 = arith.constant 0 : index
    %249 = vector.load %arg6[%c0_65, %c0_66] : memref<8x128xf32, #tpu.memory_space<vmem>>, vector<8x128xf32>
    tpu.vector_store %arg6[%c0_65, %c0_66], %248 {strides = array<i32>} : memref<8x128xf32, #tpu.memory_space<vmem>>, vector<8x128xf32>,
    return
  }
  func.func @transform_0(%arg0: i32) -> (i32, i32) {
    %c0_i32 = arith.constant 0 : i32
    %c0_i32_0 = arith.constant 0 : i32
    return %arg0, %c0_i32 : i32, i32
  }
  func.func @transform_1(%arg0: i32) -> (i32, i32, i32) {
    %c0_i32 = arith.constant 0 : i32
    %c0_i32_0 = arith.constant 0 : i32
    %c0_i32_1 = arith.constant 0 : i32
    return %arg0, %c0_i32, %c0_i32_0 : i32, i32, i32
  }
  func.func @transform_2(%arg0: i32) -> (i32, i32) {
    %c0_i32 = arith.constant 0 : i32
    %c0_i32_0 = arith.constant 0 : i32
    %c0_i32_1 = arith.constant 0 : i32
    return %c0_i32, %c0_i32_0 : i32, i32
  }
  func.func @transform_3(%arg0: i32) -> (i32, i32, i32) {
    %c0_i32 = arith.constant 0 : i32
    %c0_i32_0 = arith.constant 0 : i32
    %c0_i32_1 = arith.constant 0 : i32
    %c0_i32_2 = arith.constant 0 : i32
    return %c0_i32, %c0_i32_0, %c0_i32_1 : i32, i32, i32
  }
  func.func @transform_4(%arg0: i32) -> (i32, i32, i32) {
    %c0_i32 = arith.constant 0 : i32
    %c0_i32_0 = arith.constant 0 : i32
    %c0_i32_1 = arith.constant 0 : i32
    %c0_i32_2 = arith.constant 0 : i32
    return %c0_i32, %c0_i32_0, %c0_i32_1 : i32, i32, i32
  }
  func.func @transform_5(%arg0: i32) -> (i32, i32) {
    %c0_i32 = arith.constant 0 : i32
    %c0_i32_0 = arith.constant 0 : i32
    return %arg0, %c0_i32 : i32, i32
  }
}

</mosaic_0001>

<bundles_post_ra>
// kernel: tpu_custom_call.1
= control target key start
LH: loop header
LB: loop body
LE: loop exit
PB: predicated region body
PF: predicated region fallthrough
CT: control target
= control target key end

     0   :  { %10 = vsyncpa [#allocation3], 0  ;;  %s4144_s0 = inlined_call_operand.vmem [shape: f32[48,16], index: 0, kind: input, shape index: {}]   ;;  %s4145_s1 = inlined_call_operand.vmem [shape: f32[2,1,24], index: 1, kind: input, shape index: {}]   ;;  %s4146_s2 = inlined_call_operand.hbm [shape: f32[248,128], index: 2, kind: input, shape index: {}]   ;;  %s4147_s3 = inlined_call_operand.hbm [shape: bf16[2,160,128], index: 3, kind: input, shape index: {}]   ;;  %s4148_s4 = inlined_call_operand.vmem [shape: f32[2,8,128], index: 4, kind: input, shape index: {}]   ;;  %s4149_s5 = inlined_call_operand.hbm [shape: f32[16,128], index: 5, kind: output, shape index: {}]  }
   0x1   :  { %11 = vsyncpa [#allocation6], 0 }
   0x2   :  { %12 = vsyncpa [#allocation4], 0 }
   0x3   :  { %14 = vsyncpa [#allocation4 + $0x1], 0  ;;  %s3065_s18 = smov 0   ;;  %s3067_s19 = smov 0  }
   0x4   :  { %s3069_s20 = smov 0   ;;  %s3071_s21 = smov 0  }
   0x5 LB: > { %s3086_s22 = sadd.s32 4294967295, %s3024_s21   ;;  %s2374_s23 = sadd.s32 4294967294, %s3024_s21   ;;  %s3024_s21 = sphi %s3071_s21, %s4156_s21   ;;  %s3020_s20 = sphi %s3069_s20, %s4155_s20   ;;  %s3016_s19 = sphi %s3067_s19, %s4154_s19   ;;  %s3012_s18 = sphi %s3065_s18, %s4153_s18  }
   0x6   : > { %s3090_s24 = sadd.s32 1, %s3024_s21   ;;  %s142_s25 = sadd.s32 1, %s3020_s20 }
   0x7   : > { %s139_s26 = ssub.s32 %s3024_s21, %s3090_s24  ;;  %p152_p0 = scmp.ne.s32.totalorder %s3020_s20, %s3016_s19 }
   0x8   : > { %p140_p1 = scmp.eq.s32.totalorder %s139_s26, 0  ;;  %p153_p2 = scmp.eq.s32.totalorder %s3086_s22, 1 }
   0x9   : > { %p158_p3 = scmp.ne.s32.totalorder %s3016_s19, %s3012_s18  ;;  %p159_p4 = scmp.eq.s32.totalorder %s2374_s23, 1 }
   0xa   : > { %s3101_s27 = scalar_select %p140_p1, %s3020_s20, %s142_s25  }
   0xb   : > { %p3103_p5 = por %p153_p2, %p152_p0  ;;  %p3107_p6 = por %p159_p4, %p158_p3 }
   0xc   : > { %p2375_p7 = scmp.ge.s32.totalorder %s3024_s21, 1  ;;  %p166_p8 = scmp.lt.s32.totalorder %s3024_s21, 3 }
   0xd   : > { %p2582_p9 = scmp.eq.s32.totalorder %s3086_s22, 0  ;;  %s177_s8 = sshll.u32 %s4146_s2, 4  ;;  %s178_s8 = int_to_ptr.hbm [resolvable:$true] %s177_s8 }
   0xe   : > { %p3114_p10 = pnand %p2375_p7, %p166_p8  ;;  %s3026_s9 = smov [#allocation2]  }
   0xf   : > { %s179_s10 = sshll.u32 %s3026_s9, 4  ;;  %s191_s13 = sshll.u32 %s4147_s3, 4  ;;  %s180_s10 = int_to_ptr.vmem [resolvable:$true] %s179_s10  ;;  %s192_s13 = int_to_ptr.hbm [resolvable:$true] %s191_s13 }
  0x10   : > { %p2571_p11 = pneg %p3114_p10  ;;  %s3027_s14 = smov 128  }
  0x11   : > { %s3028_s15 = smov 8   ;;  %s3029_s16 = smov [#allocation5]  }
  0x12   : > { %p2572_p12 = pnand %p2582_p9, %p2571_p11  ;;  %s193_s17 = sshll.u32 %s3029_s16, 4  ;;  %s194_s17 = int_to_ptr.vmem [resolvable:$true] %s193_s17 }
  0x13   : > { %s3030_s23 = smov 64   ;;  %s3031_s25 = smov 4  }
  0x14   : > { %2574 = dma.hbm_to_vmem [thread:$0]  (!%p2572_p12), %s178_s8, 3968, %s180_s10, [#allocation3], %s3027_s14, %s3027_s14, %s3028_s15  }
  0x15   : > { %2577 = dma.hbm_to_vmem [thread:$0]  (!%p2572_p12), %s192_s13, 2560, %s194_s17, [#allocation6], %s3030_s23, %s3030_s23, %s3031_s25  }
  0x16   : > { %227 = sbr.rel (%p3114_p10) target bundleno = 4558 (0x11ce), region = 40 }
  0x1b   : > { %2999 = dma.done.wait (%p2582_p9), [#allocation3], 3968  }
  0x1c   : > { %3001 = vsyncadd (%p2582_p9), [#allocation3], 4294963328 }
  0x1d   : > { %3003 = dma.done.wait (%p2582_p9), [#allocation6], 2560  }
  0x1e   : > { %3005 = vsyncadd (%p2582_p9), [#allocation6], 4294964736  ;;  %s264_s26 = smul.u32 3, %s3086_s22  ;;  %v279_v0 = vld [vmem:[#allocation2 + $0x8] sm:$0xff]  ;;  %v278_v1 = vld [vmem:[#allocation2] sm:$0xff]  ;;  %vm309_vm0 = vcmask 130048  }
  0x1f   : > { %333 = vmatpush.msra.mxu0 %v279_v0  ;;  %2558 = vmatpush.msra.mxu3 %v279_v0  ;;  %vm366_vm1 = vcmask 261120   ;;  %v3032_v11 = vmov 32.0   ;;  %v2538_v33 = vld [vmem:[#allocation5 + $0x8] sm:$0xff]  ;;  %v2537_v34 = vld [vmem:[#allocation5] sm:$0xff]  ;;  %s3033_s11 = smov 96   ;;  %p270_p0 = scmp.lt.s32.totalorder %s3086_s22, 1 }
  0x20   : > { %p265_p13 = scmp.lt.s32.totalorder %s264_s26, 5  ;;  %2557 = vmatpush.msra.mxu1 %v279_v0  ;;  %2630 = vrcp.f32 %v3032_v11  ;;  %467 = vmatpush.bf16.msra.mxu2 %v2538_v33  ;;  %vm637_vm12 = vcmask 195584   ;;  %s3034_s16 = smov 64   ;;  %vm955_vm13 = vcmask 1043456  }
  0x21   : > { %334 = vmatpush.msra.mxu0 %v278_v1  ;;  %2560 = vmatpush.msra.mxu3 %v278_v1  ;;  %s271_s12 = scalar_select %p270_p0, %s3086_s22, 1 }
  0x22   : > { %s4158_s26 = smov (!%p265_p13, %s264_s26), 5  ;;  %2559 = vmatpush.msra.mxu1 %v278_v1  ;;  %s261_s7 = sand.u32 1, %s3016_s19  }
  0x23   : > { %s2383_s6 = sshll.u32 %s4158_s26, 3  ;;  %s3270_s15 = scalar_lea.vmem %s4145_s1, %s271_s12 }
  0x24   : > { %s268_s8 = scalar_lea.vmem %s4144_s0, %s2383_s6  ;;  %468 = vmatpush.bf16.msra.mxu2 %v2537_v34  ;;  %v3213_v34 = vld [vmem:[#allocation2 + $0x50] sm:$0xff]  ;;  %s2534_s9 = sshll.u32 %s3086_s22, 3 }
  0x25   : > { %v274_v2 = vld [vmem:[%s268_s8] sm:$0xff]  ;;  %v276_v3 = vld [vmem:[%s268_s8 + $0x10] sm:$0xff]  ;;  %v275_v4 = vld [vmem:[%s268_s8 + $0x8] sm:$0xff]  ;;  %s2382_s8 = sshll.u32 %s261_s7, 3  ;;  %s2279_s12 = scalar_lea.hbm %s4149_s5, %s2534_s9 }
  0x26   : > { %2384 = vmatmul.msk.f32.vlgmr.msra.gmra.mxu0 %vm309_vm0, %v274_v2  ;;  %2386 = vmatmul.msk.f32.vlgmr.msra.gmra.mxu3 %vm309_vm0, %v276_v3  ;;  %v2631_v12 = vpop.eup %2630  ;;  %s263_s13 = scalar_lea.vmem [#allocation7], %s2382_s8  ;;  %s2974_s26 = scalar_lea.hbm %s4149_s5, 16 }
  0x27   : > { %2385 = vmatmul.msk.f32.vlgmr.msra.gmra.mxu1 %vm309_vm0, %v275_v4  ;;  %v377_v13 = vmul.f32 32.0, %v2631_v12  ;;  %vm381_vm2 = vweird.f32 %v2631_v12  ;;  %s2281_s14 = sshll.u32 %s263_s13, 4  ;;  %s2282_s14 = int_to_ptr.vmem [resolvable:$true] %s2281_s14 }
  0x29   : > { %v378_v14 = vsub.f32 1.0, %v377_v13  ;;  %v3173_v13 = vld [vmem:[#allocation2 + $0x38] sm:$0xff] }
  0x2b   : > { %v379_v15 = vmul.f32 %v2631_v12, %v378_v14  ;;  %v3175_v14 = vld [vmem:[#allocation2 + $0x68] sm:$0xff] }
  0x2d   : > { %v380_v16 = vadd.f32 %v2631_v12, %v379_v15 }
  0x2f   : > { %v3154_v17 = vsel %vm381_vm2, %v2631_v12, %v380_v16  ;;  %v3177_v16 = vld [vmem:[#allocation2 + $0x40] sm:$0xff] }
  0xa3   : > { %v3142_v5 = vpop.f32.mrf.mxu0 }
  0xa4   : > { %v367_v6 = vsel %vm366_vm1, %v3142_v5, 0.0  ;;  %v3146_v7 = vpop.f32.mrf.mxu1 }
  0xa5   : > { %368 = vadd.xlane.f32.xlu0 %v367_v6  ;;  %v370_v10 = vsel %vm366_vm1, %v3146_v7, 0.0 }
  0xa9   : > { %v3148_v8 = vpop.f32.mrf.mxu3 }
  0xaa   : > { %v373_v9 = vsel %vm366_vm1, %v3148_v8, 0.0 }
  0xab   : > { %374 = vadd.xlane.f32.xlu1 %v373_v9  ;;  %v365_v9 = vld [vmem:[%s4148_s4] sm:$0xff] }
  0xac   : > { %v442_v11 = vperm.slane %v365_v9, 0 }
  0xad   : > { %371 = vadd.xlane.f32.xlu0 %v370_v10 }
 0x118   : > { %v369_v18 = vpop.xlane.xlu0 %368 }
 0x119   : > { %v383_v19 = vmul.f32 %v3154_v17, %v369_v18  ;;  %v3179_v18 = vld [vmem:[#allocation2 + $0x70] sm:$0xff] }
 0x11b   : > { %v386_v20 = vsub.f32 %v3142_v5, %v383_v19  ;;  %v3181_v19 = vld [vmem:[#allocation2 + $0x98] sm:$0xff] }
 0x11d   : > { %v389_v21 = vmul.f32 %v386_v20, %v386_v20 }
 0x11e   : > { %v375_v23 = vpop.xlane.xlu1 %374 }
 0x11f   : > { %v392_v22 = vsel %vm366_vm1, %v389_v21, 0.0  ;;  %v385_v26 = vmul.f32 %v3154_v17, %v375_v23  ;;  %v3183_v21 = vld [vmem:[#allocation2 + $0xa0] sm:$0xff]  ;;  %v304_v23 = vld [vmem:[#allocation2 + $0xd0] sm:$0xff] }
 0x120   : > { %393 = vadd.xlane.f32.xlu1 %v392_v22  ;;  %v372_v24 = vpop.xlane.xlu0 %371  ;;  %v303_v22 = vld [vmem:[#allocation2 + $0xc8] sm:$0xff] }
 0x121   : > { %v384_v25 = vmul.f32 %v3154_v17, %v372_v24  ;;  %v388_v29 = vsub.f32 %v3148_v8, %v385_v26 }
 0x123   : > { %v387_v27 = vsub.f32 %v3146_v7, %v384_v25  ;;  %v391_v31 = vmul.f32 %v388_v29, %v388_v29 }
 0x125   : > { %v390_v28 = vmul.f32 %v387_v27, %v387_v27  ;;  %v398_v32 = vsel %vm366_vm1, %v391_v31, 0.0 }
 0x127   : > { %v395_v30 = vsel %vm366_vm1, %v390_v28, 0.0 }
 0x128   : > { %396 = vadd.xlane.f32.xlu2 %v395_v30 }
 0x130   : > { %399 = vadd.xlane.f32.xlu2 %v398_v32 }
 0x193   : > { %v394_v35 = vpop.xlane.xlu1 %393 }
 0x194   : > { %v401_v36 = vmul.f32 %v394_v35, %v3154_v17 }
 0x196   : > { %v404_v37 = vadd.f32 1e-05, %v401_v36  ;;  %v3217_v36 = vld [vmem:[#allocation2 + $0x80] sm:$0xff] }
 0x198   : > { %2632 = vrsqrt.f32 %v404_v37  ;;  %vm413_vm4 = vweird.f32 %v404_v37 }
 0x19b   : > { %v397_v38 = vpop.xlane.xlu2 %396 }
 0x19c   : > { %v402_v39 = vmul.f32 %v397_v38, %v3154_v17  ;;  %v3219_v38 = vld [vmem:[#allocation2 + $0x58] sm:$0xff] }
 0x19e   : > { %v2633_v40 = vpop.eup %2632  ;;  %v405_v41 = vadd.f32 1e-05, %v402_v39  ;;  %v3221_v39 = vld [vmem:[#allocation2 + $0x88] sm:$0xff] }
 0x19f   : > { %v408_v42 = vmul.f32 %v2633_v40, %v404_v37  ;;  %vm414_vm3 = vweird.f32 %v2633_v40  ;;  %v300_v37 = vld [vmem:[#allocation2 + $0xb0] sm:$0xff] }
 0x1a0   : > { %2634 = vrsqrt.f32 %v405_v41  ;;  %vm415_vm6 = vmor %vm413_vm4, %vm414_vm3  ;;  %vm423_vm7 = vweird.f32 %v405_v41 }
 0x1a1   : > { %v409_v43 = vmul.f32 %v2633_v40, %v408_v42  ;;  %v306_v42 = vld [vmem:[#allocation2 + $0xe0] sm:$0xff] }
 0x1a3   : > { %v410_v44 = vmul.f32 0.5, %v409_v43  ;;  %v400_v45 = vpop.xlane.xlu2 %399  ;;  %v3227_v43 = vld [vmem:[#allocation2 + $0x48] sm:$0xff] }
 0x1a4   : > { %v403_v46 = vmul.f32 %v400_v45, %v3154_v17  ;;  %v307_v45 = vld [vmem:[#allocation2 + $0xe8] sm:$0xff] }
 0x1a5   : > { %v411_v49 = vsub.f32 1.5, %v410_v44  ;;  %v3229_v44 = vld [vmem:[#allocation2 + $0xb8] sm:$0xff] }
 0x1a6   : > { %v2635_v47 = vpop.eup %2634  ;;  %v406_v48 = vadd.f32 1e-05, %v403_v46 }
 0x1a7   : > { %v418_v50 = vmul.f32 %v2635_v47, %v405_v41  ;;  %v412_v52 = vmul.f32 %v2633_v40, %v411_v49  ;;  %vm424_vm5 = vweird.f32 %v2635_v47  ;;  %v3234_v49 = vld [vmem:[#allocation2 + $0x78] sm:$0xff] }
 0x1a8   : > { %2636 = vrsqrt.f32 %v406_v48  ;;  %vm425_vm8 = vmor %vm423_vm7, %vm424_vm5  ;;  %vm433_vm10 = vweird.f32 %v406_v48 }
 0x1a9   : > { %v419_v51 = vmul.f32 %v2635_v47, %v418_v50  ;;  %v416_v58 = vsel %vm415_vm6, %v2633_v40, %v412_v52  ;;  %v3236_v50 = vld [vmem:[#allocation2 + $0x90] sm:$0xff] }
 0x1aa   : > { %v437_v61 = vmul.f32 %v416_v58, %v386_v20 }
 0x1ab   : > { %v420_v53 = vmul.f32 0.5, %v419_v51 }
 0x1ad   : > { %v421_v54 = vsub.f32 1.5, %v420_v53  ;;  %v3239_v53 = vld [vmem:[#allocation2 + $0xa8] sm:$0xff] }
 0x1ae   : > { %v2637_v55 = vpop.eup %2636 }
 0x1af   : > { %v422_v56 = vmul.f32 %v2635_v47, %v421_v54  ;;  %v428_v57 = vmul.f32 %v2637_v55, %v406_v48  ;;  %vm434_vm9 = vweird.f32 %v2637_v55  ;;  %v3232_v48 = vld [vmem:[#allocation2 + $0x60] sm:$0xff] }
 0x1b0   : > { %vm435_vm11 = vmor %vm433_vm10, %vm434_vm9 }
 0x1b1   : > { %v429_v59 = vmul.f32 %v2637_v55, %v428_v57  ;;  %v426_v60 = vsel %vm425_vm8, %v2635_v47, %v422_v56  ;;  %v305_v56 = vld [vmem:[#allocation2 + $0xd8] sm:$0xff]  ;;  %vm1274_vm8 = vcmask 523264  }
 0x1b2   : > { %v438_v62 = vmul.f32 %v426_v60, %v387_v27 }
 0x1b3   : > { %v430_v63 = vmul.f32 0.5, %v429_v59 }
 0x1b4   : > { %v440_v0 = vpack.c.bf16 %v438_v62, %v437_v61  ;;  %v3246_v61 = vld [vmem:[#allocation2 + $0xf0] sm:$0xff] }
 0x1b5   : > { %v431_v1 = vsub.f32 1.5, %v430_v63 }
 0x1b6   : > { %2395 = vmatmul.msk.bf16.vlgmr.msra.gmra.mxu2 %vm366_vm1, %v440_v0 }
 0x1b7   : > { %v432_v2 = vmul.f32 %v2637_v55, %v431_v1 }
 0x1b9   : > { %v436_v3 = vsel %vm435_vm11, %v2637_v55, %v432_v2  ;;  %v302_v55 = vld [vmem:[#allocation2 + $0xc0] sm:$0xff] }
 0x1ba   : > { %v439_v4 = vmul.f32 %v436_v3, %v388_v29 }
 0x1bc   : > { %v441_v6 = vpack.c.bf16 %v439_v4, %v439_v4 }
 0x1c6   : > { %2396 = vmatmul.msk.bf16.gmra.mxu2 %vm366_vm1, %v441_v6 }
 0x239   : > { %v470_v10 = vpop.f32.mrf.mxu2 }
 0x23a   : > { %v471_v12 = vadd.f32 %v470_v10, %v442_v11 }
 0x23c   : > { %v3186_v24 = vmul.f32 %v471_v12, %v3173_v13  ;;  %v3194_v27 = vmul.f32 %v471_v12, %v3175_v14  ;;  %v3200_v29 = vmul.f32 %v471_v12, %v3181_v19  ;;  %v3205_v31 = vmul.f32 %v471_v12, %v303_v22 }
 0x23d   : > { %v482_v47 = vmul.f32 %v471_v12, %v3213_v34  ;;  %v488_v52 = vmul.f32 %v471_v12, %v3217_v36  ;;  %v494_v54 = vmul.f32 %v471_v12, %v300_v37  ;;  %v3241_v57 = vmul.f32 %v471_v12, %v306_v42 }
 0x241   : > { %v472_v15 = vpop.f32.mrf.mxu2 }
 0x242   : > { %v473_v20 = vadd.f32 %v472_v15, %v442_v11 }
 0x244   : > { %v3188_v25 = vpack.c.bf16 %v473_v20, %v471_v12  ;;  %v3191_v26 = vmul.f32 %v473_v20, %v3177_v16  ;;  %v3197_v28 = vmul.f32 %v473_v20, %v3179_v18  ;;  %v3203_v30 = vmul.f32 %v473_v20, %v3183_v21 }
 0x245   : > { %v3207_v32 = vmul.f32 %v473_v20, %v304_v23  ;;  %v483_v58 = vmul.f32 %v473_v20, %v3219_v38  ;;  %v489_v59 = vmul.f32 %v473_v20, %v3221_v39  ;;  %v495_v60 = vmul.f32 %v473_v20, %v3229_v44 }
 0x246   : > { %522 = vrot.lane.b32.xlu1 %v3188_v25, %s3033_s11  ;;  %v503_v33 = vpack.c.bf16 %v3191_v26, %v3186_v24  ;;  %v506_v35 = vpack.c.bf16 %v3197_v28, %v3194_v27  ;;  %v509_v40 = vpack.c.bf16 %v3203_v30, %v3200_v29  ;;  %v3248_v62 = vmul.f32 %v473_v20, %v307_v45 }
 0x247   : > { %v512_v41 = vpack.c.bf16 %v3207_v32, %v3205_v31 }
 0x249   : > { %v475_v46 = vpop.f32.mrf.mxu2 }
 0x24a   : > { %v476_v51 = vadd.f32 %v475_v46, %v442_v11 }
 0x24c   : > { %v3250_v63 = vpack.c.bf16 %v476_v51, %v476_v51  ;;  %v481_v0 = vmul.f32 %v476_v51, %v3227_v43  ;;  %v484_v1 = vmul.f32 %v476_v51, %v3232_v48  ;;  %v487_v2 = vmul.f32 %v476_v51, %v3234_v49 }
 0x24d   : > { %v490_v3 = vmul.f32 %v476_v51, %v3236_v50  ;;  %v493_v4 = vmul.f32 %v476_v51, %v3239_v53  ;;  %v496_v6 = vmul.f32 %v476_v51, %v302_v55  ;;  %v499_v9 = vmul.f32 %v476_v51, %v305_v56 }
 0x24e   : > { %524 = vrot.lane.b32.xlu0 %v3250_v63, %s3033_s11  ;;  %v504_v10 = vpack.c.bf16 %v482_v47, %v481_v0  ;;  %v505_v11 = vpack.c.bf16 %v484_v1, %v483_v58  ;;  %v507_v12 = vpack.c.bf16 %v488_v52, %v487_v2  ;;  %v502_v15 = vmul.f32 %v476_v51, %v3246_v61 }
 0x24f   : > { %v508_v20 = vpack.c.bf16 %v490_v3, %v489_v59  ;;  %v510_v22 = vpack.c.bf16 %v494_v54, %v493_v4  ;;  %v511_v23 = vpack.c.bf16 %v496_v6, %v495_v60  ;;  %v513_v24 = vpack.c.bf16 %v3241_v57, %v499_v9 }
 0x250   : > { %v514_v26 = vpack.c.bf16 %v502_v15, %v3248_v62 }
 0x251   : > { %v477_v27 = vpop.f32.mrf.mxu2 }
 0x2b8   : > { %v523_v30 = vpop.permute.xlu1 %522 }
 0x2b9   : > { %v563_v37 = vsel %vm366_vm1, %v523_v30, 0 }
 0x2c0   : > { %v525_v28 = vpop.permute.xlu0 %524 }
 0x2c1   : > { %v566_v29 = vsel %vm366_vm1, %v525_v28, 0 }
 0x2c2   : > { %574 = vmatpush.bf16.xpose.msrb.mxu2 %v566_v29 }
 0x2ca   : > { %575 = vmatpush.bf16.xpose.msrb.mxu2 %v563_v37 }
 0x2d1   : > { %2397 = vmatmul.msk.bf16.vlgmr.msrb.gmra.mxu2 %vm366_vm1, %v503_v33  ;;  %v3281_v33 = vld [vmem:[%s3270_s15] ss:$0 sm:$0xff] }
 0x2e1   : > { %2398 = vmatmul.msk.bf16.gmra.mxu2 %vm366_vm1, %v504_v10 }
 0x2f1   : > { %2399 = vmatmul.msk.bf16.gmra.mxu2 %vm366_vm1, %v505_v11 }
 0x301   : > { %2400 = vmatmul.msk.bf16.gmra.mxu2 %vm366_vm1, %v506_v35 }
 0x311   : > { %2401 = vmatmul.msk.bf16.gmra.mxu2 %vm366_vm1, %v507_v12 }
 0x321   : > { %2402 = vmatmul.msk.bf16.gmra.mxu2 %vm366_vm1, %v508_v20 }
 0x331   : > { %2403 = vmatmul.msk.bf16.gmra.mxu2 %vm366_vm1, %v509_v40 }
 0x341   : > { %2404 = vmatmul.msk.bf16.gmra.mxu2 %vm366_vm1, %v510_v22 }
 0x351   : > { %2405 = vmatmul.msk.bf16.gmra.mxu2 %vm366_vm1, %v511_v23 }
 0x354   : > { %v577_v42 = vpop.f32.mrf.mxu2 }
 0x355   : > { %v578_v45 = vadd.f32 %v3281_v33, %v577_v42 }
 0x357   : > { %v638_v46 = vsel %vm637_vm12, %v578_v45, -inf }
 0x358   : > { %639 = vmax.xlane.f32.xlu2 %v638_v46 }
 0x35c   : > { %v579_v35 = vpop.f32.mrf.mxu2 }
 0x35d   : > { %v580_v47 = vadd.f32 %v3281_v33, %v579_v35 }
 0x35f   : > { %v641_v51 = vsel %vm637_vm12, %v580_v47, -inf }
 0x360   : > { %642 = vmax.xlane.f32.xlu2 %v641_v51 }
 0x361   : > { %2406 = vmatmul.msk.bf16.gmra.mxu2 %vm366_vm1, %v512_v41 }
 0x364   : > { %v582_v40 = vpop.f32.mrf.mxu2 }
 0x365   : > { %v583_v52 = vadd.f32 %v3281_v33, %v582_v40 }
 0x367   : > { %v644_v54 = vsel %vm637_vm12, %v583_v52, -inf }
 0x368   : > { %645 = vmax.xlane.f32.xlu2 %v644_v54 }
 0x36c   : > { %v584_v55 = vpop.f32.mrf.mxu2 }
 0x36d   : > { %v585_v56 = vadd.f32 %v3281_v33, %v584_v55 }
 0x36f   : > { %v647_v57 = vsel %vm637_vm12, %v585_v56, -inf }
 0x370   : > { %648 = vmax.xlane.f32.xlu0 %v647_v57 }
 0x371   : > { %2407 = vmatmul.msk.bf16.gmra.mxu2 %vm366_vm1, %v513_v24 }
 0x374   : > { %v587_v58 = vpop.f32.mrf.mxu2 }
 0x375   : > { %v588_v59 = vadd.f32 %v3281_v33, %v587_v58 }
 0x377   : > { %v650_v31 = vsel %vm637_vm12, %v588_v59, -inf }
 0x378   : > { %651 = vmax.xlane.f32.xlu2 %v650_v31 }
 0x37c   : > { %v589_v32 = vpop.f32.mrf.mxu2 }
 0x37d   : > { %v3299_v41 = vadd.f32 %v3281_v33, %v589_v32 }
 0x37f   : > { %v653_v60 = vsel %vm637_vm12, %v3299_v41, -inf }
 0x380   : > { %654 = vmax.xlane.f32.xlu1 %v653_v60 }
 0x381   : > { %2408 = vmatmul.msk.bf16.gmra.mxu2 %vm366_vm1, %v514_v26 }
 0x384   : > { %v592_v62 = vpop.f32.mrf.mxu2  ;;  %916 = vrot.lane.b32.xlu0 %v3250_v63, %s3034_s16 }
 0x385   : > { %v3307_v0 = vadd.f32 %v3281_v33, %v592_v62 }
 0x387   : > { %v656_v1 = vsel %vm637_vm12, %v3307_v0, -inf }
 0x388   : > { %657 = vmax.xlane.f32.xlu2 %v656_v1 }
 0x38c   : > { %v594_v2 = vpop.f32.mrf.mxu2 }
 0x38d   : > { %v3312_v3 = vadd.f32 %v3281_v33, %v594_v2 }
 0x38f   : > { %v659_v4 = vsel %vm637_vm12, %v3312_v3, -inf }
 0x390   : > { %660 = vmax.xlane.f32.xlu2 %v659_v4 }
 0x394   : > { %v597_v6 = vpop.f32.mrf.mxu2 }
 0x395   : > { %v3317_v9 = vadd.f32 %v3281_v33, %v597_v6 }
 0x397   : > { %v662_v63 = vsel %vm637_vm12, %v3317_v9, -inf }
 0x398   : > { %663 = vmax.xlane.f32.xlu1 %v662_v63 }
 0x39c   : > { %v599_v10 = vpop.f32.mrf.mxu2 }
 0x39d   : > { %v3322_v11 = vadd.f32 %v3281_v33, %v599_v10 }
 0x39f   : > { %v665_v12 = vsel %vm637_vm12, %v3322_v11, -inf }
 0x3a0   : > { %666 = vmax.xlane.f32.xlu1 %v665_v12 }
 0x3a4   : > { %v3326_v15 = vpop.f32.mrf.mxu2 }
 0x3ac   : > { %v604_v20 = vpop.f32.mrf.mxu2 }
 0x3ad   : > { %v3329_v22 = vadd.f32 %v3281_v33, %v604_v20 }
 0x3af   : > { %v671_v23 = vsel %vm637_vm12, %v3329_v22, -inf }
 0x3b0   : > { %672 = vmax.xlane.f32.xlu1 %v671_v23 }
 0x3b4   : > { %v607_v31 = vpop.f32.mrf.mxu2 }
 0x3cb   : > { %v640_v24 = vpop.xlane.xlu2 %639 }
 0x3cc   : > { %v710_v26 = vsub.f32 %v578_v45, %v640_v24 }
 0x3ce   : > { %v734_v27 = vmul.f32 1.442695, %v710_v26 }
 0x3d0   : > { %2638 = vpow2.f32 %v734_v27 }
 0x3d3   : > { %v643_v28 = vpop.xlane.xlu2 %642 }
 0x3d4   : > { %v711_v29 = vsub.f32 %v580_v47, %v643_v28  ;;  %v3363_v28 = vadd.f32 %v3281_v33, %v607_v31 }
 0x3d6   : > { %v3333_v30 = vpop.eup %2638  ;;  %v736_v37 = vmul.f32 1.442695, %v711_v29 }
 0x3d7   : > { %v782_v42 = vsel %vm637_vm12, %v3333_v30, 0.0 }
 0x3d8   : > { %2640 = vpow2.f32 %v736_v37  ;;  %783 = vadd.xlane.f32.xlu2 %v782_v42 }
 0x3db   : > { %v646_v46 = vpop.xlane.xlu2 %645 }
 0x3dc   : > { %v712_v35 = vsub.f32 %v583_v52, %v646_v46 }
 0x3de   : > { %v3337_v51 = vpop.eup %2640  ;;  %v738_v40 = vmul.f32 1.442695, %v712_v35 }
 0x3df   : > { %v785_v45 = vsel %vm637_vm12, %v3337_v51, 0.0 }
 0x3e0   : > { %2642 = vpow2.f32 %v738_v40  ;;  %786 = vadd.xlane.f32.xlu2 %v785_v45 }
 0x3e3   : > { %v649_v54 = vpop.xlane.xlu0 %648 }
 0x3e4   : > { %v713_v47 = vsub.f32 %v585_v56, %v649_v54  ;;  %v609_v56 = vpop.f32.mrf.mxu2 }
 0x3e5   : > { %v3375_v35 = vadd.f32 %v3281_v33, %v609_v56 }
 0x3e6   : > { %v3341_v55 = vpop.eup %2642  ;;  %v740_v57 = vmul.f32 1.442695, %v713_v47 }
 0x3e7   : > { %v788_v58 = vsel %vm637_vm12, %v3341_v55, 0.0  ;;  %v677_v54 = vsel %vm637_vm12, %v3375_v35, -inf }
 0x3e8   : > { %2644 = vpow2.f32 %v740_v57  ;;  %789 = vadd.xlane.f32.xlu0 %v788_v58 }
 0x3eb   : > { %v652_v52 = vpop.xlane.xlu2 %651 }
 0x3ec   : > { %v714_v32 = vsub.f32 %v588_v59, %v652_v52  ;;  %v612_v23 = vpop.f32.mrf.mxu2 }
 0x3ed   : > { %v3385_v58 = vadd.f32 %v3281_v33, %v612_v23 }
 0x3ee   : > { %v3345_v60 = vpop.eup %2644  ;;  %v742_v62 = vmul.f32 1.442695, %v714_v32 }
 0x3ef   : > { %v791_v1 = vsel %vm637_vm12, %v3345_v60, 0.0  ;;  %v680_v56 = vsel %vm637_vm12, %v3385_v58, -inf }
 0x3f0   : > { %2646 = vpow2.f32 %v742_v62  ;;  %792 = vadd.xlane.f32.xlu1 %v791_v1 }
 0x3f3   : > { %v655_v2 = vpop.xlane.xlu1 %654 }
 0x3f4   : > { %v715_v4 = vsub.f32 %v3299_v41, %v655_v2  ;;  %v614_v37 = vpop.f32.mrf.mxu2 }
 0x3f5   : > { %v3372_v42 = vadd.f32 %v3281_v33, %v614_v37 }
 0x3f6   : > { %v3350_v6 = vpop.eup %2646  ;;  %v744_v63 = vmul.f32 1.442695, %v715_v4  ;;  %v917_v10 = vpop.permute.xlu0 %916  ;;  %v3395_v4 = vadd.f32 %v3281_v33, %v3326_v15 }
 0x3f7   : > { %v957_v12 = vsel %vm955_vm13, %v917_v10, 0  ;;  %v794_v59 = vsel %vm637_vm12, %v3350_v6, 0.0  ;;  %v683_v40 = vsel %vm637_vm12, %v3372_v42, -inf }
 0x3f8   : > { %2648 = vpow2.f32 %v744_v63  ;;  %965 = vmatpush.bf16.msrb.mxu3 %v957_v12  ;;  %914 = vrot.lane.b32.xlu2 %v3188_v25, %s3034_s16  ;;  %v668_v10 = vsel %vm637_vm12, %v3395_v4, -inf }
 0x3f9   : > { %795 = vadd.xlane.f32.xlu1 %v794_v59 }
 0x3fb   : > { %v658_v20 = vpop.xlane.xlu2 %657 }
 0x3fc   : > { %v716_v41 = vsub.f32 %v3307_v0, %v658_v20  ;;  %v674_v0 = vsel %vm637_vm12, %v3363_v28, -inf  ;;  %v617_v45 = vpop.f32.mrf.mxu2 }
 0x3fd   : > { %v3382_v47 = vadd.f32 %v3281_v33, %v617_v45 }
 0x3fe   : > { %v3358_v24 = vpop.eup %2648  ;;  %v746_v26 = vmul.f32 1.442695, %v716_v41 }
 0x3ff   : > { %v797_v27 = vsel %vm637_vm12, %v3358_v24, 0.0  ;;  %v686_v1 = vsel %vm637_vm12, %v3382_v47, -inf }
 0x400   : > { %2650 = vpow2.f32 %v746_v26 }
 0x401   : > { %798 = vadd.xlane.f32.xlu1 %v797_v27 }
 0x403   : > { %v661_v31 = vpop.xlane.xlu2 %660 }
 0x404   : > { %v717_v62 = vsub.f32 %v3312_v3, %v661_v31  ;;  %v619_v27 = vpop.f32.mrf.mxu2 }
 0x406   : > { %v3365_v29 = vpop.eup %2650  ;;  %v748_v2 = vmul.f32 1.442695, %v717_v62 }
 0x407   : > { %v800_v25 = vsel %vm637_vm12, %v3365_v29, 0.0 }
 0x408   : > { %801 = vadd.xlane.f32.xlu0 %v800_v25  ;;  %v3418_v25 = vadd.f32 %v3281_v33, %v619_v27 }
 0x409   : > { %675 = vmax.xlane.f32.xlu1 %v674_v0 }
 0x40a   : > { %v689_v0 = vsel %vm637_vm12, %v3418_v25, -inf }
 0x40b   : > { %v664_v46 = vpop.xlane.xlu1 %663 }
 0x410   : > { %684 = vmax.xlane.f32.xlu0 %v683_v40 }
 0x411   : > { %678 = vmax.xlane.f32.xlu1 %v677_v54 }
 0x413   : > { %v667_v57 = vpop.xlane.xlu1 %666 }
 0x414   : > { %v719_v52 = vsub.f32 %v3322_v11, %v667_v57  ;;  %v718_v11 = vsub.f32 %v3317_v9, %v664_v46  ;;  %v622_v46 = vpop.f32.mrf.mxu2 }
 0x415   : > { %v3423_v40 = vadd.f32 %v3281_v33, %v622_v46 }
 0x416   : > { %v752_v32 = vmul.f32 1.442695, %v719_v52  ;;  %v750_v12 = vmul.f32 1.442695, %v718_v11 }
 0x417   : > { %v692_v45 = vsel %vm637_vm12, %v3423_v40, -inf }
 0x418   : > { %2652 = vpow2.f32 %v752_v32  ;;  %687 = vmax.xlane.f32.xlu0 %v686_v1 }
 0x419   : > { %681 = vmax.xlane.f32.xlu1 %v680_v56  ;;  %2654 = vpow2.f32 %v748_v2 }
 0x41a   : > { %2656 = vpow2.f32 %v750_v12 }
 0x41e   : > { %v3397_v63 = vpop.eup %2652 }
 0x41f   : > { %v809_v3 = vsel %vm637_vm12, %v3397_v63, 0.0  ;;  %v3405_v23 = vpop.eup %2654 }
 0x420   : > { %v803_v9 = vsel %vm637_vm12, %v3405_v23, 0.0  ;;  %v3409_v41 = vpop.eup %2656 }
 0x421   : > { %810 = vadd.xlane.f32.xlu1 %v809_v3  ;;  %669 = vmax.xlane.f32.xlu2 %v668_v10 }
 0x423   : > { %v673_v59 = vpop.xlane.xlu1 %672 }
 0x424   : > { %v721_v20 = vsub.f32 %v3329_v22, %v673_v59  ;;  %v806_v22 = vsel %vm637_vm12, %v3409_v41, 0.0 }
 0x426   : > { %v756_v15 = vmul.f32 1.442695, %v721_v20 }
 0x428   : > { %2658 = vpow2.f32 %v756_v15 }
 0x429   : > { %804 = vadd.xlane.f32.xlu2 %v803_v9 }
 0x42e   : > { %v3411_v26 = vpop.eup %2658 }
 0x42f   : > { %v815_v37 = vsel %vm637_vm12, %v3411_v26, 0.0 }
 0x430   : > { %816 = vadd.xlane.f32.xlu0 %v815_v37 }
 0x431   : > { %807 = vadd.xlane.f32.xlu2 %v806_v22 }
 0x439   : > { %690 = vmax.xlane.f32.xlu2 %v689_v0 }
 0x441   : > { %693 = vmax.xlane.f32.xlu2 %v692_v45 }
 0x44b   : > { %v784_v54 = vpop.xlane.xlu2 %783 }
 0x44c   : > { %2660 = vrcp.f32 %v784_v54 }
 0x452   : > { %v2661_v31 = vpop.eup %2660 }
 0x453   : > { %v787_v57 = vpop.xlane.xlu2 %786  ;;  %v878_v32 = vmul.f32 %v2661_v31, %v3333_v30  ;;  %v624_v30 = vpop.f32.mrf.mxu2 }
 0x454   : > { %2662 = vrcp.f32 %v787_v57 }
 0x45a   : > { %v2663_v52 = vpop.eup %2662 }
 0x45b   : > { %v879_v62 = vmul.f32 %v2663_v52, %v3337_v51  ;;  %v915_v1 = vpop.permute.xlu2 %914  ;;  %v790_v2 = vpop.xlane.xlu0 %789 }
 0x45c   : > { %966 = vmatpush.bf16.msrb.mxu3 %v915_v1  ;;  %2664 = vrcp.f32 %v790_v2  ;;  %v3433_v37 = vpop.f32.mrf.mxu2 }
 0x45d   : > { %v902_v56 = vpack.c.bf16 %v879_v62, %v878_v32 }
 0x45f   : > { %2409 = vmatmul.msk.bf16.vlgmr.msrb.gmra.mxu3 %vm637_vm12, %v902_v56 }
 0x462   : > { %v2665_v3 = vpop.eup %2664 }
 0x463   : > { %v793_v11 = vpop.xlane.xlu1 %792  ;;  %v880_v12 = vmul.f32 %v2665_v3, %v3341_v55 }
 0x464   : > { %2666 = vrcp.f32 %v793_v11  ;;  %v629_v57 = vpop.f32.mrf.mxu2 }
 0x46a   : > { %v2667_v10 = vpop.eup %2666 }
 0x46b   : > { %v881_v59 = vmul.f32 %v2667_v10, %v3345_v60 }
 0x46c   : > { %v796_v20 = vpop.xlane.xlu1 %795  ;;  %v632_v56 = vpop.f32.mrf.mxu2 }
 0x46d   : > { %v903_v15 = vpack.c.bf16 %v881_v59, %v880_v12  ;;  %2668 = vrcp.f32 %v796_v20  ;;  %v3455_v3 = vadd.f32 %v3281_v33, %v632_v56 }
 0x46f   : > { %2410 = vmatmul.msk.bf16.gmra.mxu3 %vm637_vm12, %v903_v15  ;;  %v704_v15 = vsel %vm637_vm12, %v3455_v3, -inf }
 0x473   : > { %v2669_v9 = vpop.eup %2668 }
 0x474   : > { %v799_v51 = vpop.xlane.xlu1 %798  ;;  %v882_v0 = vmul.f32 %v2669_v9, %v3350_v6  ;;  %v3445_v6 = vadd.f32 %v3281_v33, %v629_v57  ;;  %v634_v9 = vpop.f32.mrf.mxu2 }
 0x475   : > { %2670 = vrcp.f32 %v799_v51 }
 0x47b   : > { %v2671_v27 = vpop.eup %2670  ;;  %v802_v20 = vpop.xlane.xlu0 %801 }
 0x47c   : > { %v676_v22 = vpop.xlane.xlu1 %675  ;;  %v883_v46 = vmul.f32 %v2671_v27, %v3358_v24  ;;  %v3465_v27 = vadd.f32 %v3281_v33, %v634_v9 }
 0x47d   : > { %v722_v55 = vsub.f32 %v3363_v28, %v676_v22 }
 0x47e   : > { %v904_v60 = vpack.c.bf16 %v883_v46, %v882_v0  ;;  %v707_v0 = vsel %vm637_vm12, %v3465_v27, -inf }
 0x47f   : > { %v758_v45 = vmul.f32 1.442695, %v722_v55 }
 0x480   : > { %2411 = vmatmul.msk.bf16.gmra.mxu3 %vm637_vm12, %v904_v60 }
 0x481   : > { %2672 = vpow2.f32 %v758_v45 }
 0x483   : > { %v685_v60 = vpop.xlane.xlu0 %684 }
 0x484   : > { %v679_v54 = vpop.xlane.xlu1 %678 }
 0x485   : > { %v723_v31 = vsub.f32 %v3375_v35, %v679_v54  ;;  %v701_v35 = vsel %vm637_vm12, %v3445_v6, -inf  ;;  %v3474_v54 = vadd.f32 %v3281_v33, %v624_v30  ;;  %v3484_v30 = vadd.f32 %v3281_v33, %v3433_v37 }
 0x487   : > { %v3440_v52 = vpop.eup %2672  ;;  %v760_v32 = vmul.f32 1.442695, %v723_v31  ;;  %v695_v56 = vsel %vm637_vm12, %v3474_v54, -inf }
 0x488   : > { %v818_v62 = vsel %vm637_vm12, %v3440_v52, 0.0 }
 0x489   : > { %2674 = vpow2.f32 %v760_v32  ;;  %819 = vadd.xlane.f32.xlu0 %v818_v62 }
 0x48c   : > { %v682_v24 = vpop.xlane.xlu1 %681 }
 0x48d   : > { %v724_v28 = vsub.f32 %v3385_v58, %v682_v24  ;;  %v725_v24 = vsub.f32 %v3372_v42, %v685_v60 }
 0x48f   : > { %v3448_v1 = vpop.eup %2674  ;;  %v762_v2 = vmul.f32 1.442695, %v724_v28 }
 0x490   : > { %v821_v11 = vsel %vm637_vm12, %v3448_v1, 0.0 }
 0x491   : > { %2676 = vpow2.f32 %v762_v2  ;;  %702 = vmax.xlane.f32.xlu0 %v701_v35  ;;  %822 = vadd.xlane.f32.xlu2 %v821_v11  ;;  %v764_v2 = vmul.f32 1.442695, %v725_v24 }
 0x494   : > { %v670_v10 = vpop.xlane.xlu2 %669  ;;  %v811_v28 = vpop.xlane.xlu1 %810 }
 0x495   : > { %v720_v12 = vsub.f32 %v3395_v4, %v670_v10 }
 0x497   : > { %v3458_v58 = vpop.eup %2676  ;;  %v754_v59 = vmul.f32 1.442695, %v720_v12  ;;  %v698_v12 = vsel %vm637_vm12, %v3484_v30, -inf }
 0x498   : > { %v824_v51 = vsel %vm637_vm12, %v3458_v58, 0.0 }
 0x499   : > { %2678 = vpow2.f32 %v754_v59  ;;  %705 = vmax.xlane.f32.xlu0 %v704_v15  ;;  %825 = vadd.xlane.f32.xlu2 %v824_v51 }
 0x49a   : > { %2680 = vrcp.f32 %v802_v20 }
 0x49c   : > { %v805_v22 = vpop.xlane.xlu2 %804 }
 0x49d   : > { %2682 = vrcp.f32 %v805_v22 }
 0x49f   : > { %v3467_v4 = vpop.eup %2678 }
 0x4a0   : > { %v812_v46 = vsel %vm637_vm12, %v3467_v4, 0.0  ;;  %v2681_v55 = vpop.eup %2680 }
 0x4a1   : > { %708 = vmax.xlane.f32.xlu2 %v707_v0  ;;  %813 = vadd.xlane.f32.xlu1 %v812_v46  ;;  %v884_v31 = vmul.f32 %v2681_v55, %v3365_v29  ;;  %v688_v29 = vpop.xlane.xlu0 %687 }
 0x4a2   : > { %v726_v42 = vsub.f32 %v3382_v47, %v688_v29 }
 0x4a3   : > { %v2683_v45 = vpop.eup %2682 }
 0x4a4   : > { %v808_v57 = vpop.xlane.xlu2 %807  ;;  %v885_v32 = vmul.f32 %v2683_v45, %v3405_v23  ;;  %v766_v15 = vmul.f32 1.442695, %v726_v42 }
 0x4a5   : > { %2684 = vrcp.f32 %v808_v57 }
 0x4a6   : > { %v905_v62 = vpack.c.bf16 %v885_v32, %v884_v31  ;;  %2686 = vrcp.f32 %v811_v28 }
 0x4a7   : > { %2688 = vpow2.f32 %v764_v2 }
 0x4a8   : > { %2412 = vmatmul.msk.bf16.gmra.mxu3 %vm637_vm12, %v905_v62 }
 0x4a9   : > { %696 = vmax.xlane.f32.xlu1 %v695_v56  ;;  %v817_v45 = vpop.xlane.xlu0 %816 }
 0x4ab   : > { %v2685_v11 = vpop.eup %2684 }
 0x4ac   : > { %v691_v35 = vpop.xlane.xlu2 %690  ;;  %v2687_v59 = vpop.eup %2686  ;;  %v886_v20 = vmul.f32 %v2685_v11, %v3409_v41 }
 0x4ad   : > { %v727_v23 = vsub.f32 %v3418_v25, %v691_v35  ;;  %v887_v37 = vmul.f32 %v2687_v59, %v3397_v63  ;;  %v3492_v51 = vpop.eup %2688 }
 0x4ae   : > { %v827_v0 = vsel %vm637_vm12, %v3492_v51, 0.0 }
 0x4af   : > { %v768_v10 = vmul.f32 1.442695, %v727_v23  ;;  %v906_v9 = vpack.c.bf16 %v887_v37, %v886_v20 }
 0x4b1   : > { %2690 = vpow2.f32 %v768_v10  ;;  %699 = vmax.xlane.f32.xlu1 %v698_v12 }
 0x4b2   : > { %2692 = vpow2.f32 %v766_v15 }
 0x4b4   : > { %v694_v33 = vpop.xlane.xlu2 %693 }
 0x4b5   : > { %v728_v25 = vsub.f32 %v3423_v40, %v694_v33 }
 0x4b7   : > { %v3495_v22 = vpop.eup %2690  ;;  %v770_v47 = vmul.f32 1.442695, %v728_v25 }
 0x4b8   : > { %2413 = vmatmul.msk.bf16.gmra.mxu3 %vm637_vm12, %v906_v9  ;;  %v833_v41 = vsel %vm637_vm12, %v3495_v22, 0.0  ;;  %v3502_v63 = vpop.eup %2692 }
 0x4b9   : > { %2694 = vpow2.f32 %v770_v47  ;;  %828 = vadd.xlane.f32.xlu1 %v827_v0  ;;  %834 = vadd.xlane.f32.xlu0 %v833_v41  ;;  %v830_v40 = vsel %vm637_vm12, %v3502_v63, 0.0 }
 0x4bf   : > { %v3504_v46 = vpop.eup %2694 }
 0x4c0   : > { %v836_v55 = vsel %vm637_vm12, %v3504_v46, 0.0 }
 0x4c1   : > { %831 = vadd.xlane.f32.xlu1 %v830_v40  ;;  %837 = vadd.xlane.f32.xlu2 %v836_v55 }
 0x4e2   : > { %v968_v60 = vpop.f32.mrf.mxu3 }
 0x4ea   : > { %v3510_v57 = vpop.f32.mrf.mxu3 }
 0x4f2   : > { %v3512_v62 = vpop.f32.mrf.mxu3 }
 0x4fa   : > { %v975_v2 = vpop.f32.mrf.mxu3 }
 0x4fc   : > { %v820_v31 = vpop.xlane.xlu0 %819 }
 0x503   : > { %v3519_v42 = vpop.f32.mrf.mxu3 }
 0x504   : > { %v703_v32 = vpop.xlane.xlu0 %702  ;;  %v823_v29 = vpop.xlane.xlu2 %822 }
 0x505   : > { %v731_v24 = vsub.f32 %v3445_v6, %v703_v32 }
 0x507   : > { %v776_v28 = vmul.f32 1.442695, %v731_v24 }
 0x509   : > { %2696 = vpow2.f32 %v776_v28 }
 0x50a   : > { %2698 = vrcp.f32 %v817_v45 }
 0x50b   : > { %v980_v47 = vpop.f32.mrf.mxu3 }
 0x50c   : > { %v826_v10 = vpop.xlane.xlu2 %825  ;;  %v706_v59 = vpop.xlane.xlu0 %705 }
 0x50d   : > { %v732_v25 = vsub.f32 %v3455_v3, %v706_v59  ;;  %v1031_v3 = vmul.f32 %v975_v2, %v3213_v34 }
 0x50f   : > { %v3515_v56 = vpop.eup %2696  ;;  %v778_v0 = vmul.f32 1.442695, %v732_v25 }
 0x510   : > { %v845_v35 = vsel %vm637_vm12, %v3515_v56, 0.0  ;;  %v2699_v11 = vpop.eup %2698 }
 0x511   : > { %846 = vadd.xlane.f32.xlu2 %v845_v35  ;;  %v889_v15 = vmul.f32 %v2699_v11, %v3411_v26 }
 0x514   : > { %v814_v23 = vpop.xlane.xlu1 %813  ;;  %v709_v41 = vpop.xlane.xlu2 %708 }
 0x515   : > { %2700 = vrcp.f32 %v814_v23  ;;  %v733_v26 = vsub.f32 %v3465_v27, %v709_v41 }
 0x516   : > { %2702 = vrcp.f32 %v823_v29 }
 0x51b   : > { %v2701_v12 = vpop.eup %2700 }
 0x51c   : > { %v697_v6 = vpop.xlane.xlu1 %696  ;;  %v888_v20 = vmul.f32 %v2701_v12, %v3467_v4  ;;  %v2703_v4 = vpop.eup %2702 }
 0x51d   : > { %v729_v33 = vsub.f32 %v3474_v54, %v697_v6  ;;  %v891_v28 = vmul.f32 %v2703_v4, %v3448_v1  ;;  %v1033_v6 = vmul.f32 %v980_v47, %v3232_v48 }
 0x51e   : > { %v907_v37 = vpack.c.bf16 %v889_v15, %v888_v20 }
 0x51f   : > { %v772_v9 = vmul.f32 1.442695, %v729_v33  ;;  %v1030_v33 = vmul.f32 %v3512_v62, %v3227_v43 }
 0x520   : > { %2414 = vmatmul.msk.bf16.gmra.mxu3 %vm637_vm12, %v907_v37 }
 0x521   : > { %2704 = vpow2.f32 %v772_v9  ;;  %v1054_v9 = vadd.f32 %v1033_v6, %v1030_v33 }
 0x522   : > { %2706 = vrcp.f32 %v820_v31  ;;  %v1028_v31 = vmul.f32 %v968_v60, %v3173_v13 }
 0x523   : > { %2708 = vpow2.f32 %v778_v0 }
 0x524   : > { %v700_v40 = vpop.xlane.xlu1 %699  ;;  %v1052_v35 = vadd.f32 %v1031_v3, %v1028_v31  ;;  %v1029_v3 = vmul.f32 %v3510_v57, %v3177_v16 }
 0x525   : > { %v730_v55 = vsub.f32 %v3484_v30, %v700_v40  ;;  %v780_v30 = vmul.f32 1.442695, %v733_v26 }
 0x527   : > { %v3527_v45 = vpop.eup %2704  ;;  %v774_v54 = vmul.f32 1.442695, %v730_v55 }
 0x528   : > { %v839_v32 = vsel %vm637_vm12, %v3527_v45, 0.0  ;;  %v2707_v24 = vpop.eup %2706 }
 0x529   : > { %2710 = vpow2.f32 %v774_v54  ;;  %840 = vadd.xlane.f32.xlu1 %v839_v32  ;;  %v890_v27 = vmul.f32 %v2707_v24, %v3440_v52  ;;  %v3537_v11 = vpop.eup %2708  ;;  %v1032_v54 = vmul.f32 %v3519_v42, %v3219_v38 }
 0x52a   : > { %2712 = vpow2.f32 %v780_v30  ;;  %v848_v13 = vsel %vm637_vm12, %v3537_v11, 0.0 }
 0x52b   : > { %v983_v29 = vpop.f32.mrf.mxu3  ;;  %v908_v12 = vpack.c.bf16 %v891_v28, %v890_v27 }
 0x52c   : > { %v1034_v23 = vmul.f32 %v983_v29, %v3175_v14  ;;  %v829_v2 = vpop.xlane.xlu1 %828  ;;  %v835_v48 = vpop.xlane.xlu0 %834 }
 0x52d   : > { %2714 = vrcp.f32 %v829_v2 }
 0x52e   : > { %v3539_v34 = vadd.f32 %v1052_v35, %v1034_v23  ;;  %2716 = vrcp.f32 %v826_v10 }
 0x52f   : > { %v3541_v59 = vpop.eup %2710 }
 0x530   : > { %2415 = vmatmul.msk.bf16.gmra.mxu3 %vm637_vm12, %v908_v12  ;;  %v842_v1 = vsel %vm637_vm12, %v3541_v59, 0.0  ;;  %v3548_v52 = vpop.eup %2712 }
 0x531   : > { %849 = vadd.xlane.f32.xlu1 %v848_v13  ;;  %843 = vadd.xlane.f32.xlu0 %v842_v1  ;;  %v851_v20 = vsel %vm637_vm12, %v3548_v52, 0.0 }
 0x533   : > { %v985_v14 = vpop.f32.mrf.mxu3  ;;  %v2715_v60 = vpop.eup %2714 }
 0x534   : > { %v2717_v15 = vpop.eup %2716  ;;  %v893_v37 = vmul.f32 %v2715_v60, %v3492_v51  ;;  %v832_v41 = vpop.xlane.xlu1 %831  ;;  %v1035_v32 = vmul.f32 %v985_v14, %v3179_v18 }
 0x535   : > { %v892_v0 = vmul.f32 %v2717_v15, %v3458_v58  ;;  %2718 = vrcp.f32 %v832_v41 }
 0x536   : > { %2720 = vrcp.f32 %v835_v48  ;;  %v2540_v48 = vld [vmem:[#allocation5 + $0x18] sm:$0xff] }
 0x537   : > { %v909_v55 = vpack.c.bf16 %v893_v37, %v892_v0  ;;  %1100 = vmatpush.bf16.msrb.mxu0 %v2540_v48 }
 0x539   : > { %852 = vadd.xlane.f32.xlu0 %v851_v20 }
 0x53b   : > { %v988_v25 = vpop.f32.mrf.mxu3  ;;  %v2719_v47 = vpop.eup %2718 }
 0x53c   : > { %v1036_v10 = vmul.f32 %v988_v25, %v3234_v49  ;;  %v2721_v4 = vpop.eup %2720  ;;  %v894_v43 = vmul.f32 %v2719_v47, %v3502_v63  ;;  %v838_v49 = vpop.xlane.xlu2 %837  ;;  %v1053_v63 = vadd.f32 %v1032_v54, %v1029_v3  ;;  %v3593_v3 = vld [vmem:[#allocation2 + $0xe0] sm:$0xff] }
 0x53d   : > { %v895_v51 = vmul.f32 %v2721_v4, %v3495_v22  ;;  %2722 = vrcp.f32 %v838_v49  ;;  %v3590_v49 = vld [vmem:[#allocation2 + $0xd0] sm:$0xff] }
 0x53e   : > { %v1057_v40 = vadd.f32 %v1054_v9, %v1036_v10  ;;  %v1056_v28 = vadd.f32 %v1053_v63, %v1035_v32 }
 0x53f   : > { %v910_v62 = vpack.c.bf16 %v895_v51, %v894_v43  ;;  %v3583_v43 = vld [vmem:[#allocation2 + $0xb0] sm:$0xff]  ;;  %v3587_v51 = vld [vmem:[#allocation2 + $0xc8] sm:$0xff] }
 0x540   : > { %2416 = vmatmul.msk.bf16.gmra.mxu3 %vm637_vm12, %v909_v55 }
 0x543   : > { %v990_v58 = vpop.f32.mrf.mxu3  ;;  %v2723_v24 = vpop.eup %2722 }
 0x544   : > { %v896_v29 = vmul.f32 %v2723_v24, %v3504_v46  ;;  %v1037_v12 = vmul.f32 %v990_v58, %v3217_v36 }
 0x550   : > { %2417 = vmatmul.msk.bf16.gmra.mxu3 %vm637_vm12, %v910_v62 }
 0x584   : > { %v847_v38 = vpop.xlane.xlu2 %846 }
 0x59c   : > { %v841_v26 = vpop.xlane.xlu1 %840 }
 0x59d   : > { %2724 = vrcp.f32 %v841_v26 }
 0x5a3   : > { %v2725_v31 = vpop.eup %2724  ;;  %v993_v22 = vpop.f32.mrf.mxu3 }
 0x5a4   : > { %v1038_v30 = vmul.f32 %v993_v22, %v3221_v39  ;;  %v897_v35 = vmul.f32 %v2725_v31, %v3527_v45  ;;  %v844_v27 = vpop.xlane.xlu0 %843  ;;  %v1058_v45 = vadd.f32 %v3539_v34, %v1037_v12  ;;  %v850_v15 = vpop.xlane.xlu1 %849  ;;  %v3596_v22 = vld [vmem:[#allocation2 + $0xe8] sm:$0xff] }
 0x5a5   : > { %2726 = vrcp.f32 %v844_v27 }
 0x5a6   : > { %v1059_v23 = vadd.f32 %v1056_v28, %v1038_v30  ;;  %v911_v2 = vpack.c.bf16 %v897_v35, %v896_v29  ;;  %2728 = vrcp.f32 %v847_v38  ;;  %v3600_v35 = vld [vmem:[#allocation2 + $0xc0] sm:$0xff] }
 0x5a8   : > { %2418 = vmatmul.msk.bf16.gmra.mxu3 %vm637_vm12, %v911_v2  ;;  %v3603_v2 = vld [vmem:[#allocation2 + $0xd8] sm:$0xff] }
 0x5ab   : > { %v995_v16 = vpop.f32.mrf.mxu3  ;;  %v2727_v42 = vpop.eup %2726 }
 0x5ac   : > { %v1039_v18 = vmul.f32 %v995_v16, %v3236_v50  ;;  %v2729_v39 = vpop.eup %2728  ;;  %v898_v46 = vmul.f32 %v2727_v42, %v3541_v59  ;;  %v853_v60 = vpop.xlane.xlu0 %852 }
 0x5ad   : > { %v899_v14 = vmul.f32 %v2729_v39, %v3515_v56  ;;  %2730 = vrcp.f32 %v853_v60  ;;  %v3611_v39 = vld [vmem:[%s4148_s4] sm:$0xff] }
 0x5ae   : > { %v1060_v57 = vadd.f32 %v1057_v40, %v1039_v18  ;;  %2732 = vrcp.f32 %v850_v15 }
 0x5af   : > { %v912_v20 = vpack.c.bf16 %v899_v14, %v898_v46  ;;  %v1075_v46 = vperm.slane %v3611_v39, 1 }
 0x5b3   : > { %v998_v13 = vpop.f32.mrf.mxu3  ;;  %v2731_v59 = vpop.eup %2730 }
 0x5b4   : > { %v1040_v1 = vmul.f32 %v998_v13, %v3181_v19  ;;  %v2733_v37 = vpop.eup %2732  ;;  %v901_v34 = vmul.f32 %v2731_v59, %v3548_v52 }
 0x5b5   : > { %v900_v19 = vmul.f32 %v2733_v37, %v3537_v11 }
 0x5b6   : > { %v1061_v6 = vadd.f32 %v1058_v45, %v1040_v1 }
 0x5b7   : > { %v913_v10 = vpack.c.bf16 %v901_v34, %v900_v19 }
 0x5b8   : > { %2419 = vmatmul.msk.bf16.gmra.mxu3 %vm637_vm12, %v912_v20 }
 0x5bb   : > { %v1000_v50 = vpop.f32.mrf.mxu3 }
 0x5bc   : > { %v1041_v36 = vmul.f32 %v1000_v50, %v3183_v21  ;;  %v2539_v21 = vld [vmem:[#allocation5 + $0x10] sm:$0xff] }
 0x5bd   : > { %1101 = vmatpush.bf16.msrb.mxu0 %v2539_v21  ;;  %v2542_v21 = vld [vmem:[#allocation5 + $0x28] sm:$0xff] }
 0x5be   : > { %v1062_v33 = vadd.f32 %v1059_v23, %v1041_v36  ;;  %1208 = vmatpush.bf16.msrb.mxu1 %v2542_v21 }
 0x5c3   : > { %v1003_v25 = vpop.f32.mrf.mxu3 }
 0x5c4   : > { %v1042_v56 = vmul.f32 %v1003_v25, %v3239_v53 }
 0x5c6   : > { %v1063_v9 = vadd.f32 %v1060_v57, %v1042_v56 }
 0x5c8   : > { %2420 = vmatmul.msk.bf16.gmra.mxu3 %vm637_vm12, %v913_v10 }
 0x5cb   : > { %v1005_v0 = vpop.f32.mrf.mxu3 }
 0x5cc   : > { %v1043_v11 = vmul.f32 %v3583_v43, %v1005_v0 }
 0x5ce   : > { %v1064_v26 = vadd.f32 %v1061_v6, %v1043_v11 }
 0x5d3   : > { %v1008_v41 = vpop.f32.mrf.mxu3 }
 0x5d4   : > { %v1044_v53 = vmul.f32 %v1008_v41, %v3229_v44 }
 0x5d6   : > { %v1065_v54 = vadd.f32 %v1062_v33, %v1044_v53 }
 0x5db   : > { %v1010_v40 = vpop.f32.mrf.mxu3 }
 0x5dc   : > { %v1045_v23 = vmul.f32 %v3600_v35, %v1010_v40 }
 0x5de   : > { %v1066_v16 = vadd.f32 %v1063_v9, %v1045_v23 }
 0x62b   : > { %v1013_v55 = vpop.f32.mrf.mxu3 }
 0x62c   : > { %v1046_v62 = vmul.f32 %v3587_v51, %v1013_v55 }
 0x62e   : > { %v1067_v63 = vadd.f32 %v1064_v26, %v1046_v62 }
 0x633   : > { %v1015_v47 = vpop.f32.mrf.mxu3 }
 0x634   : > { %v1047_v58 = vmul.f32 %v3590_v49, %v1015_v47 }
 0x636   : > { %v1068_v31 = vadd.f32 %v1065_v54, %v1047_v58 }
 0x63b   : > { %v1018_v4 = vpop.f32.mrf.mxu3 }
 0x63c   : > { %v1048_v38 = vmul.f32 %v3603_v2, %v1018_v4  ;;  %v2541_v4 = vld [vmem:[#allocation5 + $0x20] sm:$0xff] }
 0x63d   : > { %1209 = vmatpush.bf16.msrb.mxu1 %v2541_v4 }
 0x63e   : > { %v1069_v57 = vadd.f32 %v1066_v16, %v1048_v38 }
 0x643   : > { %v1020_v52 = vpop.f32.mrf.mxu3 }
 0x644   : > { %v1049_v32 = vmul.f32 %v3593_v3, %v1020_v52 }
 0x646   : > { %v1070_v28 = vadd.f32 %v1067_v63, %v1049_v32 }
 0x64b   : > { %v1023_v24 = vpop.f32.mrf.mxu3 }
 0x64c   : > { %v1050_v44 = vmul.f32 %v3596_v22, %v1023_v24 }
 0x64e   : > { %v1071_v30 = vadd.f32 %v1068_v31, %v1050_v44 }
 0x650   : > { %v1073_v29 = vpack.c.bf16 %v1071_v30, %v1070_v28 }
 0x652   : > { %2429 = vmatmul.msk.bf16.vlgmr.msrb.gmra.mxu0 %vm366_vm1, %v1073_v29 }
 0x653   : > { %v1025_v27 = vpop.f32.mrf.mxu3 }
 0x654   : > { %v1051_v18 = vmul.f32 %v1025_v27, %v3246_v61 }
 0x656   : > { %v1072_v42 = vadd.f32 %v1069_v57, %v1051_v18 }
 0x658   : > { %v1074_v12 = vpack.c.bf16 %v1072_v42, %v1072_v42 }
 0x662   : > { %2430 = vmatmul.msk.bf16.gmra.mxu0 %vm366_vm1, %v1074_v12 }
 0x6cf   : > { %v1103_v13 = vpop.f32.mrf.mxu0 }
 0x6d0   : > { %v1104_v45 = vadd.f32 %v1103_v13, %v1075_v46 }
 0x6d2   : > { %v3615_v1 = vadd.f32 %v1104_v45, %v3142_v5 }
 0x6d4   : > { %v1115_v61 = vsel %vm366_vm1, %v3615_v1, 0.0 }
 0x6d5   : > { %1116 = vadd.xlane.f32.xlu2 %v1115_v61 }
 0x6d7   : > { %v1105_v14 = vpop.f32.mrf.mxu0 }
 0x6d8   : > { %v1106_v60 = vadd.f32 %v1105_v14, %v1075_v46 }
 0x6da   : > { %v3620_v6 = vadd.f32 %v1106_v60, %v3146_v7 }
 0x6dc   : > { %v1118_v20 = vsel %vm366_vm1, %v3620_v6, 0.0 }
 0x6dd   : > { %1119 = vadd.xlane.f32.xlu1 %v1118_v20 }
 0x6df   : > { %v1108_v15 = vpop.f32.mrf.mxu0 }
 0x6e0   : > { %v1109_v50 = vadd.f32 %v1108_v15, %v1075_v46 }
 0x6e2   : > { %v3625_v36 = vadd.f32 %v1109_v50, %v3148_v8 }
 0x6e4   : > { %v1121_v5 = vsel %vm366_vm1, %v3625_v36, 0.0 }
 0x6e5   : > { %1122 = vadd.xlane.f32.xlu0 %v1121_v5 }
 0x6e7   : > { %v1110_v33 = vpop.f32.mrf.mxu0 }
 0x748   : > { %v1117_v59 = vpop.xlane.xlu2 %1116 }
 0x749   : > { %v1124_v37 = vmul.f32 %v1117_v59, %v3154_v17  ;;  %v2546_v59 = vld [vmem:[#allocation5 + $0x48] sm:$0xff] }
 0x74a   : > { %1285 = vmatpush.bf16.msra.mxu0 %v2546_v59 }
 0x74b   : > { %v1127_v7 = vsub.f32 %v3615_v1, %v1124_v37  ;;  %v2545_v37 = vld [vmem:[#allocation5 + $0x40] sm:$0xff] }
 0x74d   : > { %v1130_v34 = vmul.f32 %v1127_v7, %v1127_v7 }
 0x74e   : > { %1286 = vmatpush.bf16.msra.mxu0 %v2545_v37 }
 0x74f   : > { %v1133_v25 = vsel %vm366_vm1, %v1130_v34, 0.0  ;;  %v2544_v34 = vld [vmem:[#allocation5 + $0x38] sm:$0xff] }
 0x750   : > { %v1120_v19 = vpop.xlane.xlu1 %1119  ;;  %1134 = vadd.xlane.f32.xlu2 %v1133_v25 }
 0x751   : > { %v1125_v56 = vmul.f32 %v1120_v19, %v3154_v17 }
 0x752   : > { %1287 = vmatpush.bf16.msra.mxu0 %v2544_v34 }
 0x753   : > { %v1128_v8 = vsub.f32 %v3620_v6, %v1125_v56  ;;  %v2543_v56 = vld [vmem:[#allocation5 + $0x30] sm:$0xff] }
 0x755   : > { %v1131_v9 = vmul.f32 %v1128_v8, %v1128_v8 }
 0x756   : > { %1288 = vmatpush.bf16.msra.mxu0 %v2543_v56 }
 0x757   : > { %v1136_v10 = vsel %vm366_vm1, %v1131_v9, 0.0 }
 0x758   : > { %1137 = vadd.xlane.f32.xlu1 %v1136_v10  ;;  %v1123_v0 = vpop.xlane.xlu0 %1122 }
 0x759   : > { %v1126_v41 = vmul.f32 %v1123_v0, %v3154_v17 }
 0x75b   : > { %v1129_v40 = vsub.f32 %v3625_v36, %v1126_v41 }
 0x75d   : > { %v1132_v55 = vmul.f32 %v1129_v40, %v1129_v40 }
 0x75f   : > { %v1139_v48 = vsel %vm366_vm1, %v1132_v55, 0.0 }
 0x760   : > { %1140 = vadd.xlane.f32.xlu0 %v1139_v48 }
 0x7c3   : > { %v1135_v47 = vpop.xlane.xlu2 %1134 }
 0x7c4   : > { %v1142_v52 = vmul.f32 %v1135_v47, %v3154_v17 }
 0x7c6   : > { %v1145_v11 = vadd.f32 1e-05, %v1142_v52 }
 0x7c8   : > { %2734 = vrsqrt.f32 %v1145_v11  ;;  %vm1154_vm15 = vweird.f32 %v1145_v11 }
 0x7cb   : > { %v1138_v53 = vpop.xlane.xlu1 %1137 }
 0x7cc   : > { %v1143_v62 = vmul.f32 %v1138_v53, %v3154_v17 }
 0x7ce   : > { %v2735_v58 = vpop.eup %2734  ;;  %v1146_v26 = vadd.f32 1e-05, %v1143_v62 }
 0x7cf   : > { %v1149_v54 = vmul.f32 %v2735_v58, %v1145_v11  ;;  %vm1155_vm14 = vweird.f32 %v2735_v58 }
 0x7d0   : > { %2736 = vrsqrt.f32 %v1146_v26  ;;  %vm1156_vm2 = vmor %vm1154_vm15, %vm1155_vm14  ;;  %vm1164_vm3 = vweird.f32 %v1146_v26 }
 0x7d1   : > { %v1150_v32 = vmul.f32 %v2735_v58, %v1149_v54 }
 0x7d3   : > { %v1151_v24 = vmul.f32 0.5, %v1150_v32  ;;  %v1141_v63 = vpop.xlane.xlu0 %1140 }
 0x7d4   : > { %v1144_v31 = vmul.f32 %v1141_v63, %v3154_v17 }
 0x7d5   : > { %v1152_v30 = vsub.f32 1.5, %v1151_v24 }
 0x7d6   : > { %v2737_v44 = vpop.eup %2736  ;;  %v1147_v28 = vadd.f32 1e-05, %v1144_v31 }
 0x7d7   : > { %v1159_v29 = vmul.f32 %v2737_v44, %v1146_v26  ;;  %v1153_v27 = vmul.f32 %v2735_v58, %v1152_v30  ;;  %vm1165_vm0 = vweird.f32 %v2737_v44 }
 0x7d8   : > { %2738 = vrsqrt.f32 %v1147_v28  ;;  %vm1166_vm4 = vmor %vm1164_vm3, %vm1165_vm0  ;;  %vm1174_vm6 = vweird.f32 %v1147_v28 }
 0x7d9   : > { %v1160_v23 = vmul.f32 %v2737_v44, %v1159_v29  ;;  %v1157_v57 = vsel %vm1156_vm2, %v2735_v58, %v1153_v27 }
 0x7da   : > { %v1178_v45 = vmul.f32 %v1157_v57, %v1127_v7  ;;  %v1183_v7 = vperm.slane %v3611_v39, 2 }
 0x7db   : > { %v1161_v38 = vmul.f32 0.5, %v1160_v23 }
 0x7dd   : > { %v1162_v16 = vsub.f32 1.5, %v1161_v38 }
 0x7de   : > { %v2739_v18 = vpop.eup %2738 }
 0x7df   : > { %v1163_v42 = vmul.f32 %v2737_v44, %v1162_v16  ;;  %v1169_v12 = vmul.f32 %v2739_v18, %v1147_v28  ;;  %vm1175_vm5 = vweird.f32 %v2739_v18 }
 0x7e0   : > { %vm1176_vm7 = vmor %vm1174_vm6, %vm1175_vm5 }
 0x7e1   : > { %v1167_v46 = vsel %vm1166_vm4, %v2737_v44, %v1163_v42  ;;  %v1170_v13 = vmul.f32 %v2739_v18, %v1169_v12 }
 0x7e2   : > { %v1179_v61 = vmul.f32 %v1167_v46, %v1128_v8  ;;  %v1249_v46 = vperm.slane %v3611_v39, 3 }
 0x7e3   : > { %v1171_v14 = vmul.f32 0.5, %v1170_v13 }
 0x7e4   : > { %v1181_v60 = vpack.c.bf16 %v1179_v61, %v1178_v45 }
 0x7e5   : > { %v1172_v20 = vsub.f32 1.5, %v1171_v14 }
 0x7e6   : > { %2439 = vmatmul.msk.bf16.vlgmr.msrb.gmra.mxu1 %vm366_vm1, %v1181_v60 }
 0x7e7   : > { %v1173_v15 = vmul.f32 %v2739_v18, %v1172_v20 }
 0x7e9   : > { %v1177_v50 = vsel %vm1176_vm7, %v2739_v18, %v1173_v15 }
 0x7ea   : > { %v1180_v5 = vmul.f32 %v1177_v50, %v1129_v40 }
 0x7ec   : > { %v1182_v33 = vpack.c.bf16 %v1180_v5, %v1180_v5 }
 0x7f6   : > { %2440 = vmatmul.msk.bf16.gmra.mxu1 %vm366_vm1, %v1182_v33 }
 0x863   : > { %v1211_v25 = vpop.f32.mrf.mxu1 }
 0x864   : > { %v1212_v19 = vadd.f32 %v1211_v25, %v1183_v7 }
 0x866   : > { %v1220_v8 = vmul.f32 %v1212_v19, %v1212_v19 }
 0x868   : > { %v1223_v9 = vmul.f32 %v1220_v8, %v1212_v19 }
 0x86a   : > { %v1226_v10 = vmul.f32 0.044715, %v1223_v9 }
 0x86b   : > { %v1213_v0 = vpop.f32.mrf.mxu1 }
 0x86c   : > { %v1229_v41 = vadd.f32 %v1226_v10, %v1212_v19  ;;  %v1214_v40 = vadd.f32 %v1213_v0, %v1183_v7 }
 0x86e   : > { %v1232_v55 = vmul.f32 0.7978846, %v1229_v41  ;;  %v1221_v48 = vmul.f32 %v1214_v40, %v1214_v40 }
 0x870   : > { %v1224_v21 = vmul.f32 %v1221_v48, %v1214_v40  ;;  %2740 = vtanh.f32 %v1232_v55  ;;  %v2548_v48 = vld [vmem:[#allocation5 + $0x58] sm:$0xff] }
 0x871   : > { %1418 = vmatpush.bf16.msra.mxu1 %v2548_v48 }
 0x872   : > { %v1227_v47 = vmul.f32 0.044715, %v1224_v21 }
 0x873   : > { %v1216_v4 = vpop.f32.mrf.mxu1 }
 0x874   : > { %v1230_v52 = vadd.f32 %v1227_v47, %v1214_v40  ;;  %v1217_v11 = vadd.f32 %v1216_v4, %v1183_v7  ;;  %v2547_v47 = vld [vmem:[#allocation5 + $0x50] sm:$0xff] }
 0x875   : > { %1419 = vmatpush.bf16.msra.mxu1 %v2547_v47 }
 0x876   : > { %v1233_v53 = vmul.f32 0.7978846, %v1230_v52  ;;  %v1222_v62 = vmul.f32 %v1217_v11, %v1217_v11  ;;  %v2741_v58 = vpop.eup %2740 }
 0x877   : > { %v1238_v32 = vadd.f32 1.0, %v2741_v58 }
 0x878   : > { %2742 = vtanh.f32 %v1233_v53  ;;  %v1225_v26 = vmul.f32 %v1222_v62, %v1217_v11 }
 0x879   : > { %v1241_v28 = vmul.f32 0.5, %v1238_v32 }
 0x87a   : > { %v1228_v54 = vmul.f32 0.044715, %v1225_v26 }
 0x87b   : > { %v1218_v24 = vpop.f32.mrf.mxu1  ;;  %v1244_v23 = vmul.f32 %v1241_v28, %v1212_v19 }
 0x87c   : > { %v1231_v63 = vadd.f32 %v1228_v54, %v1217_v11 }
 0x87e   : > { %v2743_v31 = vpop.eup %2742  ;;  %v1234_v44 = vmul.f32 0.7978846, %v1231_v63 }
 0x87f   : > { %v1239_v30 = vadd.f32 1.0, %v2743_v31 }
 0x880   : > { %2744 = vtanh.f32 %v1234_v44 }
 0x881   : > { %v1242_v29 = vmul.f32 0.5, %v1239_v30 }
 0x883   : > { %v1245_v27 = vmul.f32 %v1242_v29, %v1214_v40 }
 0x885   : > { %v1247_v38 = vpack.c.bf16 %v1245_v27, %v1244_v23 }
 0x886   : > { %v2745_v16 = vpop.eup %2744 }
 0x887   : > { %2457 = vmatmul.msk.bf16.vlgmr.msra.gmra.mxu0 %vm1274_vm8, %v1247_v38  ;;  %v1240_v18 = vadd.f32 1.0, %v2745_v16 }
 0x889   : > { %v1243_v57 = vmul.f32 0.5, %v1240_v18 }
 0x88b   : > { %v1246_v42 = vmul.f32 %v1243_v57, %v1217_v11 }
 0x88d   : > { %v1248_v12 = vpack.c.bf16 %v1246_v42, %v1246_v42 }
 0x897   : > { %2458 = vmatmul.msk.bf16.gmra.mxu0 %vm1274_vm8, %v1248_v12 }
 0x904   : > { %v1290_v13 = vpop.f32.mrf.mxu0 }
 0x905   : > { %v1291_v45 = vadd.f32 %v1290_v13, %v1249_v46 }
 0x907   : > { %v3648_v61 = vadd.f32 %v1291_v45, %v3615_v1 }
 0x909   : > { %v1325_v14 = vsel %vm366_vm1, %v3648_v61, 0.0 }
 0x90a   : > { %1326 = vadd.xlane.f32.xlu2 %v1325_v14 }
 0x90c   : > { %v1292_v60 = vpop.f32.mrf.mxu0 }
 0x90d   : > { %v1293_v20 = vadd.f32 %v1292_v60, %v1249_v46 }
 0x90f   : > { %v3653_v15 = vadd.f32 %v1293_v20, %v3620_v6 }
 0x911   : > { %v1328_v50 = vsel %vm366_vm1, %v3653_v15, 0.0 }
 0x912   : > { %1329 = vadd.xlane.f32.xlu1 %v1328_v50 }
 0x914   : > { %v1295_v5 = vpop.f32.mrf.mxu0 }
 0x915   : > { %v1296_v39 = vadd.f32 %v1295_v5, %v1249_v46 }
 0x917   : > { %v3658_v33 = vadd.f32 %v1296_v39, %v3625_v36 }
 0x919   : > { %v1331_v1 = vsel %vm366_vm1, %v3658_v33, 0.0 }
 0x91a   : > { %1332 = vadd.xlane.f32.xlu0 %v1331_v1 }
 0x91c   : > { %v1297_v59 = vpop.f32.mrf.mxu0 }
 0x91d   : > { %v2459_v59 = vld [vmem:[%s4148_s4 + $0x8] sm:$0xff] }
 0x97d   : > { %v1327_v37 = vpop.xlane.xlu2 %1326 }
 0x97e   : > { %v1334_v7 = vmul.f32 %v1327_v37, %v3154_v17 }
 0x980   : > { %v1337_v6 = vsub.f32 %v3648_v61, %v1334_v7  ;;  %v1393_v7 = vperm.slane %v2459_v59, 0 }
 0x982   : > { %v1340_v34 = vmul.f32 %v1337_v6, %v1337_v6 }
 0x984   : > { %v1343_v25 = vsel %vm366_vm1, %v1340_v34, 0.0 }
 0x985   : > { %v1330_v19 = vpop.xlane.xlu1 %1329  ;;  %1344 = vadd.xlane.f32.xlu2 %v1343_v25 }
 0x986   : > { %v1335_v56 = vmul.f32 %v1330_v19, %v3154_v17  ;;  %v3679_v19 = vld [vmem:[#allocation2 + $0x38] sm:$0xff] }
 0x988   : > { %v1338_v36 = vsub.f32 %v3653_v15, %v1335_v56 }
 0x98a   : > { %v1341_v8 = vmul.f32 %v1338_v36, %v1338_v36 }
 0x98c   : > { %v1346_v9 = vsel %vm366_vm1, %v1341_v8, 0.0  ;;  %v3686_v8 = vld [vmem:[#allocation2 + $0x40] sm:$0xff] }
 0x98d   : > { %1347 = vadd.xlane.f32.xlu1 %v1346_v9  ;;  %v1333_v10 = vpop.xlane.xlu0 %1332 }
 0x98e   : > { %v1336_v0 = vmul.f32 %v1333_v10, %v3154_v17  ;;  %v3691_v10 = vld [vmem:[#allocation2 + $0x68] sm:$0xff] }
 0x990   : > { %v1339_v41 = vsub.f32 %v3658_v33, %v1336_v0 }
 0x992   : > { %v1342_v40 = vmul.f32 %v1339_v41, %v1339_v41 }
 0x994   : > { %v1349_v55 = vsel %vm366_vm1, %v1342_v40, 0.0 }
 0x995   : > { %1350 = vadd.xlane.f32.xlu0 %v1349_v55  ;;  %v3699_v55 = vld [vmem:[#allocation2 + $0x98] sm:$0xff] }
 0x9f8   : > { %v1345_v21 = vpop.xlane.xlu2 %1344 }
 0x9f9   : > { %v1352_v4 = vmul.f32 %v1345_v21, %v3154_v17  ;;  %v3704_v21 = vld [vmem:[#allocation2 + $0xa0] sm:$0xff] }
 0x9fb   : > { %v1355_v52 = vadd.f32 1e-05, %v1352_v4 }
 0x9fd   : > { %2746 = vrsqrt.f32 %v1355_v52  ;;  %vm1364_vm10 = vweird.f32 %v1355_v52 }
 0xa00   : > { %v1348_v11 = vpop.xlane.xlu1 %1347 }
 0xa01   : > { %v1353_v53 = vmul.f32 %v1348_v11, %v3154_v17 }
 0xa03   : > { %v2747_v62 = vpop.eup %2746  ;;  %v1356_v58 = vadd.f32 1e-05, %v1353_v53 }
 0xa04   : > { %v1359_v26 = vmul.f32 %v2747_v62, %v1355_v52  ;;  %vm1365_vm9 = vweird.f32 %v2747_v62 }
 0xa05   : > { %2748 = vrsqrt.f32 %v1356_v58  ;;  %vm1366_vm14 = vmor %vm1364_vm10, %vm1365_vm9  ;;  %vm1374_vm15 = vweird.f32 %v1356_v58 }
 0xa06   : > { %v1360_v54 = vmul.f32 %v2747_v62, %v1359_v26 }
 0xa08   : > { %v1361_v32 = vmul.f32 0.5, %v1360_v54  ;;  %v1351_v24 = vpop.xlane.xlu0 %1350  ;;  %v3721_v54 = vld [vmem:[#allocation2 + $0x50] sm:$0xff] }
 0xa09   : > { %v1354_v63 = vmul.f32 %v1351_v24, %v3154_v17 }
 0xa0a   : > { %v1362_v28 = vsub.f32 1.5, %v1361_v32  ;;  %v3724_v32 = vld [vmem:[#allocation2 + $0x80] sm:$0xff] }
 0xa0b   : > { %v2749_v31 = vpop.eup %2748  ;;  %v1357_v44 = vadd.f32 1e-05, %v1354_v63 }
 0xa0c   : > { %v1369_v30 = vmul.f32 %v2749_v31, %v1356_v58  ;;  %v1363_v23 = vmul.f32 %v2747_v62, %v1362_v28  ;;  %vm1375_vm11 = vweird.f32 %v2749_v31 }
 0xa0d   : > { %2750 = vrsqrt.f32 %v1357_v44  ;;  %vm1376_vm0 = vmor %vm1374_vm15, %vm1375_vm11  ;;  %vm1384_vm3 = vweird.f32 %v1357_v44 }
 0xa0e   : > { %v1370_v29 = vmul.f32 %v2749_v31, %v1369_v30  ;;  %v1367_v18 = vsel %vm1366_vm14, %v2747_v62, %v1363_v23  ;;  %v3734_v30 = vld [vmem:[#allocation2 + $0x88] sm:$0xff]  ;;  %v3737_v23 = vld [vmem:[#allocation2 + $0xb8] sm:$0xff] }
 0xa0f   : > { %v1388_v13 = vmul.f32 %v1367_v18, %v1337_v6  ;;  %v3748_v18 = vld [vmem:[#allocation2 + $0x60] sm:$0xff] }
 0xa10   : > { %v1371_v27 = vmul.f32 0.5, %v1370_v29 }
 0xa12   : > { %v1372_v38 = vsub.f32 1.5, %v1371_v27 }
 0xa13   : > { %v2751_v16 = vpop.eup %2750 }
 0xa14   : > { %v1373_v57 = vmul.f32 %v2749_v31, %v1372_v38  ;;  %v1379_v42 = vmul.f32 %v2751_v16, %v1357_v44  ;;  %vm1385_vm2 = vweird.f32 %v2751_v16  ;;  %v3731_v44 = vld [vmem:[#allocation2 + $0x58] sm:$0xff] }
 0xa15   : > { %vm1386_vm4 = vmor %vm1384_vm3, %vm1385_vm2 }
 0xa16   : > { %v1377_v12 = vsel %vm1376_vm0, %v2749_v31, %v1373_v57  ;;  %v1380_v46 = vmul.f32 %v2751_v16, %v1379_v42  ;;  %v3751_v42 = vld [vmem:[#allocation2 + $0x78] sm:$0xff] }
 0xa17   : > { %v1389_v45 = vmul.f32 %v1377_v12, %v1338_v36 }
 0xa18   : > { %v1381_v14 = vmul.f32 0.5, %v1380_v46  ;;  %v3754_v46 = vld [vmem:[#allocation2 + $0x90] sm:$0xff] }
 0xa19   : > { %v1391_v60 = vpack.c.bf16 %v1389_v45, %v1388_v13 }
 0xa1a   : > { %v1382_v20 = vsub.f32 1.5, %v1381_v14 }
 0xa1b   : > { %2468 = vmatmul.msk.bf16.vlgmr.msra.gmra.mxu1 %vm366_vm1, %v1391_v60 }
 0xa1c   : > { %v1383_v50 = vmul.f32 %v2751_v16, %v1382_v20 }
 0xa1e   : > { %v1387_v5 = vsel %vm1386_vm4, %v2751_v16, %v1383_v50 }
 0xa1f   : > { %v1390_v39 = vmul.f32 %v1387_v5, %v1339_v41  ;;  %v3696_v41 = vld [vmem:[#allocation2 + $0x70] sm:$0xff] }
 0xa21   : > { %v1392_v1 = vpack.c.bf16 %v1390_v39, %v1390_v39  ;;  %v3764_v39 = vld [vmem:[#allocation2 + $0xf0] sm:$0xff] }
 0xa2b   : > { %2469 = vmatmul.msk.bf16.gmra.mxu1 %vm366_vm1, %v1392_v1 }
 0xa98   : > { %v1421_v37 = vpop.f32.mrf.mxu1 }
 0xa99   : > { %v1422_v6 = vadd.f32 %v1421_v37, %v1393_v7 }
 0xa9b   : > { %v3682_v56 = vmul.f32 %v3679_v19, %v1422_v6  ;;  %v3694_v0 = vmul.f32 %v3691_v10, %v1422_v6  ;;  %v3702_v48 = vmul.f32 %v3699_v55, %v1422_v6  ;;  %v3708_v4 = vmul.f32 %v3587_v51, %v1422_v6 }
 0xa9c   : > { %v1433_v51 = vmul.f32 %v3721_v54, %v1422_v6  ;;  %v1439_v24 = vmul.f32 %v3724_v32, %v1422_v6  ;;  %v1445_v63 = vmul.f32 %v3583_v43, %v1422_v6  ;;  %v3729_v31 = vmul.f32 %v3593_v3, %v1422_v6  ;;  %v3745_v43 = vld [vmem:[#allocation2 + $0x48] sm:$0xff] }
 0xaa0   : > { %v1423_v34 = vpop.f32.mrf.mxu1 }
 0xaa1   : > { %v1424_v25 = vadd.f32 %v1423_v34, %v1393_v7 }
 0xaa3   : > { %v3684_v36 = vpack.c.bf16 %v1424_v25, %v1422_v6  ;;  %v3689_v9 = vmul.f32 %v3686_v8, %v1424_v25  ;;  %v1437_v40 = vmul.f32 %v3696_v41, %v1424_v25  ;;  %v1443_v47 = vmul.f32 %v3704_v21, %v1424_v25 }
 0xaa4   : > { %v3711_v52 = vmul.f32 %v3590_v49, %v1424_v25  ;;  %v1434_v28 = vmul.f32 %v3731_v44, %v1424_v25  ;;  %v1440_v29 = vmul.f32 %v3734_v30, %v1424_v25  ;;  %v1446_v27 = vmul.f32 %v3737_v23, %v1424_v25 }
 0xaa5   : > { %1470 = vrot.lane.b32.xlu1 %v3684_v36, %s3033_s11  ;;  %v1454_v11 = vpack.c.bf16 %v3689_v9, %v3682_v56  ;;  %v1457_v53 = vpack.c.bf16 %v1437_v40, %v3694_v0  ;;  %v1460_v62 = vpack.c.bf16 %v1443_v47, %v3702_v48  ;;  %v3741_v38 = vmul.f32 %v3596_v22, %v1424_v25  ;;  %v3757_v22 = vld [vmem:[#allocation2 + $0xa8] sm:$0xff]  ;;  %v3780_v40 = vld [vmem:[%s3270_s15] ss:$0 sm:$0xff]  ;;  %s2283_s15 = sshll.u32 %s2279_s12, 4  ;;  %s2284_s15 = int_to_ptr.hbm [resolvable:$true] %s2283_s15 }
 0xaa6   : > { %v1463_v58 = vpack.c.bf16 %v3711_v52, %v3708_v4  ;;  %s2968_s17 = sshra.s32 %s2284_s15, 4  ;;  %s2969_s17 = int_to_ptr.hbm [resolvable:$true] %s2968_s17 }
 0xaa7   : > { %s2970_s23 = scalar_lea.hbm %s2969_s17, 8  ;;  %p2975_p4 = scmp.lt.s32.totalorder %s2969_s17, %s4149_s5 }
 0xaa8   : > { %v1426_v26 = vpop.f32.mrf.mxu1  ;;  %p2971_p1 = scmp.ne.s32.totalorder %s2969_s17, %s2970_s23  ;;  %p2976_p7 = scmp.lt.s32.totalorder %s2974_s26, %s2970_s23 }
 0xaa9   : > { %v1427_v49 = vadd.f32 %v1426_v26, %v1393_v7 }
 0xaaa   : > { %p2972_p2 = pnand %p2971_p1, %p3103_p5  ;;  %p2977_p8 = por %p2976_p7, %p2975_p4 }
 0xaab   : > { %v3743_v16 = vpack.c.bf16 %v1427_v49, %v1427_v49  ;;  %v1432_v3 = vmul.f32 %v3745_v43, %v1427_v49  ;;  %v1435_v57 = vmul.f32 %v3748_v18, %v1427_v49  ;;  %v1438_v12 = vmul.f32 %v3751_v42, %v1427_v49 }
 0xaac   : > { %v1441_v13 = vmul.f32 %v3754_v46, %v1427_v49  ;;  %v1444_v45 = vmul.f32 %v3757_v22, %v1427_v49  ;;  %v1447_v14 = vmul.f32 %v3600_v35, %v1427_v49  ;;  %v1450_v60 = vmul.f32 %v3603_v2, %v1427_v49  ;;  %p2973_p3 = pneg %p2972_p2 }
 0xaad   : > { %1472 = vrot.lane.b32.xlu2 %v3743_v16, %s3033_s11  ;;  %v1455_v20 = vpack.c.bf16 %v1433_v51, %v1432_v3  ;;  %v1456_v50 = vpack.c.bf16 %v1435_v57, %v1434_v28  ;;  %v1458_v5 = vpack.c.bf16 %v1439_v24, %v1438_v12  ;;  %v1453_v1 = vmul.f32 %v3764_v39, %v1427_v49 }
 0xaae   : > { %v1459_v59 = vpack.c.bf16 %v1441_v13, %v1440_v29  ;;  %v1461_v37 = vpack.c.bf16 %v1445_v63, %v1444_v45  ;;  %v1462_v7 = vpack.c.bf16 %v1447_v14, %v1446_v27  ;;  %v1464_v6 = vpack.c.bf16 %v3729_v31, %v1450_v60  ;;  %p2978_p9 = pnand %p2977_p8, %p2973_p3 }
 0xaaf   : > { %v1465_v34 = vpack.c.bf16 %v1453_v1, %v3741_v38 }
 0xab0   : > { %v1428_v35 = vpop.f32.mrf.mxu1 }
 0xb07   : > { %v1473_v2 = vpop.permute.xlu2 %1472 }
 0xb08   : > { %v1514_v25 = vsel %vm366_vm1, %v1473_v2, 0 }
 0xb09   : > { %1522 = vmatpush.bf16.xpose.msrb.mxu0 %v1514_v25 }
 0xb17   : > { %v1471_v56 = vpop.permute.xlu1 %1470 }
 0xb18   : > { %v1511_v9 = vsel %vm366_vm1, %v1471_v56, 0 }
 0xb19   : > { %1523 = vmatpush.bf16.xpose.msrb.mxu0 %v1511_v9 }
 0xb20   : > { %2470 = vmatmul.msk.bf16.vlgmr.msrb.gmra.mxu0 %vm366_vm1, %v1454_v11 }
 0xb30   : > { %2471 = vmatmul.msk.bf16.gmra.mxu0 %vm366_vm1, %v1455_v20 }
 0xb40   : > { %2472 = vmatmul.msk.bf16.gmra.mxu0 %vm366_vm1, %v1456_v50 }
 0xb50   : > { %2473 = vmatmul.msk.bf16.gmra.mxu0 %vm366_vm1, %v1457_v53 }
 0xb60   : > { %2474 = vmatmul.msk.bf16.gmra.mxu0 %vm366_vm1, %v1458_v5 }
 0xb70   : > { %2475 = vmatmul.msk.bf16.gmra.mxu0 %vm366_vm1, %v1459_v59 }
 0xb80   : > { %2476 = vmatmul.msk.bf16.gmra.mxu0 %vm366_vm1, %v1460_v62 }
 0xb90   : > { %2477 = vmatmul.msk.bf16.gmra.mxu0 %vm366_vm1, %v1461_v37 }
 0xb9d   : > { %v1525_v0 = vpop.f32.mrf.mxu0 }
 0xb9e   : > { %v1526_v48 = vadd.f32 %v3780_v40, %v1525_v0 }
 0xba0   : > { %2478 = vmatmul.msk.bf16.gmra.mxu0 %vm366_vm1, %v1462_v7  ;;  %v1585_v47 = vsel %vm637_vm12, %v1526_v48, -inf }
 0xba1   : > { %1586 = vmax.xlane.f32.xlu0 %v1585_v47 }
 0xba5   : > { %v1527_v11 = vpop.f32.mrf.mxu0 }
 0xba6   : > { %v1528_v53 = vadd.f32 %v3780_v40, %v1527_v11 }
 0xba8   : > { %v1588_v26 = vsel %vm637_vm12, %v1528_v53, -inf }
 0xba9   : > { %1589 = vmax.xlane.f32.xlu0 %v1588_v26 }
 0xbad   : > { %v1530_v51 = vpop.f32.mrf.mxu0 }
 0xbae   : > { %v1531_v62 = vadd.f32 %v3780_v40, %v1530_v51 }
 0xbb0   : > { %2479 = vmatmul.msk.bf16.gmra.mxu0 %vm366_vm1, %v1463_v58  ;;  %v1591_v49 = vsel %vm637_vm12, %v1531_v62, -inf }
 0xbb1   : > { %1592 = vmax.xlane.f32.xlu0 %v1591_v49 }
 0xbb5   : > { %v1532_v24 = vpop.f32.mrf.mxu0 }
 0xbb6   : > { %v3794_v63 = vadd.f32 %v3780_v40, %v1532_v24 }
 0xbb8   : > { %v1594_v31 = vsel %vm637_vm12, %v3794_v63, -inf }
 0xbb9   : > { %1595 = vmax.xlane.f32.xlu2 %v1594_v31 }
 0xbbd   : > { %v1535_v28 = vpop.f32.mrf.mxu0 }
 0xbbe   : > { %v1536_v29 = vadd.f32 %v3780_v40, %v1535_v28 }
 0xbc0   : > { %2480 = vmatmul.msk.bf16.gmra.mxu0 %vm366_vm1, %v1464_v6  ;;  %v1597_v4 = vsel %vm637_vm12, %v1536_v29, -inf }
 0xbc1   : > { %1598 = vmax.xlane.f32.xlu0 %v1597_v4 }
 0xbc5   : > { %v1537_v52 = vpop.f32.mrf.mxu0 }
 0xbc6   : > { %v3802_v58 = vadd.f32 %v3780_v40, %v1537_v52 }
 0xbc8   : > { %v1600_v27 = vsel %vm637_vm12, %v3802_v58, -inf }
 0xbc9   : > { %1601 = vmax.xlane.f32.xlu1 %v1600_v27 }
 0xbcd   : > { %v1540_v38 = vpop.f32.mrf.mxu0 }
 0xbce   : > { %v3807_v3 = vadd.f32 %v3780_v40, %v1540_v38 }
 0xbd0   : > { %2481 = vmatmul.msk.bf16.gmra.mxu0 %vm366_vm1, %v1465_v34  ;;  %v1603_v57 = vsel %vm637_vm12, %v3807_v3, -inf }
 0xbd1   : > { %1863 = vrot.lane.b32.xlu2 %v3743_v16, %s3034_s16  ;;  %1604 = vmax.xlane.f32.xlu0 %v1603_v57 }
 0xbd5   : > { %v1542_v12 = vpop.f32.mrf.mxu0 }
 0xbd6   : > { %v3815_v13 = vadd.f32 %v3780_v40, %v1542_v12 }
 0xbd8   : > { %v1606_v45 = vsel %vm637_vm12, %v3815_v13, -inf }
 0xbd9   : > { %1607 = vmax.xlane.f32.xlu0 %v1606_v45 }
 0xbdd   : > { %v1545_v14 = vpop.f32.mrf.mxu0 }
 0xbde   : > { %v3820_v60 = vadd.f32 %v3780_v40, %v1545_v14 }
 0xbe0   : > { %v1609_v20 = vsel %vm637_vm12, %v3820_v60, -inf }
 0xbe1   : > { %1610 = vmax.xlane.f32.xlu1 %v1609_v20 }
 0xbe5   : > { %v1547_v50 = vpop.f32.mrf.mxu0 }
 0xbe6   : > { %v3825_v16 = vadd.f32 %v3780_v40, %v1547_v50 }
 0xbe8   : > { %v1612_v5 = vsel %vm637_vm12, %v3825_v16, -inf }
 0xbe9   : > { %1613 = vmax.xlane.f32.xlu1 %v1612_v5 }
 0xbed   : > { %v1550_v1 = vpop.f32.mrf.mxu0 }
 0xbee   : > { %v3830_v59 = vadd.f32 %v3780_v40, %v1550_v1 }
 0xbf0   : > { %v1615_v37 = vsel %vm637_vm12, %v3830_v59, -inf }
 0xbf5   : > { %v1552_v0 = vpop.f32.mrf.mxu0 }
 0xbf6   : > { %v3847_v28 = vadd.f32 %v3780_v40, %v1552_v0 }
 0xbf8   : > { %v1618_v12 = vsel %vm637_vm12, %v3847_v28, -inf }
 0xbfa   : > { %1616 = vmax.xlane.f32.xlu2 %v1615_v37 }
 0xbfd   : > { %v1555_v49 = vpop.f32.mrf.mxu0 }
 0xc05   : > { %v1557_v38 = vpop.f32.mrf.mxu0 }
 0xc0d   : > { %v1560_v5 = vpop.f32.mrf.mxu0 }
 0xc14   : > { %v1587_v7 = vpop.xlane.xlu0 %1586 }
 0xc15   : > { %v1657_v6 = vsub.f32 %v1526_v48, %v1587_v7 }
 0xc17   : > { %v1681_v34 = vmul.f32 1.442695, %v1657_v6  ;;  %v3864_v6 = vadd.f32 %v3780_v40, %v1555_v49 }
 0xc19   : > { %2752 = vpow2.f32 %v1681_v34 }
 0xc1c   : > { %v1590_v35 = vpop.xlane.xlu0 %1589 }
 0xc1d   : > { %v1658_v2 = vsub.f32 %v1528_v53, %v1590_v35 }
 0xc1f   : > { %v3834_v25 = vpop.eup %2752  ;;  %v1683_v56 = vmul.f32 1.442695, %v1658_v2  ;;  %v1621_v2 = vsel %vm637_vm12, %v3864_v6, -inf }
 0xc20   : > { %v1729_v9 = vsel %vm637_vm12, %v3834_v25, 0.0 }
 0xc21   : > { %2754 = vpow2.f32 %v1683_v56  ;;  %1730 = vadd.xlane.f32.xlu0 %v1729_v9  ;;  %v3870_v56 = vadd.f32 %v3780_v40, %v1557_v38 }
 0xc24   : > { %v1593_v47 = vpop.xlane.xlu0 %1592 }
 0xc25   : > { %v1659_v11 = vsub.f32 %v1531_v62, %v1593_v47 }
 0xc27   : > { %v3838_v26 = vpop.eup %2754  ;;  %v1685_v51 = vmul.f32 1.442695, %v1659_v11 }
 0xc28   : > { %v1732_v48 = vsel %vm637_vm12, %v3838_v26, 0.0 }
 0xc29   : > { %2756 = vpow2.f32 %v1685_v51  ;;  %1733 = vadd.xlane.f32.xlu0 %v1732_v48 }
 0xc2c   : > { %v1596_v53 = vpop.xlane.xlu2 %1595 }
 0xc2d   : > { %v1660_v47 = vsub.f32 %v3794_v63, %v1596_v53 }
 0xc2f   : > { %v3842_v24 = vpop.eup %2756 }
 0xc30   : > { %v1735_v31 = vsel %vm637_vm12, %v3842_v24, 0.0 }
 0xc31   : > { %1736 = vadd.xlane.f32.xlu1 %v1735_v31  ;;  %v1687_v31 = vmul.f32 1.442695, %v1660_v47 }
 0xc34   : > { %v1864_v62 = vpop.permute.xlu2 %1863  ;;  %v1599_v4 = vpop.xlane.xlu0 %1598 }
 0xc35   : > { %v1903_v52 = vsel %vm955_vm13, %v1864_v62, 0  ;;  %v1661_v27 = vsub.f32 %v1536_v29, %v1599_v4  ;;  %v3881_v62 = vadd.f32 %v3780_v40, %v1560_v5 }
 0xc36   : > { %1911 = vmatpush.bf16.msrb.mxu1 %v1903_v52 }
 0xc37   : > { %v1689_v57 = vmul.f32 1.442695, %v1661_v27  ;;  %v1627_v38 = vsel %vm637_vm12, %v3881_v62, -inf }
 0xc39   : > { %2758 = vpow2.f32 %v1689_v57  ;;  %1619 = vmax.xlane.f32.xlu1 %v1618_v12 }
 0xc3c   : > { %v1602_v45 = vpop.xlane.xlu1 %1601 }
 0xc3d   : > { %v1662_v14 = vsub.f32 %v3802_v58, %v1602_v45  ;;  %1861 = vrot.lane.b32.xlu0 %v3684_v36, %s3034_s16  ;;  %v1562_v58 = vpop.f32.mrf.mxu0  ;;  %s2269_s16 = scalar_lea.sflag [#allocation4], %s261_s7 }
 0xc3e   : > { %v3915_v47 = vadd.f32 %v3780_v40, %v1562_v58 }
 0xc3f   : > { %v3855_v20 = vpop.eup %2758  ;;  %v1691_v50 = vmul.f32 1.442695, %v1662_v14 }
 0xc40   : > { %v1741_v29 = vsel %vm637_vm12, %v3855_v20, 0.0 }
 0xc41   : > { %2760 = vpow2.f32 %v1691_v50  ;;  %1742 = vadd.xlane.f32.xlu1 %v1741_v29 }
 0xc44   : > { %v1605_v1 = vpop.xlane.xlu0 %1604 }
 0xc45   : > { %v1565_v0 = vpop.f32.mrf.mxu0  ;;  %v1663_v63 = vsub.f32 %v3807_v3, %v1605_v1 }
 0xc47   : > { %v3859_v37 = vpop.eup %2760  ;;  %v1693_v12 = vmul.f32 1.442695, %v1663_v63 }
 0xc48   : > { %v1744_v7 = vsel %vm637_vm12, %v3859_v37, 0.0 }
 0xc49   : > { %1745 = vadd.xlane.f32.xlu1 %v1744_v7 }
 0xc4c   : > { %v1608_v36 = vpop.xlane.xlu0 %1607 }
 0xc4d   : > { %v1664_v34 = vsub.f32 %v3815_v13, %v1608_v36  ;;  %v1624_v13 = vsel %vm637_vm12, %v3870_v56, -inf  ;;  %v1567_v52 = vpop.f32.mrf.mxu0 }
 0xc4e   : > { %v3894_v3 = vadd.f32 %v3780_v40, %v1567_v52 }
 0xc4f   : > { %v1695_v35 = vmul.f32 1.442695, %v1664_v34 }
 0xc50   : > { %v1636_v29 = vsel %vm637_vm12, %v3894_v3, -inf }
 0xc51   : > { %2762 = vpow2.f32 %v1695_v35  ;;  %1622 = vmax.xlane.f32.xlu1 %v1621_v2 }
 0xc54   : > { %v1611_v9 = vpop.xlane.xlu1 %1610 }
 0xc55   : > { %v1665_v11 = vsub.f32 %v3820_v60, %v1611_v9  ;;  %v1570_v5 = vpop.f32.mrf.mxu0 }
 0xc56   : > { %v3907_v7 = vadd.f32 %v3780_v40, %v1570_v5 }
 0xc57   : > { %v3874_v51 = vpop.eup %2762  ;;  %v1697_v48 = vmul.f32 1.442695, %v1665_v11  ;;  %v1630_v11 = vsel %vm637_vm12, %v3915_v47, -inf }
 0xc58   : > { %v1750_v49 = vsel %vm637_vm12, %v3874_v51, 0.0  ;;  %v1639_v9 = vsel %vm637_vm12, %v3907_v7, -inf }
 0xc59   : > { %2764 = vpow2.f32 %v1697_v48  ;;  %1625 = vmax.xlane.f32.xlu1 %v1624_v13  ;;  %1751 = vadd.xlane.f32.xlu2 %v1750_v49  ;;  %v3924_v49 = vadd.f32 %v3780_v40, %v1565_v0 }
 0xc5a   : > { %2766 = vpow2.f32 %v1687_v31 }
 0xc5b   : > { %v1633_v58 = vsel %vm637_vm12, %v3924_v49, -inf }
 0xc5c   : > { %v1614_v4 = vpop.xlane.xlu1 %1613 }
 0xc5d   : > { %v1666_v60 = vsub.f32 %v3825_v16, %v1614_v4 }
 0xc5f   : > { %v3885_v53 = vpop.eup %2764  ;;  %v1699_v27 = vmul.f32 1.442695, %v1666_v60 }
 0xc60   : > { %v1753_v57 = vsel %vm637_vm12, %v3885_v53, 0.0  ;;  %v3891_v45 = vpop.eup %2766 }
 0xc61   : > { %2768 = vpow2.f32 %v1699_v27  ;;  %1628 = vmax.xlane.f32.xlu1 %v1627_v38  ;;  %1754 = vadd.xlane.f32.xlu2 %v1753_v57  ;;  %v1738_v16 = vsel %vm637_vm12, %v3891_v45, 0.0 }
 0xc62   : > { %2770 = vpow2.f32 %v1693_v12 }
 0xc67   : > { %v3898_v14 = vpop.eup %2768  ;;  %1739 = vadd.xlane.f32.xlu0 %v1738_v16 }
 0xc68   : > { %v1756_v50 = vsel %vm637_vm12, %v3898_v14, 0.0  ;;  %v3904_v1 = vpop.eup %2770 }
 0xc69   : > { %1757 = vadd.xlane.f32.xlu1 %v1756_v50  ;;  %1637 = vmax.xlane.f32.xlu2 %v1636_v29  ;;  %v1747_v35 = vsel %vm637_vm12, %v3904_v1, 0.0 }
 0xc6d   : > { %v1617_v36 = vpop.xlane.xlu2 %1616 }
 0xc6e   : > { %v1667_v34 = vsub.f32 %v3830_v59, %v1617_v36  ;;  %v1572_v59 = vpop.f32.mrf.mxu0 }
 0xc6f   : > { %1748 = vadd.xlane.f32.xlu0 %v1747_v35  ;;  %v3927_v31 = vadd.f32 %v3780_v40, %v1572_v59 }
 0xc70   : > { %v1701_v2 = vmul.f32 1.442695, %v1667_v34 }
 0xc71   : > { %1640 = vmax.xlane.f32.xlu2 %v1639_v9  ;;  %v1642_v4 = vsel %vm637_vm12, %v3927_v31, -inf }
 0xc72   : > { %2772 = vpow2.f32 %v1701_v2 }
 0xc76   : > { %v1575_v63 = vpop.f32.mrf.mxu0 }
 0xc77   : > { %1631 = vmax.xlane.f32.xlu0 %v1630_v11  ;;  %v3934_v60 = vadd.f32 %v3780_v40, %v1575_v63 }
 0xc78   : > { %v3919_v48 = vpop.eup %2772 }
 0xc79   : > { %v1759_v13 = vsel %vm637_vm12, %v3919_v48, 0.0  ;;  %v1645_v0 = vsel %vm637_vm12, %v3934_v60, -inf }
 0xc7a   : > { %1760 = vadd.xlane.f32.xlu1 %v1759_v13 }
 0xc7f   : > { %1634 = vmax.xlane.f32.xlu0 %v1633_v58 }
 0xc82   : > { %1643 = vmax.xlane.f32.xlu1 %v1642_v4  ;;  %v1577_v4 = vpop.f32.mrf.mxu0 }
 0xc8a   : > { %1646 = vmax.xlane.f32.xlu1 %v1645_v0 }
 0xc94   : > { %v1731_v52 = vpop.xlane.xlu0 %1730 }
 0xc9c   : > { %v1734_v27 = vpop.xlane.xlu0 %1733 }
 0xc9d   : > { %2774 = vrcp.f32 %v1734_v27 }
 0xc9e   : > { %2776 = vrcp.f32 %v1731_v52 }
 0xca3   : > { %v2775_v57 = vpop.eup %2774 }
 0xca4   : > { %v1737_v38 = vpop.xlane.xlu1 %1736  ;;  %v2777_v12 = vpop.eup %2776  ;;  %v1826_v50 = vmul.f32 %v2775_v57, %v3838_v26  ;;  %v3955_v57 = vadd.f32 %v3780_v40, %v1577_v4 }
 0xca5   : > { %v1825_v5 = vmul.f32 %v2777_v12, %v3834_v25 }
 0xca7   : > { %v1849_v35 = vpack.c.bf16 %v1826_v50, %v1825_v5  ;;  %v1648_v5 = vsel %vm637_vm12, %v3955_v57, -inf }
 0xcac   : > { %v1620_v16 = vpop.xlane.xlu1 %1619 }
 0xcad   : > { %v1668_v29 = vsub.f32 %v3847_v28, %v1620_v16 }
 0xcaf   : > { %v1703_v36 = vmul.f32 1.442695, %v1668_v29  ;;  %v1862_v34 = vpop.permute.xlu0 %1861  ;;  %v1580_v29 = vpop.f32.mrf.mxu0 }
 0xcb0   : > { %1912 = vmatpush.bf16.msrb.mxu1 %v1862_v34 }
 0xcb1   : > { %2778 = vpow2.f32 %v1703_v36 }
 0xcb3   : > { %2482 = vmatmul.msk.bf16.vlgmr.msrb.gmra.mxu1 %vm637_vm12, %v1849_v35  ;;  %v3967_v35 = vadd.f32 %v3780_v40, %v1580_v29 }
 0xcb4   : > { %v1743_v2 = vpop.xlane.xlu1 %1742 }
 0xcb7   : > { %v3942_v9 = vpop.eup %2778 }
 0xcb8   : > { %v1762_v11 = vsel %vm637_vm12, %v3942_v9, 0.0 }
 0xcb9   : > { %1763 = vadd.xlane.f32.xlu0 %v1762_v11 }
 0xcbc   : > { %v1746_v59 = vpop.xlane.xlu1 %1745 }
 0xcc4   : > { %v1623_v26 = vpop.xlane.xlu1 %1622 }
 0xcc5   : > { %v1669_v28 = vsub.f32 %v3864_v6, %v1623_v26 }
 0xcc7   : > { %v1705_v13 = vmul.f32 1.442695, %v1669_v28 }
 0xcc9   : > { %2780 = vpow2.f32 %v1705_v13  ;;  %v1651_v13 = vsel %vm637_vm12, %v3967_v35, -inf }
 0xccc   : > { %v1626_v25 = vpop.xlane.xlu1 %1625  ;;  %v3947_v58 = vpop.xlane.xlu2 %1751 }
 0xccd   : > { %v1670_v63 = vsub.f32 %v3870_v56, %v1626_v25 }
 0xccf   : > { %v3950_v0 = vpop.eup %2780  ;;  %v1707_v52 = vmul.f32 1.442695, %v1670_v63  ;;  %v1582_v63 = vpop.f32.mrf.mxu0 }
 0xcd0   : > { %v1765_v27 = vsel %vm637_vm12, %v3950_v0, 0.0 }
 0xcd1   : > { %2782 = vpow2.f32 %v1707_v52  ;;  %1766 = vadd.xlane.f32.xlu0 %v1765_v27 }
 0xcd2   : > { %2784 = vrcp.f32 %v1737_v38 }
 0xcd4   : > { %v1629_v6 = vpop.xlane.xlu1 %1628  ;;  %v3957_v12 = vpop.xlane.xlu2 %1754 }
 0xcd5   : > { %v1671_v16 = vsub.f32 %v3881_v62, %v1629_v6  ;;  %v3979_v6 = vadd.f32 %v3780_v40, %v1582_v63 }
 0xcd7   : > { %v3960_v50 = vpop.eup %2782  ;;  %v1709_v56 = vmul.f32 1.442695, %v1671_v16 }
 0xcd8   : > { %v1768_v36 = vsel %vm637_vm12, %v3960_v50, 0.0  ;;  %v2785_v26 = vpop.eup %2784 }
 0xcd9   : > { %2786 = vpow2.f32 %v1709_v56  ;;  %1649 = vmax.xlane.f32.xlu0 %v1648_v5  ;;  %1769 = vadd.xlane.f32.xlu2 %v1768_v36  ;;  %v1827_v27 = vmul.f32 %v2785_v26, %v3842_v24  ;;  %v1654_v24 = vsel %vm637_vm12, %v3979_v6, -inf }
 0xcda   : > { %v1740_v34 = vpop.xlane.xlu0 %1739 }
 0xcdb   : > { %2788 = vrcp.f32 %v1740_v34 }
 0xcdc   : > { %v1638_v62 = vpop.xlane.xlu2 %1637  ;;  %v1758_v56 = vpop.xlane.xlu1 %1757 }
 0xcdd   : > { %v1674_v11 = vsub.f32 %v3894_v3, %v1638_v62 }
 0xcdf   : > { %v3970_v28 = vpop.eup %2786  ;;  %v1715_v38 = vmul.f32 1.442695, %v1674_v11 }
 0xce0   : > { %v1771_v25 = vsel %vm637_vm12, %v3970_v28, 0.0 }
 0xce1   : > { %v2789_v4 = vpop.eup %2788  ;;  %2790 = vpow2.f32 %v1715_v38  ;;  %1652 = vmax.xlane.f32.xlu0 %v1651_v13  ;;  %1772 = vadd.xlane.f32.xlu2 %v1771_v25 }
 0xce2   : > { %v1749_v52 = vpop.xlane.xlu0 %1748  ;;  %v1828_v3 = vmul.f32 %v2789_v4, %v3891_v45  ;;  %2792 = vrcp.f32 %v1746_v59 }
 0xce3   : > { %2794 = vrcp.f32 %v1743_v2 }
 0xce4   : > { %v1641_v16 = vpop.xlane.xlu2 %1640  ;;  %v1850_v29 = vpack.c.bf16 %v1828_v3, %v1827_v27 }
 0xce5   : > { %v1675_v5 = vsub.f32 %v3907_v7, %v1641_v16 }
 0xce6   : > { %2483 = vmatmul.msk.bf16.gmra.mxu1 %vm637_vm12, %v1850_v29 }
 0xce7   : > { %v3983_v36 = vpop.eup %2790  ;;  %v1717_v34 = vmul.f32 1.442695, %v1675_v5 }
 0xce8   : > { %v1780_v45 = vsel %vm637_vm12, %v3983_v36, 0.0  ;;  %v2793_v7 = vpop.eup %2792 }
 0xce9   : > { %2796 = vpow2.f32 %v1717_v34  ;;  %1655 = vmax.xlane.f32.xlu2 %v1654_v24  ;;  %1781 = vadd.xlane.f32.xlu0 %v1780_v45  ;;  %v2795_v38 = vpop.eup %2794  ;;  %v1830_v59 = vmul.f32 %v2793_v7, %v3859_v37 }
 0xcea   : > { %v1632_v40 = vpop.xlane.xlu0 %1631  ;;  %v1829_v4 = vmul.f32 %v2795_v38, %v3855_v20 }
 0xceb   : > { %v1672_v62 = vsub.f32 %v3915_v47, %v1632_v40 }
 0xcec   : > { %v1851_v27 = vpack.c.bf16 %v1830_v59, %v1829_v4 }
 0xced   : > { %v1711_v11 = vmul.f32 1.442695, %v1672_v62  ;;  %v1761_v26 = vpop.xlane.xlu1 %1760 }
 0xcef   : > { %v3990_v13 = vpop.eup %2796  ;;  %2798 = vpow2.f32 %v1711_v11 }
 0xcf0   : > { %v1783_v2 = vsel %vm637_vm12, %v3990_v13, 0.0  ;;  %2800 = vrcp.f32 %v1749_v52 }
 0xcf1   : > { %1784 = vadd.xlane.f32.xlu2 %v1783_v2 }
 0xcf2   : > { %v1635_v25 = vpop.xlane.xlu0 %1634 }
 0xcf3   : > { %v1673_v63 = vsub.f32 %v3924_v49, %v1635_v25 }
 0xcf5   : > { %v3997_v47 = vpop.eup %2798  ;;  %v1713_v3 = vmul.f32 1.442695, %v1673_v63  ;;  %v1644_v16 = vpop.xlane.xlu1 %1643 }
 0xcf6   : > { %v1676_v29 = vsub.f32 %v3927_v31, %v1644_v16  ;;  %2484 = vmatmul.msk.bf16.gmra.mxu1 %vm637_vm12, %v1851_v27  ;;  %v1774_v5 = vsel %vm637_vm12, %v3997_v47, 0.0  ;;  %v2801_v37 = vpop.eup %2800 }
 0xcf7   : > { %2802 = vpow2.f32 %v1713_v3  ;;  %1775 = vadd.xlane.f32.xlu1 %v1774_v5  ;;  %v1831_v40 = vmul.f32 %v2801_v37, %v3904_v1 }
 0xcf8   : > { %2804 = vrcp.f32 %v3947_v58  ;;  %v1719_v20 = vmul.f32 1.442695, %v1676_v29 }
 0xcfa   : > { %2806 = vpow2.f32 %v1719_v20 }
 0xcfd   : > { %v4004_v49 = vpop.eup %2802  ;;  %v1647_v34 = vpop.xlane.xlu1 %1646 }
 0xcfe   : > { %v1677_v24 = vsub.f32 %v3934_v60, %v1647_v34  ;;  %v1777_v31 = vsel %vm637_vm12, %v4004_v49, 0.0  ;;  %v2805_v52 = vpop.eup %2804 }
 0xcff   : > { %1778 = vadd.xlane.f32.xlu1 %v1777_v31  ;;  %v1832_v62 = vmul.f32 %v2805_v52, %v3874_v51 }
 0xd00   : > { %v1721_v45 = vmul.f32 1.442695, %v1677_v24  ;;  %v4011_v58 = vpop.eup %2806 }
 0xd01   : > { %v1852_v7 = vpack.c.bf16 %v1832_v62, %v1831_v40  ;;  %v1786_v11 = vsel %vm637_vm12, %v4011_v58, 0.0 }
 0xd02   : > { %2808 = vpow2.f32 %v1721_v45 }
 0xd03   : > { %2810 = vrcp.f32 %v1758_v56 }
 0xd04   : > { %2812 = vrcp.f32 %v3957_v12 }
 0xd05   : > { %2814 = vrcp.f32 %v1761_v26 }
 0xd06   : > { %2485 = vmatmul.msk.bf16.gmra.mxu1 %vm637_vm12, %v1852_v7 }
 0xd07   : > { %1787 = vadd.xlane.f32.xlu1 %v1786_v11 }
 0xd08   : > { %v4016_v60 = vpop.eup %2808 }
 0xd09   : > { %v1789_v1 = vsel %vm637_vm12, %v4016_v60, 0.0  ;;  %v2811_v38 = vpop.eup %2810 }
 0xd0a   : > { %1790 = vadd.xlane.f32.xlu0 %v1789_v1  ;;  %v2813_v51 = vpop.eup %2812  ;;  %v1834_v2 = vmul.f32 %v2811_v38, %v3898_v14 }
 0xd0b   : > { %v1833_v59 = vmul.f32 %v2813_v51, %v3885_v53  ;;  %v2815_v4 = vpop.eup %2814 }
 0xd0c   : > { %v1835_v12 = vmul.f32 %v2815_v4, %v3919_v48 }
 0xd0d   : > { %v1853_v25 = vpack.c.bf16 %v1834_v2, %v1833_v59 }
 0xd16   : > { %2486 = vmatmul.msk.bf16.gmra.mxu1 %vm637_vm12, %v1853_v25 }
 0xd2c   : > { %v1764_v56 = vpop.xlane.xlu0 %1763 }
 0xd2d   : > { %2816 = vrcp.f32 %v1764_v56 }
 0xd30   : > { %v1914_v20 = vpop.f32.mrf.mxu1 }
 0xd33   : > { %v2817_v63 = vpop.eup %2816 }
 0xd34   : > { %v1836_v27 = vmul.f32 %v2817_v63, %v3942_v9 }
 0xd36   : > { %v1854_v3 = vpack.c.bf16 %v1836_v27, %v1835_v12 }
 0xd38   : > { %2487 = vmatmul.msk.bf16.gmra.mxu1 %vm637_vm12, %v1854_v3  ;;  %v1916_v62 = vpop.f32.mrf.mxu1 }
 0xd44   : > { %v1767_v16 = vpop.xlane.xlu0 %1766 }
 0xd45   : > { %2818 = vrcp.f32 %v1767_v16  ;;  %v1975_v16 = vmul.f32 %v3686_v8, %v1916_v62 }
 0xd4b   : > { %v2819_v26 = vpop.eup %2818 }
 0xd4c   : > { %v1770_v14 = vpop.xlane.xlu2 %1769  ;;  %v1650_v29 = vpop.xlane.xlu0 %1649  ;;  %v1837_v48 = vmul.f32 %v2819_v26, %v3950_v0 }
 0xd4d   : > { %2820 = vrcp.f32 %v1770_v14  ;;  %v1678_v53 = vsub.f32 %v3955_v57, %v1650_v29 }
 0xd4f   : > { %v1723_v5 = vmul.f32 1.442695, %v1678_v53 }
 0xd51   : > { %2822 = vpow2.f32 %v1723_v5 }
 0xd53   : > { %v2821_v37 = vpop.eup %2820 }
 0xd54   : > { %v1773_v34 = vpop.xlane.xlu2 %1772  ;;  %v1653_v24 = vpop.xlane.xlu0 %1652  ;;  %v1838_v9 = vmul.f32 %v2821_v37, %v3960_v50 }
 0xd55   : > { %v1679_v31 = vsub.f32 %v3967_v35, %v1653_v24 }
 0xd56   : > { %v1855_v52 = vpack.c.bf16 %v1838_v9, %v1837_v48 }
 0xd57   : > { %v4031_v45 = vpop.eup %2822  ;;  %v1725_v40 = vmul.f32 1.442695, %v1679_v31 }
 0xd58   : > { %2488 = vmatmul.msk.bf16.gmra.mxu1 %vm637_vm12, %v1855_v52  ;;  %v1792_v57 = vsel %vm637_vm12, %v4031_v45, 0.0 }
 0xd59   : > { %2824 = vpow2.f32 %v1725_v40  ;;  %1793 = vadd.xlane.f32.xlu2 %v1792_v57 }
 0xd5c   : > { %v1656_v7 = vpop.xlane.xlu2 %1655  ;;  %v1782_v5 = vpop.xlane.xlu0 %1781 }
 0xd5d   : > { %v1680_v11 = vsub.f32 %v3979_v6, %v1656_v7  ;;  %v1974_v6 = vmul.f32 %v3679_v19, %v1914_v20 }
 0xd5f   : > { %v4037_v0 = vpop.eup %2824  ;;  %v1727_v50 = vmul.f32 1.442695, %v1680_v11 }
 0xd60   : > { %v1795_v35 = vsel %vm637_vm12, %v4037_v0, 0.0 }
 0xd61   : > { %2826 = vpow2.f32 %v1727_v50  ;;  %1796 = vadd.xlane.f32.xlu1 %v1795_v35 }
 0xd62   : > { %2828 = vrcp.f32 %v1773_v34 }
 0xd63   : > { %v1919_v1 = vpop.f32.mrf.mxu1 }
 0xd64   : > { %v1785_v31 = vpop.xlane.xlu2 %1784 }
 0xd67   : > { %v4041_v38 = vpop.eup %2826 }
 0xd68   : > { %v1798_v51 = vsel %vm637_vm12, %v4041_v38, 0.0  ;;  %v2829_v4 = vpop.eup %2828 }
 0xd69   : > { %1799 = vadd.xlane.f32.xlu0 %v1798_v51  ;;  %v1839_v12 = vmul.f32 %v2829_v4, %v3970_v28 }
 0xd6a   : > { %v1776_v2 = vpop.xlane.xlu1 %1775 }
 0xd6b   : > { %2830 = vrcp.f32 %v1776_v2  ;;  %v1921_v59 = vpop.f32.mrf.mxu1  ;;  %v2550_v2 = vld [vmem:[#allocation5 + $0x68] sm:$0xff] }
 0xd6c   : > { %v1977_v25 = vmul.f32 %v3721_v54, %v1921_v59  ;;  %v1976_v54 = vmul.f32 %v3745_v43, %v1919_v1  ;;  %2046 = vmatpush.bf16.msra.mxu3 %v2550_v2 }
 0xd6e   : > { %v1998_v56 = vadd.f32 %v1977_v25, %v1974_v6 }
 0xd71   : > { %v2831_v63 = vpop.eup %2830 }
 0xd72   : > { %v1840_v27 = vmul.f32 %v2831_v63, %v3997_v47  ;;  %v1779_v14 = vpop.xlane.xlu1 %1778 }
 0xd73   : > { %v1924_v3 = vpop.f32.mrf.mxu1  ;;  %2832 = vrcp.f32 %v1779_v14 }
 0xd74   : > { %v1978_v29 = vmul.f32 %v3731_v44, %v1924_v3  ;;  %v1856_v53 = vpack.c.bf16 %v1840_v27, %v1839_v12  ;;  %2834 = vrcp.f32 %v1782_v5 }
 0xd76   : > { %v1999_v26 = vadd.f32 %v1978_v29, %v1975_v16  ;;  %2489 = vmatmul.msk.bf16.gmra.mxu1 %vm637_vm12, %v1856_v53 }
 0xd79   : > { %v2833_v20 = vpop.eup %2832 }
 0xd7a   : > { %v2835_v37 = vpop.eup %2834  ;;  %v1841_v8 = vmul.f32 %v2833_v20, %v4004_v49  ;;  %v1788_v24 = vpop.xlane.xlu1 %1787 }
 0xd7b   : > { %v1926_v19 = vpop.f32.mrf.mxu1  ;;  %v1842_v34 = vmul.f32 %v2835_v37, %v3983_v36  ;;  %2836 = vrcp.f32 %v1788_v24 }
 0xd7c   : > { %v1979_v28 = vmul.f32 %v3748_v18, %v1926_v19  ;;  %2838 = vrcp.f32 %v1785_v31  ;;  %v2887_v31 = vld [vmem:[#allocation2 + $0xc8] sm:$0xff] }
 0xd7d   : > { %v1857_v9 = vpack.c.bf16 %v1842_v34, %v1841_v8 }
 0xd7e   : > { %v2000_v47 = vadd.f32 %v1979_v28, %v1976_v54 }
 0xd81   : > { %v2837_v40 = vpop.eup %2836 }
 0xd82   : > { %v2839_v62 = vpop.eup %2838  ;;  %v1844_v49 = vmul.f32 %v2837_v40, %v4011_v58 }
 0xd83   : > { %v1929_v44 = vpop.f32.mrf.mxu1  ;;  %v1843_v36 = vmul.f32 %v2839_v62, %v3990_v13 }
 0xd84   : > { %v1980_v48 = vmul.f32 %v3691_v10, %v1929_v44 }
 0xd85   : > { %v1858_v11 = vpack.c.bf16 %v1844_v49, %v1843_v36 }
 0xd86   : > { %v2001_v52 = vadd.f32 %v1998_v56, %v1980_v48  ;;  %2490 = vmatmul.msk.bf16.gmra.mxu1 %vm637_vm12, %v1857_v9  ;;  %v1791_v56 = vpop.xlane.xlu0 %1790  ;;  %v2886_v9 = vld [vmem:[#allocation2 + $0xb0] sm:$0xff] }
 0xd87   : > { %2840 = vrcp.f32 %v1791_v56 }
 0xd8b   : > { %v1931_v43 = vpop.f32.mrf.mxu1 }
 0xd8c   : > { %v1981_v18 = vmul.f32 %v3696_v41, %v1931_v43  ;;  %v2888_v43 = vld [vmem:[#allocation2 + $0xd0] sm:$0xff] }
 0xd8d   : > { %v2841_v4 = vpop.eup %2840 }
 0xd8e   : > { %v2002_v57 = vadd.f32 %v1999_v26, %v1981_v18  ;;  %v1845_v12 = vmul.f32 %v2841_v4, %v4016_v60  ;;  %v4082_v4 = vld [vmem:[%s4148_s4 + $0x8] sm:$0xff] }
 0xd93   : > { %v1934_v7 = vpop.f32.mrf.mxu1 }
 0xd94   : > { %v1982_v10 = vmul.f32 %v3751_v42, %v1934_v7 }
 0xd96   : > { %v2003_v50 = vadd.f32 %v2000_v47, %v1982_v10  ;;  %2491 = vmatmul.msk.bf16.gmra.mxu1 %vm637_vm12, %v1858_v11  ;;  %v2549_v47 = vld [vmem:[#allocation5 + $0x60] sm:$0xff]  ;;  %v2890_v10 = vld [vmem:[#allocation2 + $0xe8] sm:$0xff] }
 0xd97   : > { %2047 = vmatpush.bf16.msra.mxu3 %v2549_v47 }
 0xd9b   : > { %v1936_v35 = vpop.f32.mrf.mxu1 }
 0xd9c   : > { %v1983_v1 = vmul.f32 %v3724_v32, %v1936_v35 }
 0xd9e   : > { %v2004_v51 = vadd.f32 %v2001_v52, %v1983_v1 }
 0xdb5   : > { %v1939_v41 = vpop.f32.mrf.mxu1 }
 0xdb6   : > { %v1984_v59 = vmul.f32 %v3734_v30, %v1939_v41  ;;  %v2892_v41 = vld [vmem:[#allocation2 + $0xd8] sm:$0xff] }
 0xdb8   : > { %v2005_v6 = vadd.f32 %v2002_v57, %v1984_v59  ;;  %v2889_v57 = vld [vmem:[#allocation2 + $0xe0] sm:$0xff] }
 0xdbd   : > { %v1941_v58 = vpop.f32.mrf.mxu1 }
 0xdbe   : > { %v1985_v13 = vmul.f32 %v3754_v46, %v1941_v58 }
 0xdc0   : > { %v2006_v25 = vadd.f32 %v2003_v50, %v1985_v13 }
 0xdcc   : > { %v1794_v42 = vpop.xlane.xlu2 %1793 }
 0xdcd   : > { %2842 = vrcp.f32 %v1794_v42  ;;  %v2552_v42 = vld [vmem:[#allocation5 + $0x78] sm:$0xff] }
 0xdce   : > { %2154 = vmatpush.bf16.msra.mxu2 %v2552_v42 }
 0xdd3   : > { %v2843_v63 = vpop.eup %2842 }
 0xdd4   : > { %v1846_v32 = vmul.f32 %v2843_v63, %v4031_v45  ;;  %v1797_v30 = vpop.xlane.xlu1 %1796  ;;  %v2021_v63 = vperm.slane %v4082_v4, 1 }
 0xdd5   : > { %v1944_v27 = vpop.f32.mrf.mxu1  ;;  %2844 = vrcp.f32 %v1797_v30 }
 0xdd6   : > { %v1986_v3 = vmul.f32 %v3699_v55, %v1944_v27  ;;  %v1859_v16 = vpack.c.bf16 %v1846_v32, %v1845_v12 }
 0xdd8   : > { %v2007_v14 = vadd.f32 %v2004_v51, %v1986_v3  ;;  %2492 = vmatmul.msk.bf16.gmra.mxu1 %vm637_vm12, %v1859_v16  ;;  %v2891_v51 = vld [vmem:[#allocation2 + $0xc0] sm:$0xff] }
 0xddb   : > { %v2845_v26 = vpop.eup %2844 }
 0xddc   : > { %v1800_v46 = vpop.xlane.xlu0 %1799  ;;  %v1847_v60 = vmul.f32 %v2845_v26, %v4037_v0  ;;  %v2551_v26 = vld [vmem:[#allocation5 + $0x70] sm:$0xff] }
 0xddd   : > { %2846 = vrcp.f32 %v1800_v46  ;;  %v1946_v29 = vpop.f32.mrf.mxu1  ;;  %2155 = vmatpush.bf16.msra.mxu2 %v2551_v26 }
 0xdde   : > { %v1987_v53 = vmul.f32 %v3704_v21, %v1946_v29 }
 0xde0   : > { %v2008_v5 = vadd.f32 %v2005_v6, %v1987_v53 }
 0xde3   : > { %v2847_v19 = vpop.eup %2846 }
 0xde4   : > { %v1848_v45 = vmul.f32 %v2847_v19, %v4041_v38 }
 0xde6   : > { %v1860_v54 = vpack.c.bf16 %v1848_v45, %v1847_v60 }
 0xde8   : > { %2493 = vmatmul.msk.bf16.gmra.mxu1 %vm637_vm12, %v1860_v54 }
 0xdf3   : > { %v1949_v55 = vpop.f32.mrf.mxu1 }
 0xdf4   : > { %v1988_v28 = vmul.f32 %v3757_v22, %v1949_v55 }
 0xdf6   : > { %v2009_v20 = vadd.f32 %v2006_v25, %v1988_v28 }
 0xdfb   : > { %v1951_v37 = vpop.f32.mrf.mxu1 }
 0xdfc   : > { %v1989_v0 = vmul.f32 %v2886_v9, %v1951_v37 }
 0xdfe   : > { %v2010_v40 = vadd.f32 %v2007_v14, %v1989_v0 }
 0xe03   : > { %v1954_v8 = vpop.f32.mrf.mxu1 }
 0xe04   : > { %v1990_v38 = vmul.f32 %v3737_v23, %v1954_v8 }
 0xe06   : > { %v2011_v22 = vadd.f32 %v2008_v5, %v1990_v38 }
 0xe0b   : > { %v1956_v34 = vpop.f32.mrf.mxu1 }
 0xe0c   : > { %v1991_v23 = vmul.f32 %v2891_v51, %v1956_v34 }
 0xe0e   : > { %v2012_v6 = vadd.f32 %v2009_v20, %v1991_v23 }
 0xe13   : > { %v1959_v21 = vpop.f32.mrf.mxu1 }
 0xe14   : > { %v1992_v52 = vmul.f32 %v2887_v31, %v1959_v21 }
 0xe16   : > { %v2013_v36 = vadd.f32 %v2010_v40, %v1992_v52 }
 0xe1b   : > { %v1961_v44 = vpop.f32.mrf.mxu1 }
 0xe1c   : > { %v1993_v18 = vmul.f32 %v2888_v43, %v1961_v44 }
 0xe1e   : > { %v2014_v7 = vadd.f32 %v2011_v22, %v1993_v18 }
 0xe55   : > { %v1964_v24 = vpop.f32.mrf.mxu1 }
 0xe56   : > { %v1994_v59 = vmul.f32 %v2892_v41, %v1964_v24 }
 0xe58   : > { %v2015_v13 = vadd.f32 %v2012_v6, %v1994_v59 }
 0xe5d   : > { %v1966_v48 = vpop.f32.mrf.mxu1 }
 0xe5e   : > { %v1995_v62 = vmul.f32 %v2889_v57, %v1966_v48 }
 0xe60   : > { %v2016_v50 = vadd.f32 %v2013_v36, %v1995_v62 }
 0xe65   : > { %v1969_v49 = vpop.f32.mrf.mxu1 }
 0xe66   : > { %v1996_v11 = vmul.f32 %v2890_v10, %v1969_v49 }
 0xe68   : > { %v2017_v35 = vadd.f32 %v2014_v7, %v1996_v11 }
 0xe6a   : > { %v2019_v1 = vpack.c.bf16 %v2017_v35, %v2016_v50 }
 0xe6c   : > { %2502 = vmatmul.msk.bf16.vlgmr.msra.gmra.mxu3 %vm366_vm1, %v2019_v1 }
 0xe6d   : > { %v1971_v2 = vpop.f32.mrf.mxu1 }
 0xe6e   : > { %v1997_v58 = vmul.f32 %v3764_v39, %v1971_v2 }
 0xe70   : > { %v2018_v25 = vadd.f32 %v2015_v13, %v1997_v58 }
 0xe72   : > { %v2020_v56 = vpack.c.bf16 %v2018_v25, %v2018_v25 }
 0xe7c   : > { %2503 = vmatmul.msk.bf16.gmra.mxu3 %vm366_vm1, %v2020_v56 }
 0xeef   : > { %v2049_v12 = vpop.f32.mrf.mxu3 }
 0xef0   : > { %v2050_v32 = vadd.f32 %v2049_v12, %v2021_v63 }
 0xef2   : > { %v2058_v27 = vadd.f32 %v2050_v32, %v3648_v61  ;;  %v2556_v32 = vld [vmem:[#allocation5 + $0x98] sm:$0xff] }
 0xef3   : > { %2230 = vmatpush.bf16.msrb.mxu3 %v2556_v32 }
 0xef4   : > { %v2061_v39 = vsel %vm366_vm1, %v2058_v27, 0.0 }
 0xef5   : > { %2062 = vadd.xlane.f32.xlu2 %v2061_v39  ;;  %v2129_v39 = vperm.slane %v4082_v4, 2 }
 0xef7   : > { %v2051_v3 = vpop.f32.mrf.mxu3 }
 0xef8   : > { %v2052_v16 = vadd.f32 %v2051_v3, %v2021_v63  ;;  %v2554_v3 = vld [vmem:[#allocation5 + $0x88] sm:$0xff] }
 0xefa   : > { %v2059_v30 = vadd.f32 %v2052_v16, %v3653_v15 }
 0xefc   : > { %v2064_v14 = vsel %vm366_vm1, %v2059_v30, 0.0 }
 0xefd   : > { %2065 = vadd.xlane.f32.xlu1 %v2064_v14  ;;  %v2553_v14 = vld [vmem:[#allocation5 + $0x80] sm:$0xff] }
 0xeff   : > { %v2054_v46 = vpop.f32.mrf.mxu3 }
 0xf00   : > { %v2055_v29 = vadd.f32 %v2054_v46, %v2021_v63 }
 0xf02   : > { %v4090_v53 = vadd.f32 %v2055_v29, %v3658_v33 }
 0xf04   : > { %v2067_v5 = vsel %vm366_vm1, %v4090_v53, 0.0 }
 0xf05   : > { %2068 = vadd.xlane.f32.xlu0 %v2067_v5 }
 0xf07   : > { %v2056_v61 = vpop.f32.mrf.mxu3 }
 0xf68   : > { %v2063_v19 = vpop.xlane.xlu2 %2062 }
 0xf69   : > { %v2070_v60 = vmul.f32 %v2063_v19, %v3154_v17 }
 0xf6b   : > { %v2073_v45 = vsub.f32 %v2058_v27, %v2070_v60  ;;  %v2555_v27 = vld [vmem:[#allocation5 + $0x90] sm:$0xff] }
 0xf6c   : > { %2231 = vmatpush.bf16.msrb.mxu3 %v2555_v27 }
 0xf6d   : > { %v2076_v15 = vmul.f32 %v2073_v45, %v2073_v45 }
 0xf6f   : > { %v2079_v54 = vsel %vm366_vm1, %v2076_v15, 0.0 }
 0xf70   : > { %v2066_v55 = vpop.xlane.xlu1 %2065  ;;  %2080 = vadd.xlane.f32.xlu2 %v2079_v54  ;;  %2232 = vmatpush.bf16.msrb.mxu3 %v2554_v3 }
 0xf71   : > { %v2071_v28 = vmul.f32 %v2066_v55, %v3154_v17 }
 0xf73   : > { %v2074_v33 = vsub.f32 %v2059_v30, %v2071_v28 }
 0xf74   : > { %2233 = vmatpush.bf16.msrb.mxu3 %v2553_v14 }
 0xf75   : > { %v2077_v20 = vmul.f32 %v2074_v33, %v2074_v33 }
 0xf77   : > { %v2082_v47 = vsel %vm366_vm1, %v2077_v20, 0.0 }
 0xf78   : > { %2083 = vadd.xlane.f32.xlu1 %v2082_v47  ;;  %v2069_v37 = vpop.xlane.xlu0 %2068 }
 0xf79   : > { %v2072_v8 = vmul.f32 %v2069_v37, %v3154_v17 }
 0xf7b   : > { %v2075_v34 = vsub.f32 %v4090_v53, %v2072_v8 }
 0xf7d   : > { %v2078_v21 = vmul.f32 %v2075_v34, %v2075_v34 }
 0xf7f   : > { %v2085_v44 = vsel %vm366_vm1, %v2078_v21, 0.0 }
 0xf80   : > { %2086 = vadd.xlane.f32.xlu0 %v2085_v44 }
 0xfe3   : > { %v2081_v24 = vpop.xlane.xlu2 %2080 }
 0xfe4   : > { %v2088_v48 = vmul.f32 %v2081_v24, %v3154_v17 }
 0xfe6   : > { %v2091_v9 = vadd.f32 1e-05, %v2088_v48 }
 0xfe8   : > { %2848 = vrsqrt.f32 %v2091_v9  ;;  %vm2100_vm13 = vweird.f32 %v2091_v9 }
 0xfeb   : > { %v2084_v0 = vpop.xlane.xlu1 %2083 }
 0xfec   : > { %v2089_v38 = vmul.f32 %v2084_v0, %v3154_v17 }
 0xfee   : > { %v2849_v31 = vpop.eup %2848  ;;  %v2092_v52 = vadd.f32 1e-05, %v2089_v38 }
 0xfef   : > { %v2095_v43 = vmul.f32 %v2849_v31, %v2091_v9  ;;  %vm2101_vm12 = vweird.f32 %v2849_v31 }
 0xff0   : > { %2850 = vrsqrt.f32 %v2092_v52  ;;  %vm2102_vm6 = vmor %vm2100_vm13, %vm2101_vm12  ;;  %vm2110_vm7 = vweird.f32 %v2092_v52 }
 0xff1   : > { %v2096_v18 = vmul.f32 %v2849_v31, %v2095_v43 }
 0xff3   : > { %v2097_v40 = vmul.f32 0.5, %v2096_v18  ;;  %v2087_v22 = vpop.xlane.xlu0 %2086 }
 0xff4   : > { %v2090_v57 = vmul.f32 %v2087_v22, %v3154_v17 }
 0xff5   : > { %v2098_v36 = vsub.f32 1.5, %v2097_v40 }
 0xff6   : > { %v2851_v62 = vpop.eup %2850  ;;  %v2093_v49 = vadd.f32 1e-05, %v2090_v57 }
 0xff7   : > { %v2105_v7 = vmul.f32 %v2851_v62, %v2092_v52  ;;  %v2099_v11 = vmul.f32 %v2849_v31, %v2098_v36  ;;  %vm2111_vm5 = vweird.f32 %v2851_v62  ;;  %v283_v36 = vld [vmem:[#allocation2 + $0x28] sm:$0xff] }
 0xff8   : > { %2852 = vrsqrt.f32 %v2093_v49  ;;  %vm2112_vm9 = vmor %vm2110_vm7, %vm2111_vm5  ;;  %vm2120_vm11 = vweird.f32 %v2093_v49  ;;  %2259 = vmatpush.msrb.mxu2 %v283_v36 }
 0xff9   : > { %v2106_v10 = vmul.f32 %v2851_v62, %v2105_v7  ;;  %v2103_v51 = vsel %vm2102_vm6, %v2849_v31, %v2099_v11  ;;  %v282_v7 = vld [vmem:[#allocation2 + $0x20] sm:$0xff]  ;;  %v280_v11 = vld [vmem:[#allocation2 + $0x10] sm:$0xff] }
 0xffa   : > { %v2124_v59 = vmul.f32 %v2103_v51, %v2073_v45  ;;  %2260 = vmatpush.msrb.mxu2 %v282_v7 }
 0xffb   : > { %v2107_v50 = vmul.f32 0.5, %v2106_v10  ;;  %v281_v10 = vld [vmem:[#allocation2 + $0x18] sm:$0xff] }
 0xffc   : > { %2261 = vmatpush.msrb.mxu2 %v281_v10 }
 0xffd   : > { %v2108_v35 = vsub.f32 1.5, %v2107_v50 }
 0xffe   : > { %v2853_v1 = vpop.eup %2852  ;;  %2262 = vmatpush.msrb.mxu2 %v280_v11 }
 0xfff   : > { %v2109_v23 = vmul.f32 %v2851_v62, %v2108_v35  ;;  %v2115_v2 = vmul.f32 %v2853_v1, %v2093_v49  ;;  %vm2121_vm10 = vweird.f32 %v2853_v1 }
0x1000   : > { %vm2122_vm14 = vmor %vm2120_vm11, %vm2121_vm10 }
0x1001   : > { %v2113_v17 = vsel %vm2112_vm9, %v2851_v62, %v2109_v23  ;;  %v2116_v41 = vmul.f32 %v2853_v1, %v2115_v2 }
0x1002   : > { %v2125_v6 = vmul.f32 %v2113_v17, %v2074_v33 }
0x1003   : > { %v2117_v58 = vmul.f32 0.5, %v2116_v41  ;;  %v2629_v41 = vld [vmem:[#allocation2 + $0x30] ss:$0 sm:$0xff] }
0x1004   : > { %v2127_v13 = vpack.c.bf16 %v2125_v6, %v2124_v59 }
0x1005   : > { %v2118_v25 = vsub.f32 1.5, %v2117_v58 }
0x1006   : > { %2512 = vmatmul.msk.bf16.vlgmr.msra.gmra.mxu2 %vm366_vm1, %v2127_v13 }
0x1007   : > { %v2119_v56 = vmul.f32 %v2853_v1, %v2118_v25 }
0x1009   : > { %v2123_v42 = vsel %vm2122_vm14, %v2853_v1, %v2119_v56  ;;  %v2195_v1 = vperm.slane %v4082_v4, 3 }
0x100a   : > { %v2126_v63 = vmul.f32 %v2123_v42, %v2075_v34 }
0x100c   : > { %v2128_v12 = vpack.c.bf16 %v2126_v63, %v2126_v63 }
0x1016   : > { %2513 = vmatmul.msk.bf16.gmra.mxu2 %vm366_vm1, %v2128_v12 }
0x1089   : > { %v2157_v16 = vpop.f32.mrf.mxu2 }
0x108a   : > { %v2158_v30 = vadd.f32 %v2157_v16, %v2129_v39 }
0x108c   : > { %v2166_v46 = vmul.f32 %v2158_v30, %v2158_v30 }
0x108e   : > { %v2169_v29 = vmul.f32 %v2166_v46, %v2158_v30 }
0x1090   : > { %v2172_v5 = vmul.f32 0.044715, %v2169_v29 }
0x1091   : > { %v2159_v61 = vpop.f32.mrf.mxu2 }
0x1092   : > { %v2175_v26 = vadd.f32 %v2172_v5, %v2158_v30  ;;  %v2160_v19 = vadd.f32 %v2159_v61, %v2129_v39 }
0x1094   : > { %v2178_v60 = vmul.f32 0.7978846, %v2175_v26  ;;  %v2167_v45 = vmul.f32 %v2160_v19, %v2160_v19 }
0x1096   : > { %v2170_v15 = vmul.f32 %v2167_v45, %v2160_v19  ;;  %2854 = vtanh.f32 %v2178_v60 }
0x1098   : > { %v2173_v54 = vmul.f32 0.044715, %v2170_v15 }
0x1099   : > { %v2162_v55 = vpop.f32.mrf.mxu2 }
0x109a   : > { %v2176_v28 = vadd.f32 %v2173_v54, %v2160_v19  ;;  %v2163_v33 = vadd.f32 %v2162_v55, %v2129_v39 }
0x109c   : > { %v2179_v20 = vmul.f32 0.7978846, %v2176_v28  ;;  %v2168_v47 = vmul.f32 %v2163_v33, %v2163_v33  ;;  %v2855_v37 = vpop.eup %2854 }
0x109d   : > { %v2184_v21 = vadd.f32 1.0, %v2855_v37 }
0x109e   : > { %2856 = vtanh.f32 %v2179_v20  ;;  %v2171_v8 = vmul.f32 %v2168_v47, %v2163_v33 }
0x109f   : > { %v2187_v0 = vmul.f32 0.5, %v2184_v21 }
0x10a0   : > { %v2174_v34 = vmul.f32 0.044715, %v2171_v8 }
0x10a1   : > { %v2164_v44 = vpop.f32.mrf.mxu2  ;;  %v2190_v52 = vmul.f32 %v2187_v0, %v2158_v30 }
0x10a2   : > { %v2177_v24 = vadd.f32 %v2174_v34, %v2163_v33 }
0x10a4   : > { %v2857_v48 = vpop.eup %2856  ;;  %v2180_v9 = vmul.f32 0.7978846, %v2177_v24 }
0x10a5   : > { %v2185_v38 = vadd.f32 1.0, %v2857_v48 }
0x10a6   : > { %2858 = vtanh.f32 %v2180_v9 }
0x10a7   : > { %v2188_v31 = vmul.f32 0.5, %v2185_v38 }
0x10a9   : > { %v2191_v43 = vmul.f32 %v2188_v31, %v2160_v19 }
0x10ab   : > { %v2193_v18 = vpack.c.bf16 %v2191_v43, %v2190_v52 }
0x10ac   : > { %v2859_v40 = vpop.eup %2858 }
0x10ad   : > { %2530 = vmatmul.msk.bf16.vlgmr.msrb.gmra.mxu3 %vm1274_vm8, %v2193_v18  ;;  %v2186_v22 = vadd.f32 1.0, %v2859_v40 }
0x10af   : > { %v2189_v57 = vmul.f32 0.5, %v2186_v22 }
0x10b1   : > { %v2192_v62 = vmul.f32 %v2189_v57, %v2163_v33 }
0x10b3   : > { %v2194_v49 = vpack.c.bf16 %v2192_v62, %v2192_v62 }
0x10bd   : > { %2531 = vmatmul.msk.bf16.gmra.mxu3 %vm1274_vm8, %v2194_v49 }
0x1130   : > { %v2235_v50 = vpop.f32.mrf.mxu3 }
0x1138   : > { %v2236_v35 = vpop.f32.mrf.mxu3 }
0x1140   : > { %v2238_v51 = vpop.f32.mrf.mxu3 }
0x1141   : > { %v2239_v23 = vadd.f32 %v2238_v51, %v2195_v1 }
0x1143   : > { %v2242_v2 = vadd.f32 %v2239_v23, %v4090_v53 }
0x1145   : > { %2532 = vmatmul.msk.f32.vlgmr.msrb.gmra.mxu2 %vm366_vm1, %v2242_v2 }
0x1148   : > { %v2240_v17 = vpop.f32.mrf.mxu3 }
0x11c8   : > { %v2264_v4 = vpop.f32.mrf.mxu2 }
0x11c9   : > { %v2265_v59 = vadd.f32 %v2629_v41, %v2264_v4 }
0x11cb   : > { %2267 = vst [vmem:[%s263_s13] sm:$0xff] %v2265_v59 }
0x11cc   : > { %2981 = shalt.err (!%p2978_p9)
}
0x11cd   : > { %2569 = dma.vmem_to_hbm [thread:$0]  (%p3103_p5), %s2282_s14, 128, %s2284_s15, %s2269_s16  }
0x11ce PF: > { %p2586_p10 = scmp.ge.s32.totalorder %s3024_s21, 2  ;;  %s2295_s7 = sand.u32 1, %s3012_s18  }
0x11cf   : > { %s2296_s8 = scalar_lea.sflag [#allocation4], %s2295_s7 }
0x11d0   : > { %p2579_p11 = pnand %p2586_p10, %p3107_p6 }
0x11d2   : > { %p2580_p12 = pneg %p2579_p11 }
0x11d4   : > { %3007 = dma.done.wait (%p2580_p12), %s2296_s8, 128  }
0x11d5   : > { %3009 = vsyncadd (%p2580_p12), %s2296_s8, 4294967168  ;;  %p17_p13 = scmp.ge.s32.totalorder %s3090_s24, 4   ;;  %s4153_s18 = smov %s3016_s19 }
0x11d6   : > { %s4154_s19 = smov %s3020_s20  ;;  %s4155_s20 = smov %s3101_s27 }
0x11d7   : > { %s4156_s21 = smov %s3090_s24  ;;  %19 = sbr.rel (!%p17_p13) target bundleno = 5 (0x5), region = 89 }
0x11dc   :  { %2302 = vsyncpa [#allocation3], 1 }
0x11dd   :  { %2304 = vsyncpa [#allocation3 + $0x1], 1 }
0x11de   :  { %2305 = vsyncpa [#allocation6], 1 }
0x11df   :  { %2306 = vsyncpa [#allocation4], 1 }
0x11e0   :  { %2308 = vsyncpa [#allocation4 + $0x1], 1 }

</bundles_post_ra>
